<compile_context>
chip_gen: v7x
topology: tpu7x:2x2x1
jax: 0.10.0
libtpu: 0.0.40
codegen_flags: <defaults>
</compile_context>

<pallas_src>
import functools
import math

import jax
import jax.numpy as jnp
from jax.experimental import pallas as pl
from jax.experimental.pallas import tpu as pltpu

# bf16 matmul operands (MXU-native on v6e/v7x); accumulation stays f32.
MATMUL_DTYPE = jnp.bfloat16


def _vmem_limit_bytes():
    # ~3/4 of physical VMEM, capped at 100 MiB:
    #   v5e/v6e (128 MiB physical) -> 96 MiB ; v7x (64 MiB) -> 48 MiB.
    try:
        cap = pltpu.get_tpu_info().vmem_capacity_bytes
    except Exception:
        cap = 128 * 1024 * 1024
    return int(min(cap * 3 // 4, 100 * 1024 * 1024))


# ------------------------------ in-kernel helpers ----------------------------

def _ln_f32(x, g, b, eps=1e-5):
    mean = jnp.mean(x, axis=-1, keepdims=True)
    var = jnp.mean(jnp.square(x - mean), axis=-1, keepdims=True)
    return (x - mean) * jax.lax.rsqrt(var + eps) * g + b


def _gelu_exact(x):
    # exact (erf-based) GELU, matching torch.nn.GELU() default
    return 0.5 * x * (1.0 + jax.lax.erf(x * (1.0 / math.sqrt(2.0))))


def _bdot(lhs, rhs, lhs_c, rhs_c):
    # Batched (over leading axis 0) MXU matmul with f32 accumulation.
    return jax.lax.dot_general(
        lhs, rhs, (((lhs_c,), (rhs_c,)), ((0,), (0,))),
        preferred_element_type=jnp.float32)


# ------------------------- fused transformer-layer kernel --------------------
# One grid program per batch element:
#   LN -> QKV -> per-head softmax attention -> out-proj -> +residual
#   LN -> Linear -> GELU -> Linear -> +residual  [-> final LN on last layer]

def _layer_kernel(x_ref, ag_ref, ab_ref, wqkv_ref, wout_ref, bout_ref,
                  fg_ref, fb_ref, w1_ref, b1_ref, w2_ref, b2_ref,
                  lng_ref, lnb_ref, o_ref, *, heads, scale, apply_final_ln):
    x = x_ref[0].astype(jnp.float32)                                # [N, D]
    n, d = x.shape

    # ------------------------------ attention --------------------------------
    y = _ln_f32(x, ag_ref[...].astype(jnp.float32),
                ab_ref[...].astype(jnp.float32))
    yb = jnp.broadcast_to(y.astype(MATMUL_DTYPE)[None], (heads, n, d))  # [H,N,D]
    wqkv = wqkv_ref[...].astype(MATMUL_DTYPE)                       # [3,H,D,Dh]

    q = _bdot(yb, wqkv[0], 2, 1) * scale                            # [H,N,Dh] (scale folded)
    k = _bdot(yb, wqkv[1], 2, 1)                                    # [H,N,Dh]
    v = _bdot(yb, wqkv[2], 2, 1)                                    # [H,N,Dh]

    dots = _bdot(q.astype(MATMUL_DTYPE), k.astype(MATMUL_DTYPE), 2, 2)   # [H,N,N]
    m = jnp.max(dots, axis=-1, keepdims=True)
    p = jnp.exp(dots - m)
    attn = p * pl.reciprocal(jnp.sum(p, axis=-1, keepdims=True), approx=True)

    ctx = _bdot(attn.astype(MATMUL_DTYPE), v.astype(MATMUL_DTYPE), 2, 1)  # [H,N,Dh]
    # Per-head output projection accumulated over heads (no lane concatenate).
    proj = _bdot(ctx.astype(MATMUL_DTYPE),
                 wout_ref[...].astype(MATMUL_DTYPE), 2, 1)          # [H,N,D]
    x = x + jnp.sum(proj, axis=0) + bout_ref[...].astype(jnp.float32)

    # ----------------------------- feed-forward ------------------------------
    y = _ln_f32(x, fg_ref[...].astype(jnp.float32),
                fb_ref[...].astype(jnp.float32))
    h = jnp.dot(y.astype(MATMUL_DTYPE), w1_ref[...].astype(MATMUL_DTYPE),
                preferred_element_type=jnp.float32)
    h = _gelu_exact(h + b1_ref[...].astype(jnp.float32))
    f = jnp.dot(h.astype(MATMUL_DTYPE), w2_ref[...].astype(MATMUL_DTYPE),
                preferred_element_type=jnp.float32)
    x = x + f + b2_ref[...].astype(jnp.float32)

    if apply_final_ln:
        x = _ln_f32(x, lng_ref[...].astype(jnp.float32),
                    lnb_ref[...].astype(jnp.float32))

    o_ref[0] = x.astype(o_ref.dtype)


def transformer_layer(x, layer, final_g, final_b, *, heads, dim_head,
                      apply_final_ln):
    B, N, D = x.shape
    Dh = dim_head
    F = layer["ff_w1"].shape[1]
    scale = dim_head ** (-0.5)
    kern = functools.partial(_layer_kernel, heads=heads, scale=scale,
                             apply_final_ln=apply_final_ln)

    def full(*shape):
        return pl.BlockSpec(shape, lambda b: (0,) * len(shape))

    return pl.pallas_call(
        kern,
        out_shape=jax.ShapeDtypeStruct((B, N, D), x.dtype),
        grid_spec=pltpu.PrefetchScalarGridSpec(
            num_scalar_prefetch=0,
            grid=(B,),
            in_specs=[
                pl.BlockSpec((1, N, D), lambda b: (b, 0, 0)),   # x
                full(1, D), full(1, D),                          # attn LN g, b
                full(3, heads, D, Dh),                           # W_qkv (head-major)
                full(heads, Dh, D),                              # W_out (per-head)
                full(1, D),                                      # b_out
                full(1, D), full(1, D),                          # ff LN g, b
                full(D, F), full(1, F),                          # W1, b1
                full(F, D), full(1, D),                          # W2, b2
                full(1, D), full(1, D),                          # final LN g, b
            ],
            out_specs=pl.BlockSpec((1, N, D), lambda b: (b, 0, 0)),
        ),
        compiler_params=pltpu.CompilerParams(
            dimension_semantics=("parallel",),
            vmem_limit_bytes=_vmem_limit_bytes()),
    )(x, layer["attn_ln_g"], layer["attn_ln_b"], layer["wqkv"], layer["wout"],
      layer["bout"], layer["ff_ln_g"], layer["ff_ln_b"], layer["ff_w1"],
      layer["ff_b1"], layer["ff_w2"], layer["ff_b2"], final_g, final_b)


# --------------------------- standalone LayerNorm ----------------------------
# Only used for depth == 0 (otherwise the final LN is fused into the last
# layer's kernel).  Row-tiled so it pipelines and scales with B*N.

def _layernorm_kernel(x_ref, g_ref, b_ref, o_ref):
    o_ref[...] = _ln_f32(x_ref[...].astype(jnp.float32),
                         g_ref[...].astype(jnp.float32),
                         b_ref[...].astype(jnp.float32)).astype(o_ref.dtype)


def _row_tile(m, cap=512):
    # Largest multiple-of-8 divisor of m not exceeding cap (falls back to m).
    best = m
    for t in range(8, min(m, cap) + 1, 8):
        if m % t == 0:
            best = t
    return best


def layernorm(x2, g, b):
    M, D = x2.shape
    TM = _row_tile(M)
    return pl.pallas_call(
        _layernorm_kernel,
        out_shape=jax.ShapeDtypeStruct((M, D), x2.dtype),
        grid_spec=pltpu.PrefetchScalarGridSpec(
            num_scalar_prefetch=0,
            grid=(M // TM,),
            in_specs=[pl.BlockSpec((TM, D), lambda i: (i, 0)),
                      pl.BlockSpec((1, D), lambda i: (0, 0)),
                      pl.BlockSpec((1, D), lambda i: (0, 0))],
            out_specs=pl.BlockSpec((TM, D), lambda i: (i, 0)),
        ),
        compiler_params=pltpu.CompilerParams(
            dimension_semantics=("parallel",),
            vmem_limit_bytes=_vmem_limit_bytes()),
    )(x2, g, b)


# -------------------------------- parameters ----------------------------------

def init_params(key, cfg):
    dim, heads, dh, mlp = cfg["dim"], cfg["heads"], cfg["dim_head"], cfg["mlp_dim"]
    keys = iter(jax.random.split(key, 8 * max(cfg["depth"], 1) + 2))

    def nrm(shape, scale=0.02):
        # Weights stored in the MXU dtype (bf16) to halve HBM/VMEM traffic.
        return (scale * jax.random.normal(next(keys), shape, jnp.float32)
                ).astype(MATMUL_DTYPE)

    params = {
        "final_ln_g": jnp.ones((1, dim), jnp.float32),
        "final_ln_b": jnp.zeros((1, dim), jnp.float32),
        "layers": [],
    }
    for _ in range(cfg["depth"]):
        params["layers"].append({
            "attn_ln_g": jnp.ones((1, dim), jnp.float32),
            "attn_ln_b": jnp.zeros((1, dim), jnp.float32),
            "wqkv": nrm((3, heads, dim, dh)),   # to_qkv (bias=False), head-major
            "wout": nrm((heads, dh, dim)),      # to_out Linear, per-head slabs
            "bout": jnp.zeros((1, dim), jnp.float32),
            "ff_ln_g": jnp.ones((1, dim), jnp.float32),
            "ff_ln_b": jnp.zeros((1, dim), jnp.float32),
            "ff_w1": nrm((dim, mlp)),
            "ff_b1": jnp.zeros((1, mlp), jnp.float32),
            "ff_w2": nrm((mlp, dim)),
            "ff_b2": jnp.zeros((1, dim), jnp.float32),
        })
    return params


# ---------------------------------- forward -----------------------------------

def transformer_forward(params, x, cfg):
    # x: [B, N, dim].  Dropout layers are identity at inference (p = 0).
    B, N, D = x.shape
    depth = len(params["layers"])
    if depth == 0:
        return layernorm(x.reshape(B * N, D), params["final_ln_g"],
                         params["final_ln_b"]).reshape(B, N, D)
    for i, layer in enumerate(params["layers"]):
        x = transformer_layer(x, layer, params["final_ln_g"],
                              params["final_ln_b"],
                              heads=cfg["heads"], dim_head=cfg["dim_head"],
                              apply_final_ln=(i == depth - 1))
    return x


# ------------------------------------ main -------------------------------------

if __name__ == "__main__":
    cfg = dict(dim=32, depth=2, heads=2, dim_head=8, mlp_dim=64)

    key = jax.random.PRNGKey(0)
    pkey, xkey = jax.random.split(key)
    params = init_params(pkey, cfg)
    x = jax.random.normal(xkey, (2, 8, cfg["dim"]), dtype=jnp.float32)

    fwd = jax.jit(functools.partial(transformer_forward, cfg=cfg))
    out = fwd(params, x)
    out = jax.block_until_ready(out)

    assert out.shape == (2, 8, cfg["dim"]), out.shape
    assert bool(jnp.all(jnp.isfinite(out)))
    print("KERNEL_OK")
</pallas_src>

<mosaic_0001>
module attributes {stable_mosaic.version = 11 : i64} {
  func.func @_layer_kernel(%arg0: i32, %arg1: memref<1x8x32xf32, #tpu.memory_space<vmem>>, %arg2: memref<1x32xf32, #tpu.memory_space<vmem>>, %arg3: memref<1x32xf32, #tpu.memory_space<vmem>>, %arg4: memref<3x2x32x8xbf16, #tpu.memory_space<vmem>>, %arg5: memref<2x8x32xbf16, #tpu.memory_space<vmem>>, %arg6: memref<1x32xf32, #tpu.memory_space<vmem>>, %arg7: memref<1x32xf32, #tpu.memory_space<vmem>>, %arg8: memref<1x32xf32, #tpu.memory_space<vmem>>, %arg9: memref<32x64xbf16, #tpu.memory_space<vmem>>, %arg10: memref<1x64xf32, #tpu.memory_space<vmem>>, %arg11: memref<64x32xbf16, #tpu.memory_space<vmem>>, %arg12: memref<1x32xf32, #tpu.memory_space<vmem>>, %arg13: memref<1x32xf32, #tpu.memory_space<vmem>>, %arg14: memref<1x32xf32, #tpu.memory_space<vmem>>, %arg15: memref<1x8x32xf32, #tpu.memory_space<vmem>>) attributes {dimension_semantics = [#tpu.dimension_semantics<parallel>], iteration_bounds = array<i64: 2>, scalar_prefetch = 0 : i64, scratch_operands = 0 : i64, tpu.core_type = #tpu.core_type<tc>, window_params = [{transform_indices = @transform_0, window_bounds = array<i64: 1, 8, 32>}, {pipeline_mode = #tpu.pipeline_mode<synchronous>, transform_indices = @transform_1, window_bounds = array<i64: 1, 32>}, {pipeline_mode = #tpu.pipeline_mode<synchronous>, transform_indices = @transform_2, window_bounds = array<i64: 1, 32>}, {pipeline_mode = #tpu.pipeline_mode<synchronous>, transform_indices = @transform_3, window_bounds = array<i64: 3, 2, 32, 8>}, {pipeline_mode = #tpu.pipeline_mode<synchronous>, transform_indices = @transform_4, window_bounds = array<i64: 2, 8, 32>}, {pipeline_mode = #tpu.pipeline_mode<synchronous>, transform_indices = @transform_5, window_bounds = array<i64: 1, 32>}, {pipeline_mode = #tpu.pipeline_mode<synchronous>, transform_indices = @transform_6, window_bounds = array<i64: 1, 32>}, {pipeline_mode = #tpu.pipeline_mode<synchronous>, transform_indices = @transform_7, window_bounds = array<i64: 1, 32>}, {pipeline_mode = #tpu.pipeline_mode<synchronous>, transform_indices = @transform_8, window_bounds = array<i64: 32, 64>}, {pipeline_mode = #tpu.pipeline_mode<synchronous>, transform_indices = @transform_9, window_bounds = array<i64: 1, 64>}, {pipeline_mode = #tpu.pipeline_mode<synchronous>, transform_indices = @transform_10, window_bounds = array<i64: 64, 32>}, {pipeline_mode = #tpu.pipeline_mode<synchronous>, transform_indices = @transform_11, window_bounds = array<i64: 1, 32>}, {pipeline_mode = #tpu.pipeline_mode<synchronous>, transform_indices = @transform_12, window_bounds = array<i64: 1, 32>}, {pipeline_mode = #tpu.pipeline_mode<synchronous>, transform_indices = @transform_13, window_bounds = array<i64: 1, 32>}, {transform_indices = @transform_14, window_bounds = array<i64: 1, 8, 32>}]} {
    %c0 = arith.constant 0 : index
    %c0_0 = arith.constant 0 : index
    %c0_1 = arith.constant 0 : index
    %0 = vector.load %arg1[%c0, %c0_0, %c0_1] : memref<1x8x32xf32, #tpu.memory_space<vmem>>, vector<1x8x32xf32>
    %1 = vector.shape_cast %0 : vector<1x8x32xf32> to vector<8x32xf32>
    %c0_2 = arith.constant 0 : index
    %c0_3 = arith.constant 0 : index
    %2 = vector.load %arg2[%c0_2, %c0_3] : memref<1x32xf32, #tpu.memory_space<vmem>>, vector<1x32xf32>
    %c0_4 = arith.constant 0 : index
    %c0_5 = arith.constant 0 : index
    %3 = vector.load %arg3[%c0_4, %c0_5] : memref<1x32xf32, #tpu.memory_space<vmem>>, vector<1x32xf32>
    %cst = arith.constant dense<0.000000e+00> : vector<8xf32>
    %4 = vector.multi_reduction <add>, %1, %cst [1] : vector<8x32xf32> to vector<8xf32>
    %5 = vector.shape_cast %4 : vector<8xf32> to vector<8x1xf32>
    %cst_6 = arith.constant 3.200000e+01 : f32
    %6 = vector.broadcast %cst_6 : f32 to vector<8x1xf32>
    %7 = arith.divf %5, %6 : vector<8x1xf32>
    %8 = vector.broadcast %7 : vector<8x1xf32> to vector<8x32xf32>
    %9 = arith.subf %1, %8 : vector<8x32xf32>
    %10 = arith.mulf %9, %9 : vector<8x32xf32>
    %cst_7 = arith.constant dense<0.000000e+00> : vector<8xf32>
    %11 = vector.multi_reduction <add>, %10, %cst_7 [1] : vector<8x32xf32> to vector<8xf32>
    %12 = vector.shape_cast %11 : vector<8xf32> to vector<8x1xf32>
    %cst_8 = arith.constant 3.200000e+01 : f32
    %13 = vector.broadcast %cst_8 : f32 to vector<8x1xf32>
    %14 = arith.divf %12, %13 : vector<8x1xf32>
    %15 = vector.broadcast %7 : vector<8x1xf32> to vector<8x32xf32>
    %16 = arith.subf %1, %15 : vector<8x32xf32>
    %cst_9 = arith.constant 9.99999974E-6 : f32
    %17 = vector.broadcast %cst_9 : f32 to vector<8x1xf32>
    %18 = arith.addf %14, %17 : vector<8x1xf32>
    %19 = math.rsqrt %18 : vector<8x1xf32>
    %20 = vector.broadcast %19 : vector<8x1xf32> to vector<8x32xf32>
    %21 = arith.mulf %16, %20 : vector<8x32xf32>
    %22 = vector.broadcast %2 : vector<1x32xf32> to vector<8x32xf32>
    %23 = arith.mulf %21, %22 : vector<8x32xf32>
    %24 = vector.broadcast %3 : vector<1x32xf32> to vector<8x32xf32>
    %25 = arith.addf %23, %24 : vector<8x32xf32>
    %26 = arith.truncf %25 : vector<8x32xf32> to vector<8x32xbf16>
    %27 = vector.shape_cast %26 : vector<8x32xbf16> to vector<1x8x32xbf16>
    %28 = vector.shape_cast %27 : vector<1x8x32xbf16> to vector<1x8x32xbf16>
    %29 = vector.broadcast %28 : vector<1x8x32xbf16> to vector<2x8x32xbf16>
    %c0_10 = arith.constant 0 : index
    %c0_11 = arith.constant 0 : index
    %c0_12 = arith.constant 0 : index
    %c0_13 = arith.constant 0 : index
    %30 = vector.load %arg4[%c0_10, %c0_11, %c0_12, %c0_13] : memref<3x2x32x8xbf16, #tpu.memory_space<vmem>>, vector<3x2x32x8xbf16>
    %31 = vector.extract_strided_slice %30 {offsets = [0, 0, 0, 0], sizes = [1, 2, 32, 8], strides = [1, 1, 1, 1]} : vector<3x2x32x8xbf16> to vector<1x2x32x8xbf16>
    %32 = vector.shape_cast %31 : vector<1x2x32x8xbf16> to vector<2x32x8xbf16>
    %cst_14 = arith.constant dense<0.000000e+00> : vector<2x8x8xf32>
    %33 = tpu.matmul %29, %32, %cst_14 {dimension_numbers = #tpu.dot_dimension_numbers<[2], [1], [1], [2], [0, 0, 0, 1, 1, 2], [0], [0]>} : vector<2x8x32xbf16>, vector<2x32x8xbf16>, vector<2x8x8xf32> -> vector<2x8x8xf32>
    %cst_15 = arith.constant 0.353553385 : f32
    %34 = vector.broadcast %cst_15 : f32 to vector<2x8x8xf32>
    %35 = arith.mulf %33, %34 : vector<2x8x8xf32>
    %36 = vector.extract_strided_slice %30 {offsets = [1, 0, 0, 0], sizes = [1, 2, 32, 8], strides = [1, 1, 1, 1]} : vector<3x2x32x8xbf16> to vector<1x2x32x8xbf16>
    %37 = vector.shape_cast %36 : vector<1x2x32x8xbf16> to vector<2x32x8xbf16>
    %cst_16 = arith.constant dense<0.000000e+00> : vector<2x8x8xf32>
    %38 = tpu.matmul %29, %37, %cst_16 {dimension_numbers = #tpu.dot_dimension_numbers<[2], [1], [1], [2], [0, 0, 0, 1, 1, 2], [0], [0]>} : vector<2x8x32xbf16>, vector<2x32x8xbf16>, vector<2x8x8xf32> -> vector<2x8x8xf32>
    %39 = vector.extract_strided_slice %30 {offsets = [2, 0, 0, 0], sizes = [1, 2, 32, 8], strides = [1, 1, 1, 1]} : vector<3x2x32x8xbf16> to vector<1x2x32x8xbf16>
    %40 = vector.shape_cast %39 : vector<1x2x32x8xbf16> to vector<2x32x8xbf16>
    %cst_17 = arith.constant dense<0.000000e+00> : vector<2x8x8xf32>
    %41 = tpu.matmul %29, %40, %cst_17 {dimension_numbers = #tpu.dot_dimension_numbers<[2], [1], [1], [2], [0, 0, 0, 1, 1, 2], [0], [0]>} : vector<2x8x32xbf16>, vector<2x32x8xbf16>, vector<2x8x8xf32> -> vector<2x8x8xf32>
    %42 = arith.truncf %35 : vector<2x8x8xf32> to vector<2x8x8xbf16>
    %43 = arith.truncf %38 : vector<2x8x8xf32> to vector<2x8x8xbf16>
    %cst_18 = arith.constant dense<0.000000e+00> : vector<2x8x8xf32>
    %44 = tpu.matmul %42, %43, %cst_18 {dimension_numbers = #tpu.dot_dimension_numbers<[2], [2], [1], [1], [0, 0, 0, 1, 1, 1], [0], [0]>} : vector<2x8x8xbf16>, vector<2x8x8xbf16>, vector<2x8x8xf32> -> vector<2x8x8xf32>
    %cst_19 = arith.constant dense<0xFF800000> : vector<2x8xf32>
    %45 = vector.multi_reduction <maximumf>, %44, %cst_19 [2] : vector<2x8x8xf32> to vector<2x8xf32>
    %46 = vector.shape_cast %45 : vector<2x8xf32> to vector<2x8x1xf32>
    %47 = vector.broadcast %46 : vector<2x8x1xf32> to vector<2x8x8xf32>
    %48 = arith.subf %44, %47 : vector<2x8x8xf32>
    %49 = math.exp %48 : vector<2x8x8xf32>
    %cst_20 = arith.constant dense<0.000000e+00> : vector<2x8xf32>
    %50 = vector.multi_reduction <add>, %49, %cst_20 [2] : vector<2x8x8xf32> to vector<2x8xf32>
    %51 = vector.shape_cast %50 : vector<2x8xf32> to vector<2x8x1xf32>
    %52 = tpu.reciprocal %51 {approx = true} : vector<2x8x1xf32> -> vector<2x8x1xf32>
    %53 = vector.broadcast %52 : vector<2x8x1xf32> to vector<2x8x8xf32>
    %54 = arith.mulf %49, %53 : vector<2x8x8xf32>
    %55 = arith.truncf %54 : vector<2x8x8xf32> to vector<2x8x8xbf16>
    %56 = arith.truncf %41 : vector<2x8x8xf32> to vector<2x8x8xbf16>
    %cst_21 = arith.constant dense<0.000000e+00> : vector<2x8x8xf32>
    %57 = tpu.matmul %55, %56, %cst_21 {dimension_numbers = #tpu.dot_dimension_numbers<[2], [1], [1], [2], [0, 0, 0, 1, 1, 2], [0], [0]>} : vector<2x8x8xbf16>, vector<2x8x8xbf16>, vector<2x8x8xf32> -> vector<2x8x8xf32>
    %58 = arith.truncf %57 : vector<2x8x8xf32> to vector<2x8x8xbf16>
    %c0_22 = arith.constant 0 : index
    %c0_23 = arith.constant 0 : index
    %c0_24 = arith.constant 0 : index
    %59 = vector.load %arg5[%c0_22, %c0_23, %c0_24] : memref<2x8x32xbf16, #tpu.memory_space<vmem>>, vector<2x8x32xbf16>
    %cst_25 = arith.constant dense<0.000000e+00> : vector<2x8x32xf32>
    %60 = tpu.matmul %58, %59, %cst_25 {dimension_numbers = #tpu.dot_dimension_numbers<[2], [1], [1], [2], [0, 0, 0, 1, 1, 2], [0], [0]>} : vector<2x8x8xbf16>, vector<2x8x32xbf16>, vector<2x8x32xf32> -> vector<2x8x32xf32>
    %cst_26 = arith.constant dense<0.000000e+00> : vector<8x32xf32>
    %61 = vector.multi_reduction <add>, %60, %cst_26 [0] : vector<2x8x32xf32> to vector<8x32xf32>
    %62 = arith.addf %1, %61 : vector<8x32xf32>
    %c0_27 = arith.constant 0 : index
    %c0_28 = arith.constant 0 : index
    %63 = vector.load %arg6[%c0_27, %c0_28] : memref<1x32xf32, #tpu.memory_space<vmem>>, vector<1x32xf32>
    %64 = vector.broadcast %63 : vector<1x32xf32> to vector<8x32xf32>
    %65 = arith.addf %62, %64 : vector<8x32xf32>
    %c0_29 = arith.constant 0 : index
    %c0_30 = arith.constant 0 : index
    %66 = vector.load %arg7[%c0_29, %c0_30] : memref<1x32xf32, #tpu.memory_space<vmem>>, vector<1x32xf32>
    %c0_31 = arith.constant 0 : index
    %c0_32 = arith.constant 0 : index
    %67 = vector.load %arg8[%c0_31, %c0_32] : memref<1x32xf32, #tpu.memory_space<vmem>>, vector<1x32xf32>
    %cst_33 = arith.constant dense<0.000000e+00> : vector<8xf32>
    %68 = vector.multi_reduction <add>, %65, %cst_33 [1] : vector<8x32xf32> to vector<8xf32>
    %69 = vector.shape_cast %68 : vector<8xf32> to vector<8x1xf32>
    %cst_34 = arith.constant 3.200000e+01 : f32
    %70 = vector.broadcast %cst_34 : f32 to vector<8x1xf32>
    %71 = arith.divf %69, %70 : vector<8x1xf32>
    %72 = vector.broadcast %71 : vector<8x1xf32> to vector<8x32xf32>
    %73 = arith.subf %65, %72 : vector<8x32xf32>
    %74 = arith.mulf %73, %73 : vector<8x32xf32>
    %cst_35 = arith.constant dense<0.000000e+00> : vector<8xf32>
    %75 = vector.multi_reduction <add>, %74, %cst_35 [1] : vector<8x32xf32> to vector<8xf32>
    %76 = vector.shape_cast %75 : vector<8xf32> to vector<8x1xf32>
    %cst_36 = arith.constant 3.200000e+01 : f32
    %77 = vector.broadcast %cst_36 : f32 to vector<8x1xf32>
    %78 = arith.divf %76, %77 : vector<8x1xf32>
    %79 = vector.broadcast %71 : vector<8x1xf32> to vector<8x32xf32>
    %80 = arith.subf %65, %79 : vector<8x32xf32>
    %cst_37 = arith.constant 9.99999974E-6 : f32
    %81 = vector.broadcast %cst_37 : f32 to vector<8x1xf32>
    %82 = arith.addf %78, %81 : vector<8x1xf32>
    %83 = math.rsqrt %82 : vector<8x1xf32>
    %84 = vector.broadcast %83 : vector<8x1xf32> to vector<8x32xf32>
    %85 = arith.mulf %80, %84 : vector<8x32xf32>
    %86 = vector.broadcast %66 : vector<1x32xf32> to vector<8x32xf32>
    %87 = arith.mulf %85, %86 : vector<8x32xf32>
    %88 = vector.broadcast %67 : vector<1x32xf32> to vector<8x32xf32>
    %89 = arith.addf %87, %88 : vector<8x32xf32>
    %90 = arith.truncf %89 : vector<8x32xf32> to vector<8x32xbf16>
    %c0_38 = arith.constant 0 : index
    %c0_39 = arith.constant 0 : index
    %91 = vector.load %arg9[%c0_38, %c0_39] : memref<32x64xbf16, #tpu.memory_space<vmem>>, vector<32x64xbf16>
    %cst_40 = arith.constant dense<0.000000e+00> : vector<8x64xf32>
    %92 = tpu.matmul %90, %91, %cst_40 {dimension_numbers = #tpu.dot_dimension_numbers<[1], [0], [0], [1], [0, 0, 1, 1], [], []>} : vector<8x32xbf16>, vector<32x64xbf16>, vector<8x64xf32> -> vector<8x64xf32>
    %c0_41 = arith.constant 0 : index
    %c0_42 = arith.constant 0 : index
    %93 = vector.load %arg10[%c0_41, %c0_42] : memref<1x64xf32, #tpu.memory_space<vmem>>, vector<1x64xf32>
    %94 = vector.broadcast %93 : vector<1x64xf32> to vector<8x64xf32>
    %95 = arith.addf %92, %94 : vector<8x64xf32>
    %cst_43 = arith.constant 5.000000e-01 : f32
    %96 = vector.broadcast %cst_43 : f32 to vector<8x64xf32>
    %97 = arith.mulf %96, %95 : vector<8x64xf32>
    %cst_44 = arith.constant 0.707106769 : f32
    %98 = vector.broadcast %cst_44 : f32 to vector<8x64xf32>
    %99 = arith.mulf %95, %98 : vector<8x64xf32>
    %100 = math.erf %99 : vector<8x64xf32>
    %cst_45 = arith.constant 1.000000e+00 : f32
    %101 = vector.broadcast %cst_45 : f32 to vector<8x64xf32>
    %102 = arith.addf %101, %100 : vector<8x64xf32>
    %103 = arith.mulf %97, %102 : vector<8x64xf32>
    %104 = arith.truncf %103 : vector<8x64xf32> to vector<8x64xbf16>
    %c0_46 = arith.constant 0 : index
    %c0_47 = arith.constant 0 : index
    %105 = vector.load %arg11[%c0_46, %c0_47] : memref<64x32xbf16, #tpu.memory_space<vmem>>, vector<64x32xbf16>
    %cst_48 = arith.constant dense<0.000000e+00> : vector<8x32xf32>
    %106 = tpu.matmul %104, %105, %cst_48 {dimension_numbers = #tpu.dot_dimension_numbers<[1], [0], [0], [1], [0, 0, 1, 1], [], []>} : vector<8x64xbf16>, vector<64x32xbf16>, vector<8x32xf32> -> vector<8x32xf32>
    %107 = arith.addf %65, %106 : vector<8x32xf32>
    %c0_49 = arith.constant 0 : index
    %c0_50 = arith.constant 0 : index
    %108 = vector.load %arg12[%c0_49, %c0_50] : memref<1x32xf32, #tpu.memory_space<vmem>>, vector<1x32xf32>
    %109 = vector.broadcast %108 : vector<1x32xf32> to vector<8x32xf32>
    %110 = arith.addf %107, %109 : vector<8x32xf32>
    %c0_51 = arith.constant 0 : index
    %c0_52 = arith.constant 0 : index
    %c0_53 = arith.constant 0 : index
    %111 = vector.load %arg15[%c0_51, %c0_52, %c0_53] : memref<1x8x32xf32, #tpu.memory_space<vmem>>, vector<1x8x32xf32>
    %112 = vector.shape_cast %111 : vector<1x8x32xf32> to vector<8x32xf32>
    %113 = vector.shape_cast %110 : vector<8x32xf32> to vector<1x8x32xf32>
    tpu.vector_store %arg15[%c0_51, %c0_52, %c0_53], %113 {strides = array<i32>} : memref<1x8x32xf32, #tpu.memory_space<vmem>>, vector<1x8x32xf32>,
    return
  }
  func.func @transform_0(%arg0: i32) -> (i32, i32, i32) {
    %c0_i32 = arith.constant 0 : i32
    %c0_i32_0 = arith.constant 0 : i32
    %c0_i32_1 = arith.constant 0 : i32
    return %arg0, %c0_i32, %c0_i32_0 : i32, i32, i32
  }
  func.func @transform_1(%arg0: i32) -> (i32, i32) {
    %c0_i32 = arith.constant 0 : i32
    %c0_i32_0 = arith.constant 0 : i32
    %c0_i32_1 = arith.constant 0 : i32
    return %c0_i32, %c0_i32_0 : i32, i32
  }
  func.func @transform_2(%arg0: i32) -> (i32, i32) {
    %c0_i32 = arith.constant 0 : i32
    %c0_i32_0 = arith.constant 0 : i32
    %c0_i32_1 = arith.constant 0 : i32
    return %c0_i32, %c0_i32_0 : i32, i32
  }
  func.func @transform_3(%arg0: i32) -> (i32, i32, i32, i32) {
    %c0_i32 = arith.constant 0 : i32
    %c0_i32_0 = arith.constant 0 : i32
    %c0_i32_1 = arith.constant 0 : i32
    %c0_i32_2 = arith.constant 0 : i32
    %c0_i32_3 = arith.constant 0 : i32
    return %c0_i32, %c0_i32_0, %c0_i32_1, %c0_i32_2 : i32, i32, i32, i32
  }
  func.func @transform_4(%arg0: i32) -> (i32, i32, i32) {
    %c0_i32 = arith.constant 0 : i32
    %c0_i32_0 = arith.constant 0 : i32
    %c0_i32_1 = arith.constant 0 : i32
    %c0_i32_2 = arith.constant 0 : i32
    return %c0_i32, %c0_i32_0, %c0_i32_1 : i32, i32, i32
  }
  func.func @transform_5(%arg0: i32) -> (i32, i32) {
    %c0_i32 = arith.constant 0 : i32
    %c0_i32_0 = arith.constant 0 : i32
    %c0_i32_1 = arith.constant 0 : i32
    return %c0_i32, %c0_i32_0 : i32, i32
  }
  func.func @transform_6(%arg0: i32) -> (i32, i32) {
    %c0_i32 = arith.constant 0 : i32
    %c0_i32_0 = arith.constant 0 : i32
    %c0_i32_1 = arith.constant 0 : i32
    return %c0_i32, %c0_i32_0 : i32, i32
  }
  func.func @transform_7(%arg0: i32) -> (i32, i32) {
    %c0_i32 = arith.constant 0 : i32
    %c0_i32_0 = arith.constant 0 : i32
    %c0_i32_1 = arith.constant 0 : i32
    return %c0_i32, %c0_i32_0 : i32, i32
  }
  func.func @transform_8(%arg0: i32) -> (i32, i32) {
    %c0_i32 = arith.constant 0 : i32
    %c0_i32_0 = arith.constant 0 : i32
    %c0_i32_1 = arith.constant 0 : i32
    return %c0_i32, %c0_i32_0 : i32, i32
  }
  func.func @transform_9(%arg0: i32) -> (i32, i32) {
    %c0_i32 = arith.constant 0 : i32
    %c0_i32_0 = arith.constant 0 : i32
    %c0_i32_1 = arith.constant 0 : i32
    return %c0_i32, %c0_i32_0 : i32, i32
  }
  func.func @transform_10(%arg0: i32) -> (i32, i32) {
    %c0_i32 = arith.constant 0 : i32
    %c0_i32_0 = arith.constant 0 : i32
    %c0_i32_1 = arith.constant 0 : i32
    return %c0_i32, %c0_i32_0 : i32, i32
  }
  func.func @transform_11(%arg0: i32) -> (i32, i32) {
    %c0_i32 = arith.constant 0 : i32
    %c0_i32_0 = arith.constant 0 : i32
    %c0_i32_1 = arith.constant 0 : i32
    return %c0_i32, %c0_i32_0 : i32, i32
  }
  func.func @transform_12(%arg0: i32) -> (i32, i32) {
    %c0_i32 = arith.constant 0 : i32
    %c0_i32_0 = arith.constant 0 : i32
    %c0_i32_1 = arith.constant 0 : i32
    return %c0_i32, %c0_i32_0 : i32, i32
  }
  func.func @transform_13(%arg0: i32) -> (i32, i32) {
    %c0_i32 = arith.constant 0 : i32
    %c0_i32_0 = arith.constant 0 : i32
    %c0_i32_1 = arith.constant 0 : i32
    return %c0_i32, %c0_i32_0 : i32, i32
  }
  func.func @transform_14(%arg0: i32) -> (i32, i32, i32) {
    %c0_i32 = arith.constant 0 : i32
    %c0_i32_0 = arith.constant 0 : i32
    %c0_i32_1 = arith.constant 0 : i32
    return %arg0, %c0_i32, %c0_i32_0 : i32, i32, i32
  }
}

module attributes {stable_mosaic.version = 11 : i64} {
  func.func @_layer_kernel(%arg0: i32, %arg1: memref<1x8x32xf32, #tpu.memory_space<vmem>>, %arg2: memref<1x32xf32, #tpu.memory_space<vmem>>, %arg3: memref<1x32xf32, #tpu.memory_space<vmem>>, %arg4: memref<3x2x32x8xbf16, #tpu.memory_space<vmem>>, %arg5: memref<2x8x32xbf16, #tpu.memory_space<vmem>>, %arg6: memref<1x32xf32, #tpu.memory_space<vmem>>, %arg7: memref<1x32xf32, #tpu.memory_space<vmem>>, %arg8: memref<1x32xf32, #tpu.memory_space<vmem>>, %arg9: memref<32x64xbf16, #tpu.memory_space<vmem>>, %arg10: memref<1x64xf32, #tpu.memory_space<vmem>>, %arg11: memref<64x32xbf16, #tpu.memory_space<vmem>>, %arg12: memref<1x32xf32, #tpu.memory_space<vmem>>, %arg13: memref<1x32xf32, #tpu.memory_space<vmem>>, %arg14: memref<1x32xf32, #tpu.memory_space<vmem>>, %arg15: memref<1x8x32xf32, #tpu.memory_space<vmem>>) attributes {dimension_semantics = [#tpu.dimension_semantics<parallel>], iteration_bounds = array<i64: 2>, scalar_prefetch = 0 : i64, scratch_operands = 0 : i64, tpu.core_type = #tpu.core_type<tc>, window_params = [{transform_indices = @transform_0, window_bounds = array<i64: 1, 8, 32>}, {pipeline_mode = #tpu.pipeline_mode<synchronous>, transform_indices = @transform_1, window_bounds = array<i64: 1, 32>}, {pipeline_mode = #tpu.pipeline_mode<synchronous>, transform_indices = @transform_2, window_bounds = array<i64: 1, 32>}, {pipeline_mode = #tpu.pipeline_mode<synchronous>, transform_indices = @transform_3, window_bounds = array<i64: 3, 2, 32, 8>}, {pipeline_mode = #tpu.pipeline_mode<synchronous>, transform_indices = @transform_4, window_bounds = array<i64: 2, 8, 32>}, {pipeline_mode = #tpu.pipeline_mode<synchronous>, transform_indices = @transform_5, window_bounds = array<i64: 1, 32>}, {pipeline_mode = #tpu.pipeline_mode<synchronous>, transform_indices = @transform_6, window_bounds = array<i64: 1, 32>}, {pipeline_mode = #tpu.pipeline_mode<synchronous>, transform_indices = @transform_7, window_bounds = array<i64: 1, 32>}, {pipeline_mode = #tpu.pipeline_mode<synchronous>, transform_indices = @transform_8, window_bounds = array<i64: 32, 64>}, {pipeline_mode = #tpu.pipeline_mode<synchronous>, transform_indices = @transform_9, window_bounds = array<i64: 1, 64>}, {pipeline_mode = #tpu.pipeline_mode<synchronous>, transform_indices = @transform_10, window_bounds = array<i64: 64, 32>}, {pipeline_mode = #tpu.pipeline_mode<synchronous>, transform_indices = @transform_11, window_bounds = array<i64: 1, 32>}, {pipeline_mode = #tpu.pipeline_mode<synchronous>, transform_indices = @transform_12, window_bounds = array<i64: 1, 32>}, {pipeline_mode = #tpu.pipeline_mode<synchronous>, transform_indices = @transform_13, window_bounds = array<i64: 1, 32>}, {transform_indices = @transform_14, window_bounds = array<i64: 1, 8, 32>}]} {
    %c0 = arith.constant 0 : index
    %c0_0 = arith.constant 0 : index
    %c0_1 = arith.constant 0 : index
    %0 = vector.load %arg1[%c0, %c0_0, %c0_1] : memref<1x8x32xf32, #tpu.memory_space<vmem>>, vector<1x8x32xf32>
    %1 = vector.shape_cast %0 : vector<1x8x32xf32> to vector<8x32xf32>
    %c0_2 = arith.constant 0 : index
    %c0_3 = arith.constant 0 : index
    %2 = vector.load %arg2[%c0_2, %c0_3] : memref<1x32xf32, #tpu.memory_space<vmem>>, vector<1x32xf32>
    %c0_4 = arith.constant 0 : index
    %c0_5 = arith.constant 0 : index
    %3 = vector.load %arg3[%c0_4, %c0_5] : memref<1x32xf32, #tpu.memory_space<vmem>>, vector<1x32xf32>
    %cst = arith.constant dense<0.000000e+00> : vector<8xf32>
    %4 = vector.multi_reduction <add>, %1, %cst [1] : vector<8x32xf32> to vector<8xf32>
    %5 = vector.shape_cast %4 : vector<8xf32> to vector<8x1xf32>
    %cst_6 = arith.constant 3.200000e+01 : f32
    %6 = vector.broadcast %cst_6 : f32 to vector<8x1xf32>
    %7 = arith.divf %5, %6 : vector<8x1xf32>
    %8 = vector.broadcast %7 : vector<8x1xf32> to vector<8x32xf32>
    %9 = arith.subf %1, %8 : vector<8x32xf32>
    %10 = arith.mulf %9, %9 : vector<8x32xf32>
    %cst_7 = arith.constant dense<0.000000e+00> : vector<8xf32>
    %11 = vector.multi_reduction <add>, %10, %cst_7 [1] : vector<8x32xf32> to vector<8xf32>
    %12 = vector.shape_cast %11 : vector<8xf32> to vector<8x1xf32>
    %cst_8 = arith.constant 3.200000e+01 : f32
    %13 = vector.broadcast %cst_8 : f32 to vector<8x1xf32>
    %14 = arith.divf %12, %13 : vector<8x1xf32>
    %15 = vector.broadcast %7 : vector<8x1xf32> to vector<8x32xf32>
    %16 = arith.subf %1, %15 : vector<8x32xf32>
    %cst_9 = arith.constant 9.99999974E-6 : f32
    %17 = vector.broadcast %cst_9 : f32 to vector<8x1xf32>
    %18 = arith.addf %14, %17 : vector<8x1xf32>
    %19 = math.rsqrt %18 : vector<8x1xf32>
    %20 = vector.broadcast %19 : vector<8x1xf32> to vector<8x32xf32>
    %21 = arith.mulf %16, %20 : vector<8x32xf32>
    %22 = vector.broadcast %2 : vector<1x32xf32> to vector<8x32xf32>
    %23 = arith.mulf %21, %22 : vector<8x32xf32>
    %24 = vector.broadcast %3 : vector<1x32xf32> to vector<8x32xf32>
    %25 = arith.addf %23, %24 : vector<8x32xf32>
    %26 = arith.truncf %25 : vector<8x32xf32> to vector<8x32xbf16>
    %27 = vector.shape_cast %26 : vector<8x32xbf16> to vector<1x8x32xbf16>
    %28 = vector.shape_cast %27 : vector<1x8x32xbf16> to vector<1x8x32xbf16>
    %29 = vector.broadcast %28 : vector<1x8x32xbf16> to vector<2x8x32xbf16>
    %c0_10 = arith.constant 0 : index
    %c0_11 = arith.constant 0 : index
    %c0_12 = arith.constant 0 : index
    %c0_13 = arith.constant 0 : index
    %30 = vector.load %arg4[%c0_10, %c0_11, %c0_12, %c0_13] : memref<3x2x32x8xbf16, #tpu.memory_space<vmem>>, vector<3x2x32x8xbf16>
    %31 = vector.extract_strided_slice %30 {offsets = [0, 0, 0, 0], sizes = [1, 2, 32, 8], strides = [1, 1, 1, 1]} : vector<3x2x32x8xbf16> to vector<1x2x32x8xbf16>
    %32 = vector.shape_cast %31 : vector<1x2x32x8xbf16> to vector<2x32x8xbf16>
    %cst_14 = arith.constant dense<0.000000e+00> : vector<2x8x8xf32>
    %33 = tpu.matmul %29, %32, %cst_14 {dimension_numbers = #tpu.dot_dimension_numbers<[2], [1], [1], [2], [0, 0, 0, 1, 1, 2], [0], [0]>} : vector<2x8x32xbf16>, vector<2x32x8xbf16>, vector<2x8x8xf32> -> vector<2x8x8xf32>
    %cst_15 = arith.constant 0.353553385 : f32
    %34 = vector.broadcast %cst_15 : f32 to vector<2x8x8xf32>
    %35 = arith.mulf %33, %34 : vector<2x8x8xf32>
    %36 = vector.extract_strided_slice %30 {offsets = [1, 0, 0, 0], sizes = [1, 2, 32, 8], strides = [1, 1, 1, 1]} : vector<3x2x32x8xbf16> to vector<1x2x32x8xbf16>
    %37 = vector.shape_cast %36 : vector<1x2x32x8xbf16> to vector<2x32x8xbf16>
    %cst_16 = arith.constant dense<0.000000e+00> : vector<2x8x8xf32>
    %38 = tpu.matmul %29, %37, %cst_16 {dimension_numbers = #tpu.dot_dimension_numbers<[2], [1], [1], [2], [0, 0, 0, 1, 1, 2], [0], [0]>} : vector<2x8x32xbf16>, vector<2x32x8xbf16>, vector<2x8x8xf32> -> vector<2x8x8xf32>
    %39 = vector.extract_strided_slice %30 {offsets = [2, 0, 0, 0], sizes = [1, 2, 32, 8], strides = [1, 1, 1, 1]} : vector<3x2x32x8xbf16> to vector<1x2x32x8xbf16>
    %40 = vector.shape_cast %39 : vector<1x2x32x8xbf16> to vector<2x32x8xbf16>
    %cst_17 = arith.constant dense<0.000000e+00> : vector<2x8x8xf32>
    %41 = tpu.matmul %29, %40, %cst_17 {dimension_numbers = #tpu.dot_dimension_numbers<[2], [1], [1], [2], [0, 0, 0, 1, 1, 2], [0], [0]>} : vector<2x8x32xbf16>, vector<2x32x8xbf16>, vector<2x8x8xf32> -> vector<2x8x8xf32>
    %42 = arith.truncf %35 : vector<2x8x8xf32> to vector<2x8x8xbf16>
    %43 = arith.truncf %38 : vector<2x8x8xf32> to vector<2x8x8xbf16>
    %cst_18 = arith.constant dense<0.000000e+00> : vector<2x8x8xf32>
    %44 = tpu.matmul %42, %43, %cst_18 {dimension_numbers = #tpu.dot_dimension_numbers<[2], [2], [1], [1], [0, 0, 0, 1, 1, 1], [0], [0]>} : vector<2x8x8xbf16>, vector<2x8x8xbf16>, vector<2x8x8xf32> -> vector<2x8x8xf32>
    %cst_19 = arith.constant dense<0xFF800000> : vector<2x8xf32>
    %45 = vector.multi_reduction <maximumf>, %44, %cst_19 [2] : vector<2x8x8xf32> to vector<2x8xf32>
    %46 = vector.shape_cast %45 : vector<2x8xf32> to vector<2x8x1xf32>
    %47 = vector.broadcast %46 : vector<2x8x1xf32> to vector<2x8x8xf32>
    %48 = arith.subf %44, %47 : vector<2x8x8xf32>
    %49 = math.exp %48 : vector<2x8x8xf32>
    %cst_20 = arith.constant dense<0.000000e+00> : vector<2x8xf32>
    %50 = vector.multi_reduction <add>, %49, %cst_20 [2] : vector<2x8x8xf32> to vector<2x8xf32>
    %51 = vector.shape_cast %50 : vector<2x8xf32> to vector<2x8x1xf32>
    %52 = tpu.reciprocal %51 {approx = true} : vector<2x8x1xf32> -> vector<2x8x1xf32>
    %53 = vector.broadcast %52 : vector<2x8x1xf32> to vector<2x8x8xf32>
    %54 = arith.mulf %49, %53 : vector<2x8x8xf32>
    %55 = arith.truncf %54 : vector<2x8x8xf32> to vector<2x8x8xbf16>
    %56 = arith.truncf %41 : vector<2x8x8xf32> to vector<2x8x8xbf16>
    %cst_21 = arith.constant dense<0.000000e+00> : vector<2x8x8xf32>
    %57 = tpu.matmul %55, %56, %cst_21 {dimension_numbers = #tpu.dot_dimension_numbers<[2], [1], [1], [2], [0, 0, 0, 1, 1, 2], [0], [0]>} : vector<2x8x8xbf16>, vector<2x8x8xbf16>, vector<2x8x8xf32> -> vector<2x8x8xf32>
    %58 = arith.truncf %57 : vector<2x8x8xf32> to vector<2x8x8xbf16>
    %c0_22 = arith.constant 0 : index
    %c0_23 = arith.constant 0 : index
    %c0_24 = arith.constant 0 : index
    %59 = vector.load %arg5[%c0_22, %c0_23, %c0_24] : memref<2x8x32xbf16, #tpu.memory_space<vmem>>, vector<2x8x32xbf16>
    %cst_25 = arith.constant dense<0.000000e+00> : vector<2x8x32xf32>
    %60 = tpu.matmul %58, %59, %cst_25 {dimension_numbers = #tpu.dot_dimension_numbers<[2], [1], [1], [2], [0, 0, 0, 1, 1, 2], [0], [0]>} : vector<2x8x8xbf16>, vector<2x8x32xbf16>, vector<2x8x32xf32> -> vector<2x8x32xf32>
    %cst_26 = arith.constant dense<0.000000e+00> : vector<8x32xf32>
    %61 = vector.multi_reduction <add>, %60, %cst_26 [0] : vector<2x8x32xf32> to vector<8x32xf32>
    %62 = arith.addf %1, %61 : vector<8x32xf32>
    %c0_27 = arith.constant 0 : index
    %c0_28 = arith.constant 0 : index
    %63 = vector.load %arg6[%c0_27, %c0_28] : memref<1x32xf32, #tpu.memory_space<vmem>>, vector<1x32xf32>
    %64 = vector.broadcast %63 : vector<1x32xf32> to vector<8x32xf32>
    %65 = arith.addf %62, %64 : vector<8x32xf32>
    %c0_29 = arith.constant 0 : index
    %c0_30 = arith.constant 0 : index
    %66 = vector.load %arg7[%c0_29, %c0_30] : memref<1x32xf32, #tpu.memory_space<vmem>>, vector<1x32xf32>
    %c0_31 = arith.constant 0 : index
    %c0_32 = arith.constant 0 : index
    %67 = vector.load %arg8[%c0_31, %c0_32] : memref<1x32xf32, #tpu.memory_space<vmem>>, vector<1x32xf32>
    %cst_33 = arith.constant dense<0.000000e+00> : vector<8xf32>
    %68 = vector.multi_reduction <add>, %65, %cst_33 [1] : vector<8x32xf32> to vector<8xf32>
    %69 = vector.shape_cast %68 : vector<8xf32> to vector<8x1xf32>
    %cst_34 = arith.constant 3.200000e+01 : f32
    %70 = vector.broadcast %cst_34 : f32 to vector<8x1xf32>
    %71 = arith.divf %69, %70 : vector<8x1xf32>
    %72 = vector.broadcast %71 : vector<8x1xf32> to vector<8x32xf32>
    %73 = arith.subf %65, %72 : vector<8x32xf32>
    %74 = arith.mulf %73, %73 : vector<8x32xf32>
    %cst_35 = arith.constant dense<0.000000e+00> : vector<8xf32>
    %75 = vector.multi_reduction <add>, %74, %cst_35 [1] : vector<8x32xf32> to vector<8xf32>
    %76 = vector.shape_cast %75 : vector<8xf32> to vector<8x1xf32>
    %cst_36 = arith.constant 3.200000e+01 : f32
    %77 = vector.broadcast %cst_36 : f32 to vector<8x1xf32>
    %78 = arith.divf %76, %77 : vector<8x1xf32>
    %79 = vector.broadcast %71 : vector<8x1xf32> to vector<8x32xf32>
    %80 = arith.subf %65, %79 : vector<8x32xf32>
    %cst_37 = arith.constant 9.99999974E-6 : f32
    %81 = vector.broadcast %cst_37 : f32 to vector<8x1xf32>
    %82 = arith.addf %78, %81 : vector<8x1xf32>
    %83 = math.rsqrt %82 : vector<8x1xf32>
    %84 = vector.broadcast %83 : vector<8x1xf32> to vector<8x32xf32>
    %85 = arith.mulf %80, %84 : vector<8x32xf32>
    %86 = vector.broadcast %66 : vector<1x32xf32> to vector<8x32xf32>
    %87 = arith.mulf %85, %86 : vector<8x32xf32>
    %88 = vector.broadcast %67 : vector<1x32xf32> to vector<8x32xf32>
    %89 = arith.addf %87, %88 : vector<8x32xf32>
    %90 = arith.truncf %89 : vector<8x32xf32> to vector<8x32xbf16>
    %c0_38 = arith.constant 0 : index
    %c0_39 = arith.constant 0 : index
    %91 = vector.load %arg9[%c0_38, %c0_39] : memref<32x64xbf16, #tpu.memory_space<vmem>>, vector<32x64xbf16>
    %cst_40 = arith.constant dense<0.000000e+00> : vector<8x64xf32>
    %92 = tpu.matmul %90, %91, %cst_40 {dimension_numbers = #tpu.dot_dimension_numbers<[1], [0], [0], [1], [0, 0, 1, 1], [], []>} : vector<8x32xbf16>, vector<32x64xbf16>, vector<8x64xf32> -> vector<8x64xf32>
    %c0_41 = arith.constant 0 : index
    %c0_42 = arith.constant 0 : index
    %93 = vector.load %arg10[%c0_41, %c0_42] : memref<1x64xf32, #tpu.memory_space<vmem>>, vector<1x64xf32>
    %94 = vector.broadcast %93 : vector<1x64xf32> to vector<8x64xf32>
    %95 = arith.addf %92, %94 : vector<8x64xf32>
    %cst_43 = arith.constant 5.000000e-01 : f32
    %96 = vector.broadcast %cst_43 : f32 to vector<8x64xf32>
    %97 = arith.mulf %96, %95 : vector<8x64xf32>
    %cst_44 = arith.constant 0.707106769 : f32
    %98 = vector.broadcast %cst_44 : f32 to vector<8x64xf32>
    %99 = arith.mulf %95, %98 : vector<8x64xf32>
    %100 = math.erf %99 : vector<8x64xf32>
    %cst_45 = arith.constant 1.000000e+00 : f32
    %101 = vector.broadcast %cst_45 : f32 to vector<8x64xf32>
    %102 = arith.addf %101, %100 : vector<8x64xf32>
    %103 = arith.mulf %97, %102 : vector<8x64xf32>
    %104 = arith.truncf %103 : vector<8x64xf32> to vector<8x64xbf16>
    %c0_46 = arith.constant 0 : index
    %c0_47 = arith.constant 0 : index
    %105 = vector.load %arg11[%c0_46, %c0_47] : memref<64x32xbf16, #tpu.memory_space<vmem>>, vector<64x32xbf16>
    %cst_48 = arith.constant dense<0.000000e+00> : vector<8x32xf32>
    %106 = tpu.matmul %104, %105, %cst_48 {dimension_numbers = #tpu.dot_dimension_numbers<[1], [0], [0], [1], [0, 0, 1, 1], [], []>} : vector<8x64xbf16>, vector<64x32xbf16>, vector<8x32xf32> -> vector<8x32xf32>
    %107 = arith.addf %65, %106 : vector<8x32xf32>
    %c0_49 = arith.constant 0 : index
    %c0_50 = arith.constant 0 : index
    %108 = vector.load %arg12[%c0_49, %c0_50] : memref<1x32xf32, #tpu.memory_space<vmem>>, vector<1x32xf32>
    %109 = vector.broadcast %108 : vector<1x32xf32> to vector<8x32xf32>
    %110 = arith.addf %107, %109 : vector<8x32xf32>
    %c0_51 = arith.constant 0 : index
    %c0_52 = arith.constant 0 : index
    %111 = vector.load %arg13[%c0_51, %c0_52] : memref<1x32xf32, #tpu.memory_space<vmem>>, vector<1x32xf32>
    %c0_53 = arith.constant 0 : index
    %c0_54 = arith.constant 0 : index
    %112 = vector.load %arg14[%c0_53, %c0_54] : memref<1x32xf32, #tpu.memory_space<vmem>>, vector<1x32xf32>
    %cst_55 = arith.constant dense<0.000000e+00> : vector<8xf32>
    %113 = vector.multi_reduction <add>, %110, %cst_55 [1] : vector<8x32xf32> to vector<8xf32>
    %114 = vector.shape_cast %113 : vector<8xf32> to vector<8x1xf32>
    %cst_56 = arith.constant 3.200000e+01 : f32
    %115 = vector.broadcast %cst_56 : f32 to vector<8x1xf32>
    %116 = arith.divf %114, %115 : vector<8x1xf32>
    %117 = vector.broadcast %116 : vector<8x1xf32> to vector<8x32xf32>
    %118 = arith.subf %110, %117 : vector<8x32xf32>
    %119 = arith.mulf %118, %118 : vector<8x32xf32>
    %cst_57 = arith.constant dense<0.000000e+00> : vector<8xf32>
    %120 = vector.multi_reduction <add>, %119, %cst_57 [1] : vector<8x32xf32> to vector<8xf32>
    %121 = vector.shape_cast %120 : vector<8xf32> to vector<8x1xf32>
    %cst_58 = arith.constant 3.200000e+01 : f32
    %122 = vector.broadcast %cst_58 : f32 to vector<8x1xf32>
    %123 = arith.divf %121, %122 : vector<8x1xf32>
    %124 = vector.broadcast %116 : vector<8x1xf32> to vector<8x32xf32>
    %125 = arith.subf %110, %124 : vector<8x32xf32>
    %cst_59 = arith.constant 9.99999974E-6 : f32
    %126 = vector.broadcast %cst_59 : f32 to vector<8x1xf32>
    %127 = arith.addf %123, %126 : vector<8x1xf32>
    %128 = math.rsqrt %127 : vector<8x1xf32>
    %129 = vector.broadcast %128 : vector<8x1xf32> to vector<8x32xf32>
    %130 = arith.mulf %125, %129 : vector<8x32xf32>
    %131 = vector.broadcast %111 : vector<1x32xf32> to vector<8x32xf32>
    %132 = arith.mulf %130, %131 : vector<8x32xf32>
    %133 = vector.broadcast %112 : vector<1x32xf32> to vector<8x32xf32>
    %134 = arith.addf %132, %133 : vector<8x32xf32>
    %c0_60 = arith.constant 0 : index
    %c0_61 = arith.constant 0 : index
    %c0_62 = arith.constant 0 : index
    %135 = vector.load %arg15[%c0_60, %c0_61, %c0_62] : memref<1x8x32xf32, #tpu.memory_space<vmem>>, vector<1x8x32xf32>
    %136 = vector.shape_cast %135 : vector<1x8x32xf32> to vector<8x32xf32>
    %137 = vector.shape_cast %134 : vector<8x32xf32> to vector<1x8x32xf32>
    tpu.vector_store %arg15[%c0_60, %c0_61, %c0_62], %137 {strides = array<i32>} : memref<1x8x32xf32, #tpu.memory_space<vmem>>, vector<1x8x32xf32>,
    return
  }
  func.func @transform_0(%arg0: i32) -> (i32, i32, i32) {
    %c0_i32 = arith.constant 0 : i32
    %c0_i32_0 = arith.constant 0 : i32
    %c0_i32_1 = arith.constant 0 : i32
    return %arg0, %c0_i32, %c0_i32_0 : i32, i32, i32
  }
  func.func @transform_1(%arg0: i32) -> (i32, i32) {
    %c0_i32 = arith.constant 0 : i32
    %c0_i32_0 = arith.constant 0 : i32
    %c0_i32_1 = arith.constant 0 : i32
    return %c0_i32, %c0_i32_0 : i32, i32
  }
  func.func @transform_2(%arg0: i32) -> (i32, i32) {
    %c0_i32 = arith.constant 0 : i32
    %c0_i32_0 = arith.constant 0 : i32
    %c0_i32_1 = arith.constant 0 : i32
    return %c0_i32, %c0_i32_0 : i32, i32
  }
  func.func @transform_3(%arg0: i32) -> (i32, i32, i32, i32) {
    %c0_i32 = arith.constant 0 : i32
    %c0_i32_0 = arith.constant 0 : i32
    %c0_i32_1 = arith.constant 0 : i32
    %c0_i32_2 = arith.constant 0 : i32
    %c0_i32_3 = arith.constant 0 : i32
    return %c0_i32, %c0_i32_0, %c0_i32_1, %c0_i32_2 : i32, i32, i32, i32
  }
  func.func @transform_4(%arg0: i32) -> (i32, i32, i32) {
    %c0_i32 = arith.constant 0 : i32
    %c0_i32_0 = arith.constant 0 : i32
    %c0_i32_1 = arith.constant 0 : i32
    %c0_i32_2 = arith.constant 0 : i32
    return %c0_i32, %c0_i32_0, %c0_i32_1 : i32, i32, i32
  }
  func.func @transform_5(%arg0: i32) -> (i32, i32) {
    %c0_i32 = arith.constant 0 : i32
    %c0_i32_0 = arith.constant 0 : i32
    %c0_i32_1 = arith.constant 0 : i32
    return %c0_i32, %c0_i32_0 : i32, i32
  }
  func.func @transform_6(%arg0: i32) -> (i32, i32) {
    %c0_i32 = arith.constant 0 : i32
    %c0_i32_0 = arith.constant 0 : i32
    %c0_i32_1 = arith.constant 0 : i32
    return %c0_i32, %c0_i32_0 : i32, i32
  }
  func.func @transform_7(%arg0: i32) -> (i32, i32) {
    %c0_i32 = arith.constant 0 : i32
    %c0_i32_0 = arith.constant 0 : i32
    %c0_i32_1 = arith.constant 0 : i32
    return %c0_i32, %c0_i32_0 : i32, i32
  }
  func.func @transform_8(%arg0: i32) -> (i32, i32) {
    %c0_i32 = arith.constant 0 : i32
    %c0_i32_0 = arith.constant 0 : i32
    %c0_i32_1 = arith.constant 0 : i32
    return %c0_i32, %c0_i32_0 : i32, i32
  }
  func.func @transform_9(%arg0: i32) -> (i32, i32) {
    %c0_i32 = arith.constant 0 : i32
    %c0_i32_0 = arith.constant 0 : i32
    %c0_i32_1 = arith.constant 0 : i32
    return %c0_i32, %c0_i32_0 : i32, i32
  }
  func.func @transform_10(%arg0: i32) -> (i32, i32) {
    %c0_i32 = arith.constant 0 : i32
    %c0_i32_0 = arith.constant 0 : i32
    %c0_i32_1 = arith.constant 0 : i32
    return %c0_i32, %c0_i32_0 : i32, i32
  }
  func.func @transform_11(%arg0: i32) -> (i32, i32) {
    %c0_i32 = arith.constant 0 : i32
    %c0_i32_0 = arith.constant 0 : i32
    %c0_i32_1 = arith.constant 0 : i32
    return %c0_i32, %c0_i32_0 : i32, i32
  }
  func.func @transform_12(%arg0: i32) -> (i32, i32) {
    %c0_i32 = arith.constant 0 : i32
    %c0_i32_0 = arith.constant 0 : i32
    %c0_i32_1 = arith.constant 0 : i32
    return %c0_i32, %c0_i32_0 : i32, i32
  }
  func.func @transform_13(%arg0: i32) -> (i32, i32) {
    %c0_i32 = arith.constant 0 : i32
    %c0_i32_0 = arith.constant 0 : i32
    %c0_i32_1 = arith.constant 0 : i32
    return %c0_i32, %c0_i32_0 : i32, i32
  }
  func.func @transform_14(%arg0: i32) -> (i32, i32, i32) {
    %c0_i32 = arith.constant 0 : i32
    %c0_i32_0 = arith.constant 0 : i32
    %c0_i32_1 = arith.constant 0 : i32
    return %arg0, %c0_i32, %c0_i32_0 : i32, i32, i32
  }
}

</mosaic_0001>

<bundles_post_ra>
// kernel: transformer_forward.2
= control target key start
LH: loop header
LB: loop body
LE: loop exit
PB: predicated region body
PF: predicated region fallthrough
CT: control target
= control target key end

     0   :  { %s3326_s0 = inlined_call_operand.hbm [shape: f32[2,8,32], index: 0, kind: input, shape index: {}]   ;;  %s3327_s1 = inlined_call_operand.hbm [shape: f32[1,32], index: 1, kind: input, shape index: {}]   ;;  %s3328_s2 = inlined_call_operand.hbm [shape: f32[1,32], index: 2, kind: input, shape index: {}]   ;;  %s3329_s3 = inlined_call_operand.hbm [shape: bf16[3,2,32,8], index: 3, kind: input, shape index: {}]   ;;  %s3330_s4 = inlined_call_operand.hbm [shape: bf16[2,8,32], index: 4, kind: input, shape index: {}]   ;;  %s3331_s5 = inlined_call_operand.hbm [shape: f32[1,32], index: 5, kind: input, shape index: {}]   ;;  %s3332_s6 = inlined_call_operand.hbm [shape: f32[1,32], index: 6, kind: input, shape index: {}]   ;;  %s3333_s7 = inlined_call_operand.hbm [shape: f32[1,32], index: 7, kind: input, shape index: {}]   ;;  %s3334_s8 = inlined_call_operand.hbm [shape: bf16[32,64], index: 8, kind: input, shape index: {}]   ;;  %s3335_s9 = inlined_call_operand.hbm [shape: f32[1,64], index: 9, kind: input, shape index: {}]   ;;  %s3336_s10 = inlined_call_operand.hbm [shape: bf16[64,32], index: 10, kind: input, shape index: {}]   ;;  %s3337_s11 = inlined_call_operand.hbm [shape: f32[1,32], index: 11, kind: input, shape index: {}]   ;;  %s3338_s12 = inlined_call_operand.hbm [shape: f32[1,32], index: 12, kind: input, shape index: {}]   ;;  %s3339_s13 = inlined_call_operand.hbm [shape: f32[1,32], index: 13, kind: input, shape index: {}]   ;;  %s3340_s14 = inlined_call_operand.hbm [shape: f32[2,8,32], index: 14, kind: output, shape index: {}]  }
   0x1   :  { %3355 = sst [smem:[#allocation37_spill]] %s3326_s0 }
   0x2   :  { %3356 = sst [smem:[#allocation38_spill]] %s3327_s1 }
   0x3   :  { %3357 = sst [smem:[#allocation39_spill]] %s3328_s2 }
   0x4   :  { %3358 = sst [smem:[#allocation40_spill]] %s3329_s3 }
   0x5   :  { %3359 = sst [smem:[#allocation41_spill]] %s3340_s14 }
   0x6   :  { %19 = vsyncpa [#allocation3], 0 }
   0x7   :  { %21 = vsyncpa [#allocation3 + $0x1], 0 }
   0x8   :  { %22 = vsyncpa [#allocation6], 0 }
   0x9   :  { %23 = vsyncpa [#allocation9], 0 }
   0xa   :  { %24 = vsyncpa [#allocation12], 0 }
   0xb   :  { %25 = vsyncpa [#allocation15], 0 }
   0xc   :  { %26 = vsyncpa [#allocation18], 0 }
   0xd   :  { %27 = vsyncpa [#allocation21], 0 }
   0xe   :  { %28 = vsyncpa [#allocation24], 0 }
   0xf   :  { %29 = vsyncpa [#allocation4], 0 }
  0x10   :  { %31 = vsyncpa [#allocation4 + $0x1], 0  ;;  %s2765_s29 = smov 0   ;;  %s2767_s30 = smov 0  }
  0x11   :  { %s2769_s15 = smov 0   ;;  %s2771_s16 = smov 0  }
  0x12 LB: > { %s2671_s17 = smov [#allocation5]   ;;  %s2786_s19 = sadd.s32 4294967295, %s2669_s16   ;;  %s2669_s16 = sphi %s2771_s16, %s3401_s16   ;;  %s2665_s15 = sphi %s2769_s15, %s3400_s15   ;;  %s2661_s30 = sphi %s2767_s30, %s3399_s30   ;;  %s2657_s29 = sphi %s2765_s29, %s3398_s29  }
  0x13   : > { %s380_s18 = sshll.u32 %s2671_s17, 4  ;;  %3360 = sst [smem:[#allocation35_spill]] %s2786_s19  ;;  %s2791_s18 = int_to_ptr.vmem [resolvable:$true] %s380_s18 }
  0x14   : > { %p1750_p0 = scmp.ge.s32.totalorder %s2669_s16, 1  ;;  %p3351_p1 = scmp.eq.s32.totalorder %s2786_s19, 0 }
  0x15   : > { %p367_p2 = scmp.lt.s32.totalorder %s2669_s16, 3  ;;  %s2672_s21 = smov [#allocation8]  }
  0x16   : > { %s401_s22 = sshll.u32 %s2672_s21, 4  ;;  %s2673_s24 = smov [#allocation11]   ;;  %s2800_s22 = int_to_ptr.vmem [resolvable:$true] %s401_s22 }
  0x17   : > { %p2793_p3 = pnand %p1750_p0, %p367_p2  ;;  %s428_s25 = sshll.u32 %s2673_s24, 4  ;;  %s2808_s25 = int_to_ptr.vmem [resolvable:$true] %s428_s25 }
  0x18   : > { %s3364_s1 = sld [smem:[#allocation38_spill]] }
  0x19   : > { %s3361_s20 = scalar_select %p2793_p3, 1, 0 }
  0x1a   : > { %p2024_p5 = pneg %p2793_p3 }
  0x1b   : > { %3362 = sst [smem:[#allocation36_spill]] %s3361_s20 }
  0x1c   : > { %p2804_p6 = pnand %p2024_p5, %p3351_p1 }
  0x1e   : > { %s2181_s28 = scalar_lea.hbm %s3364_s1, 16  ;;  %p2818_p8 = pneg %p2804_p6 }
  0x1f   : > { %p2182_p7 = scmp.ne.s32.totalorder %s3364_s1, %s2181_s28  ;;  %p2188_p11 = scmp.lt.u32.totalorder %s2181_s28, %s3364_s1 }
  0x21   : > { %p2184_p9 = pnand %p2818_p8, %p2182_p7 }
  0x23   : > { %p2185_p10 = pneg %p2184_p9 }
  0x25   : > { %p2190_p12 = pnand %p2188_p11, %p2185_p10 }
  0x27   : > { %2193 = shalt.err (!%p2190_p12)
}
  0x28   : > { %s2194_s14 = scalar_lea.vmem %s2791_s18, 16  ;;  %s2201_s26 = scalar_lea.vmem %s2791_s18, 32 }
  0x29   : > { %p2195_p13 = scmp.ne.s32.totalorder %s2791_s18, %s2194_s14  ;;  %p2202_p5 = scmp.lt.s32.totalorder %s2791_s18, %s2791_s18 }
  0x2a   : > { %p2203_p7 = scmp.lt.s32.totalorder %s2201_s26, %s2194_s14 }
  0x2b   : > { %p2197_p0 = pnand %p2195_p13, %p2818_p8 }
  0x2c   : > { %p2204_p9 = por %p2203_p7, %p2202_p5 }
  0x2d   : > { %p2198_p2 = pneg %p2197_p0 }
  0x2f   : > { %p2205_p4 = pnand %p2204_p9, %p2198_p2 }
  0x31   : > { %2208 = shalt.err (!%p2205_p4)
}
  0x32   : > { %2027 = dma.hbm_to_vmem [thread:$0]  (!%p2804_p6), %s3364_s1, 16, %s2791_s18, [#allocation6]  }
  0x33   : > { %s3366_s3 = sld [smem:[#allocation40_spill]] }
  0x39   : > { %s2209_s24 = scalar_lea.hbm %s3366_s3, 1536 }
  0x3a   : > { %p2210_p10 = scmp.ne.s32.totalorder %s3366_s3, %s2209_s24  ;;  %p2216_p4 = scmp.lt.u32.totalorder %s2209_s24, %s3366_s3 }
  0x3c   : > { %p2212_p11 = pnand %p2210_p10, %p2818_p8 }
  0x3e   : > { %p2213_p12 = pneg %p2212_p11 }
  0x40   : > { %p2218_p13 = pnand %p2216_p4, %p2213_p12 }
  0x42   : > { %2221 = shalt.err (!%p2218_p13)
}
  0x43   : > { %s2222_s18 = scalar_lea.vmem %s2800_s22, 1536  ;;  %p2230_p7 = scmp.lt.s32.totalorder %s2800_s22, %s2800_s22 }
  0x44   : > { %p2223_p0 = scmp.ne.s32.totalorder %s2800_s22, %s2222_s18  ;;  %p2231_p9 = scmp.lt.s32.totalorder %s2222_s18, %s2222_s18 }
  0x46   : > { %p2225_p2 = pnand %p2223_p0, %p2818_p8  ;;  %p2232_p10 = por %p2231_p9, %p2230_p7 }
  0x48   : > { %p2226_p5 = pneg %p2225_p2 }
  0x4a   : > { %p2233_p11 = pnand %p2232_p10, %p2226_p5 }
  0x4c   : > { %2236 = shalt.err (!%p2233_p11)
}
  0x4d   : > { %s3347_s0 = smov 64   ;;  %s3349_s19 = smov 4  }
  0x4e   : > { %2033 = dma.hbm_to_vmem [thread:$0]  (!%p2804_p6), %s3366_s3, 1536, %s2800_s22, [#allocation9], %s3347_s0, %s3347_s0, %s3349_s19  }
  0x4f   : > { %s2237_s24 = scalar_lea.hbm %s3331_s5, 16 }
  0x50   : > { %p2238_p12 = scmp.ne.s32.totalorder %s3331_s5, %s2237_s24  ;;  %p2244_p0 = scmp.lt.u32.totalorder %s2237_s24, %s3331_s5 }
  0x52   : > { %p2240_p4 = pnand %p2238_p12, %p2818_p8 }
  0x54   : > { %p2241_p13 = pneg %p2240_p4 }
  0x56   : > { %p2246_p2 = pnand %p2244_p0, %p2241_p13 }
  0x58   : > { %2249 = shalt.err (!%p2246_p2)
}
  0x59   : > { %s2250_s22 = scalar_lea.vmem %s2808_s25, 16  ;;  %s2257_s20 = scalar_lea.vmem %s2808_s25, 32 }
  0x5a   : > { %p2251_p5 = scmp.ne.s32.totalorder %s2808_s25, %s2250_s22  ;;  %p2258_p10 = scmp.lt.s32.totalorder %s2808_s25, %s2808_s25 }
  0x5b   : > { %p2259_p11 = scmp.lt.s32.totalorder %s2257_s20, %s2250_s22 }
  0x5c   : > { %p2253_p7 = pnand %p2251_p5, %p2818_p8 }
  0x5d   : > { %p2260_p12 = por %p2259_p11, %p2258_p10 }
  0x5e   : > { %p2254_p9 = pneg %p2253_p7 }
  0x60   : > { %p2261_p4 = pnand %p2260_p12, %p2254_p9 }
  0x62   : > { %2264 = shalt.err (!%p2261_p4)
}
  0x63   : > { %2039 = dma.hbm_to_vmem [thread:$0]  (!%p2804_p6), %s3331_s5, 16, %s2808_s25, [#allocation12]  }
  0x64   : > { %s2676_s28 = smov [#allocation14]   ;;  %s2677_s24 = smov [#allocation17]  }
  0x65   : > { %s450_s17 = sshll.u32 %s2676_s28, 4  ;;  %s474_s14 = sshll.u32 %s2677_s24, 4  ;;  %s451_s17 = int_to_ptr.vmem [resolvable:$true] %s450_s17  ;;  %s475_s14 = int_to_ptr.vmem [resolvable:$true] %s474_s14 }
  0x66   : > { %s2265_s22 = scalar_lea.hbm %s3333_s7, 16 }
  0x67   : > { %p2266_p13 = scmp.ne.s32.totalorder %s3333_s7, %s2265_s22  ;;  %p2272_p5 = scmp.lt.u32.totalorder %s2265_s22, %s3333_s7 }
  0x69   : > { %p2268_p0 = pnand %p2266_p13, %p2818_p8 }
  0x6b   : > { %p2269_p2 = pneg %p2268_p0 }
  0x6d   : > { %p2274_p7 = pnand %p2272_p5, %p2269_p2 }
  0x6f   : > { %2277 = shalt.err (!%p2274_p7)
}
  0x70   : > { %s2278_s25 = scalar_lea.vmem %s451_s17, 16  ;;  %s2285_s27 = scalar_lea.vmem %s451_s17, 32 }
  0x71   : > { %p2279_p9 = scmp.ne.s32.totalorder %s451_s17, %s2278_s25  ;;  %p2286_p12 = scmp.lt.s32.totalorder %s451_s17, %s451_s17 }
  0x72   : > { %p2287_p4 = scmp.lt.s32.totalorder %s2285_s27, %s2278_s25 }
  0x73   : > { %p2281_p10 = pnand %p2279_p9, %p2818_p8 }
  0x74   : > { %p2288_p1 = por %p2287_p4, %p2286_p12 }
  0x75   : > { %p2282_p11 = pneg %p2281_p10 }
  0x77   : > { %p2289_p3 = pnand %p2288_p1, %p2282_p11 }
  0x79   : > { %2292 = shalt.err (!%p2289_p3)
}
  0x7a   : > { %2045 = dma.hbm_to_vmem [thread:$0]  (!%p2804_p6), %s3333_s7, 16, %s451_s17, [#allocation15]  }
  0x7b   : > { %s2293_s26 = scalar_lea.hbm %s3335_s9, 16 }
  0x7c   : > { %p2294_p13 = scmp.ne.s32.totalorder %s3335_s9, %s2293_s26  ;;  %p2300_p3 = scmp.lt.u32.totalorder %s2293_s26, %s3335_s9 }
  0x7e   : > { %p2296_p0 = pnand %p2294_p13, %p2818_p8 }
  0x80   : > { %p2297_p1 = pneg %p2296_p0 }
  0x82   : > { %p2302_p2 = pnand %p2300_p3, %p2297_p1 }
  0x84   : > { %2305 = shalt.err (!%p2302_p2)
}
  0x85   : > { %s2306_s25 = scalar_lea.vmem %s475_s14, 16  ;;  %s2313_s17 = scalar_lea.vmem %s475_s14, 32 }
  0x86   : > { %p2307_p5 = scmp.ne.s32.totalorder %s475_s14, %s2306_s25  ;;  %p2314_p10 = scmp.lt.s32.totalorder %s475_s14, %s475_s14 }
  0x87   : > { %p2315_p11 = scmp.lt.s32.totalorder %s2313_s17, %s2306_s25 }
  0x88   : > { %p2309_p7 = pnand %p2307_p5, %p2818_p8 }
  0x89   : > { %p2316_p12 = por %p2315_p11, %p2314_p10 }
  0x8a   : > { %p2310_p9 = pneg %p2309_p7 }
  0x8c   : > { %p2317_p4 = pnand %p2316_p12, %p2310_p9 }
  0x8e   : > { %2320 = shalt.err (!%p2317_p4)
}
  0x8f   : > { %2051 = dma.hbm_to_vmem [thread:$0]  (!%p2804_p6), %s3335_s9, 16, %s475_s14, [#allocation18]  }
  0x90   : > { %s2678_s28 = smov [#allocation20]   ;;  %s2679_s24 = smov [#allocation7]  }
  0x91   : > { %s498_s19 = sshll.u32 %s2678_s28, 4  ;;  %s391_s26 = sshll.u32 %s2679_s24, 4  ;;  %s499_s19 = int_to_ptr.vmem [resolvable:$true] %s498_s19  ;;  %s392_s26 = int_to_ptr.vmem [resolvable:$true] %s391_s26 }
  0x92   : > { %s2321_s20 = scalar_lea.hbm %s3337_s11, 16 }
  0x93   : > { %p2322_p13 = scmp.ne.s32.totalorder %s3337_s11, %s2321_s20  ;;  %p2328_p3 = scmp.lt.u32.totalorder %s2321_s20, %s3337_s11 }
  0x95   : > { %p2324_p0 = pnand %p2322_p13, %p2818_p8 }
  0x97   : > { %p2325_p1 = pneg %p2324_p0 }
  0x99   : > { %p2330_p2 = pnand %p2328_p3, %p2325_p1 }
  0x9b   : > { %2333 = shalt.err (!%p2330_p2)
}
  0x9c   : > { %s2334_s14 = scalar_lea.vmem %s499_s19, 16  ;;  %s2341_s0 = scalar_lea.vmem %s499_s19, 32 }
  0x9d   : > { %p2335_p5 = scmp.ne.s32.totalorder %s499_s19, %s2334_s14  ;;  %p2342_p10 = scmp.lt.s32.totalorder %s499_s19, %s499_s19 }
  0x9e   : > { %p2343_p11 = scmp.lt.s32.totalorder %s2341_s0, %s2334_s14 }
  0x9f   : > { %p2337_p7 = pnand %p2335_p5, %p2818_p8 }
  0xa0   : > { %p2344_p12 = por %p2343_p11, %p2342_p10 }
  0xa1   : > { %p2338_p9 = pneg %p2337_p7 }
  0xa3   : > { %p2345_p4 = pnand %p2344_p12, %p2338_p9 }
  0xa5   : > { %2348 = shalt.err (!%p2345_p4)
}
  0xa6   : > { %2057 = dma.hbm_to_vmem [thread:$0]  (!%p2804_p6), %s3337_s11, 16, %s499_s19, [#allocation21]  }
  0xa7   : > { %s3367_s2 = sld [smem:[#allocation39_spill]] }
  0xad   : > { %s2349_s20 = scalar_lea.hbm %s3367_s2, 16 }
  0xae   : > { %p2350_p13 = scmp.ne.s32.totalorder %s3367_s2, %s2349_s20  ;;  %p2356_p3 = scmp.lt.u32.totalorder %s2349_s20, %s3367_s2 }
  0xb0   : > { %p2352_p0 = pnand %p2350_p13, %p2818_p8 }
  0xb2   : > { %p2353_p1 = pneg %p2352_p0 }
  0xb4   : > { %p2358_p2 = pnand %p2356_p3, %p2353_p1 }
  0xb6   : > { %2361 = shalt.err (!%p2358_p2)
}
  0xb7   : > { %s2362_s14 = scalar_lea.vmem %s392_s26, 16  ;;  %s2369_s19 = scalar_lea.vmem %s392_s26, 32 }
  0xb8   : > { %p2363_p5 = scmp.ne.s32.totalorder %s392_s26, %s2362_s14  ;;  %p2370_p10 = scmp.lt.s32.totalorder %s392_s26, %s392_s26 }
  0xb9   : > { %p2371_p11 = scmp.lt.s32.totalorder %s2369_s19, %s2362_s14 }
  0xba   : > { %p2365_p7 = pnand %p2363_p5, %p2818_p8 }
  0xbb   : > { %p2372_p12 = por %p2371_p11, %p2370_p10 }
  0xbc   : > { %p2366_p9 = pneg %p2365_p7 }
  0xbe   : > { %p2373_p4 = pnand %p2372_p12, %p2366_p9 }
  0xc0   : > { %2376 = shalt.err (!%p2373_p4)
}
  0xc1   : > { %2030 = dma.hbm_to_vmem [thread:$0]  (!%p2804_p6), %s3367_s2, 16, %s392_s26, [#allocation6]  }
  0xc2   : > { %s2680_s24 = smov [#allocation10]   ;;  %s2681_s22 = smov [#allocation13]  }
  0xc3   : > { %s414_s18 = sshll.u32 %s2680_s24, 4  ;;  %s439_s20 = sshll.u32 %s2681_s22, 4  ;;  %s415_s18 = int_to_ptr.vmem [resolvable:$true] %s414_s18  ;;  %s440_s20 = int_to_ptr.vmem [resolvable:$true] %s439_s20 }
  0xc4   : > { %s2377_s17 = scalar_lea.hbm %s3330_s4, 128 }
  0xc5   : > { %p2378_p13 = scmp.ne.s32.totalorder %s3330_s4, %s2377_s17  ;;  %p2384_p3 = scmp.lt.u32.totalorder %s2377_s17, %s3330_s4 }
  0xc7   : > { %p2380_p0 = pnand %p2378_p13, %p2818_p8 }
  0xc9   : > { %p2381_p1 = pneg %p2380_p0 }
  0xcb   : > { %p2386_p2 = pnand %p2384_p3, %p2381_p1 }
  0xcd   : > { %2389 = shalt.err (!%p2386_p2)
}
  0xce   : > { %s2390_s26 = scalar_lea.vmem %s415_s18, 128  ;;  %p2398_p10 = scmp.lt.s32.totalorder %s415_s18, %s415_s18 }
  0xcf   : > { %p2391_p5 = scmp.ne.s32.totalorder %s415_s18, %s2390_s26  ;;  %p2399_p11 = scmp.lt.s32.totalorder %s2390_s26, %s2390_s26 }
  0xd1   : > { %p2393_p7 = pnand %p2391_p5, %p2818_p8  ;;  %p2400_p12 = por %p2399_p11, %p2398_p10 }
  0xd3   : > { %p2394_p9 = pneg %p2393_p7 }
  0xd5   : > { %p2401_p4 = pnand %p2400_p12, %p2394_p9 }
  0xd7   : > { %2404 = shalt.err (!%p2401_p4)
}
  0xd8   : > { %s3368_s28 = smov 4   ;;  %s3369_s24 = smov 64  }
  0xd9   : > { %2036 = dma.hbm_to_vmem [thread:$0]  (!%p2804_p6), %s3330_s4, 128, %s415_s18, [#allocation9], %s3369_s24, %s3369_s24, %s3368_s28  }
  0xda   : > { %s2405_s27 = scalar_lea.hbm %s3332_s6, 16 }
  0xdb   : > { %p2406_p13 = scmp.ne.s32.totalorder %s3332_s6, %s2405_s27  ;;  %p2412_p3 = scmp.lt.u32.totalorder %s2405_s27, %s3332_s6 }
  0xdd   : > { %p2408_p0 = pnand %p2406_p13, %p2818_p8 }
  0xdf   : > { %p2409_p1 = pneg %p2408_p0 }
  0xe1   : > { %p2414_p2 = pnand %p2412_p3, %p2409_p1 }
  0xe3   : > { %2417 = shalt.err (!%p2414_p2)
}
  0xe4   : > { %s2418_s22 = scalar_lea.vmem %s440_s20, 16  ;;  %s2425_s18 = scalar_lea.vmem %s440_s20, 32 }
  0xe5   : > { %p2419_p5 = scmp.ne.s32.totalorder %s440_s20, %s2418_s22  ;;  %p2426_p10 = scmp.lt.s32.totalorder %s440_s20, %s440_s20 }
  0xe6   : > { %p2427_p11 = scmp.lt.s32.totalorder %s2425_s18, %s2418_s22 }
  0xe7   : > { %p2421_p7 = pnand %p2419_p5, %p2818_p8 }
  0xe8   : > { %p2428_p12 = por %p2427_p11, %p2426_p10 }
  0xe9   : > { %p2422_p9 = pneg %p2421_p7 }
  0xeb   : > { %p2429_p4 = pnand %p2428_p12, %p2422_p9 }
  0xed   : > { %2432 = shalt.err (!%p2429_p4)
}
  0xee   : > { %2042 = dma.hbm_to_vmem [thread:$0]  (!%p2804_p6), %s3332_s6, 16, %s440_s20, [#allocation12]  }
  0xef   : > { %s2682_s17 = smov [#allocation16]   ;;  %s2683_s14 = smov [#allocation19]  }
  0xf0   : > { %s460_s27 = sshll.u32 %s2682_s17, 4  ;;  %s484_s19 = sshll.u32 %s2683_s14, 4  ;;  %s461_s27 = int_to_ptr.vmem [resolvable:$true] %s460_s27  ;;  %s485_s19 = int_to_ptr.vmem [resolvable:$true] %s484_s19 }
  0xf1   : > { %s2433_s2 = scalar_lea.hbm %s3334_s8, 256 }
  0xf2   : > { %p2434_p13 = scmp.ne.s32.totalorder %s3334_s8, %s2433_s2  ;;  %p2440_p3 = scmp.lt.u32.totalorder %s2433_s2, %s3334_s8 }
  0xf4   : > { %p2436_p0 = pnand %p2434_p13, %p2818_p8 }
  0xf6   : > { %p2437_p1 = pneg %p2436_p0 }
  0xf8   : > { %p2442_p2 = pnand %p2440_p3, %p2437_p1 }
  0xfa   : > { %2445 = shalt.err (!%p2442_p2)
}
  0xfb   : > { %s2446_s20 = scalar_lea.vmem %s461_s27, 256  ;;  %p2454_p10 = scmp.lt.s32.totalorder %s461_s27, %s461_s27 }
  0xfc   : > { %p2447_p5 = scmp.ne.s32.totalorder %s461_s27, %s2446_s20  ;;  %p2455_p11 = scmp.lt.s32.totalorder %s2446_s20, %s2446_s20 }
  0xfe   : > { %p2449_p7 = pnand %p2447_p5, %p2818_p8  ;;  %p2456_p12 = por %p2455_p11, %p2454_p10 }
 0x100   : > { %p2450_p9 = pneg %p2449_p7 }
 0x102   : > { %p2457_p4 = pnand %p2456_p12, %p2450_p9 }
 0x104   : > { %2460 = shalt.err (!%p2457_p4)
}
 0x105   : > { %2048 = dma.hbm_to_vmem [thread:$0]  (!%p2804_p6), %s3334_s8, 256, %s461_s27, [#allocation15], %s3369_s24, %s3369_s24, %s3368_s28  }
 0x106   : > { %s2461_s14 = scalar_lea.hbm %s3336_s10, 512 }
 0x107   : > { %p2462_p13 = scmp.ne.s32.totalorder %s3336_s10, %s2461_s14  ;;  %p2468_p3 = scmp.lt.u32.totalorder %s2461_s14, %s3336_s10 }
 0x109   : > { %p2464_p0 = pnand %p2462_p13, %p2818_p8 }
 0x10b   : > { %p2465_p1 = pneg %p2464_p0 }
 0x10d   : > { %p2470_p2 = pnand %p2468_p3, %p2465_p1 }
 0x10f   : > { %2473 = shalt.err (!%p2470_p2)
}
 0x110   : > { %s2474_s1 = scalar_lea.vmem %s485_s19, 512  ;;  %p2482_p10 = scmp.lt.s32.totalorder %s485_s19, %s485_s19 }
 0x111   : > { %p2475_p5 = scmp.ne.s32.totalorder %s485_s19, %s2474_s1  ;;  %p2483_p11 = scmp.lt.s32.totalorder %s2474_s1, %s2474_s1 }
 0x113   : > { %p2477_p7 = pnand %p2475_p5, %p2818_p8  ;;  %p2484_p12 = por %p2483_p11, %p2482_p10 }
 0x115   : > { %p2478_p9 = pneg %p2477_p7 }
 0x117   : > { %p2485_p4 = pnand %p2484_p12, %p2478_p9 }
 0x119   : > { %2488 = shalt.err (!%p2485_p4)
}
 0x11a   : > { %2054 = dma.hbm_to_vmem [thread:$0]  (!%p2804_p6), %s3336_s10, 512, %s485_s19, [#allocation18], %s3369_s24, %s3369_s24, %s3368_s28  }
 0x11b   : > { %s2684_s3 = smov [#allocation22]   ;;  %s2685_s25 = smov [#allocation23]  }
 0x11c   : > { %s509_s2 = sshll.u32 %s2684_s3, 4  ;;  %s520_s17 = sshll.u32 %s2685_s25, 4  ;;  %s510_s2 = int_to_ptr.vmem [resolvable:$true] %s509_s2  ;;  %s521_s17 = int_to_ptr.vmem [resolvable:$true] %s520_s17 }
 0x11d   : > { %s2489_s26 = scalar_lea.hbm %s3338_s12, 16 }
 0x11e   : > { %p2490_p13 = scmp.ne.s32.totalorder %s3338_s12, %s2489_s26  ;;  %p2496_p3 = scmp.lt.u32.totalorder %s2489_s26, %s3338_s12 }
 0x120   : > { %p2492_p0 = pnand %p2490_p13, %p2818_p8 }
 0x122   : > { %p2493_p1 = pneg %p2492_p0 }
 0x124   : > { %p2498_p2 = pnand %p2496_p3, %p2493_p1 }
 0x126   : > { %2501 = shalt.err (!%p2498_p2)
}
 0x127   : > { %s2502_s28 = scalar_lea.vmem %s510_s2, 16  ;;  %s2509_s24 = scalar_lea.vmem %s510_s2, 32 }
 0x128   : > { %p2503_p5 = scmp.ne.s32.totalorder %s510_s2, %s2502_s28  ;;  %p2510_p10 = scmp.lt.s32.totalorder %s510_s2, %s510_s2 }
 0x129   : > { %p2511_p11 = scmp.lt.s32.totalorder %s2509_s24, %s2502_s28 }
 0x12a   : > { %p2505_p7 = pnand %p2503_p5, %p2818_p8 }
 0x12b   : > { %p2512_p12 = por %p2511_p11, %p2510_p10 }
 0x12c   : > { %p2506_p9 = pneg %p2505_p7 }
 0x12e   : > { %p2513_p4 = pnand %p2512_p12, %p2506_p9 }
 0x130   : > { %2516 = shalt.err (!%p2513_p4)
}
 0x131   : > { %2060 = dma.hbm_to_vmem [thread:$0]  (!%p2804_p6), %s3338_s12, 16, %s510_s2, [#allocation21]  }
 0x132   : > { %s2517_s14 = scalar_lea.hbm %s3339_s13, 16 }
 0x133   : > { %p2518_p13 = scmp.ne.s32.totalorder %s3339_s13, %s2517_s14  ;;  %p2524_p3 = scmp.lt.u32.totalorder %s2517_s14, %s3339_s13 }
 0x135   : > { %p2520_p0 = pnand %p2518_p13, %p2818_p8 }
 0x137   : > { %p2521_p1 = pneg %p2520_p0 }
 0x139   : > { %p2526_p2 = pnand %p2524_p3, %p2521_p1 }
 0x13b   : > { %2529 = shalt.err (!%p2526_p2)
}
 0x13c   : > { %s2530_s1 = scalar_lea.vmem %s521_s17, 16  ;;  %s2537_s2 = scalar_lea.vmem %s521_s17, 32 }
 0x13d   : > { %p2531_p5 = scmp.ne.s32.totalorder %s521_s17, %s2530_s1  ;;  %p2538_p10 = scmp.lt.s32.totalorder %s521_s17, %s521_s17 }
 0x13e   : > { %p2539_p11 = scmp.lt.s32.totalorder %s2537_s2, %s2530_s1 }
 0x13f   : > { %p2533_p7 = pnand %p2531_p5, %p2818_p8 }
 0x140   : > { %p2540_p12 = por %p2539_p11, %p2538_p10 }
 0x141   : > { %p2534_p9 = pneg %p2533_p7 }
 0x143   : > { %p2541_p4 = pnand %p2540_p12, %p2534_p9 }
 0x145   : > { %2544 = shalt.err (!%p2541_p4)
}
 0x146   : > { %s3370_s21 = sld [smem:[#allocation35_spill]]  ;;  %s1749_s24 = sadd.s32 4294967294, %s2669_s16  }
 0x147   : > { %2063 = dma.hbm_to_vmem [thread:$0]  (!%p2804_p6), %s3339_s13, 16, %s521_s17, [#allocation24]  }
 0x148   : > { %s3081_s23 = sadd.s32 1, %s2669_s16   ;;  %s44_s19 = sadd.s32 1, %s2665_s15 }
 0x149   : > { %s41_s20 = ssub.s32 %s2669_s16, %s3081_s23  ;;  %p51_p8 = scmp.ne.s32.totalorder %s2665_s15, %s2661_s30 }
 0x14a   : > { %p42_p13 = scmp.eq.s32.totalorder %s41_s20, 0  ;;  %p52_p0 = scmp.eq.s32.totalorder %s2669_s16, 0 }
 0x14b   : > { %p57_p1 = scmp.ne.s32.totalorder %s2661_s30, %s2657_s29  ;;  %p360_p9 = scmp.eq.s32.totalorder %s1749_s24, 1 }
 0x14c   : > { %p354_p3 = scmp.eq.s32.totalorder %s3370_s21, 1  ;;  %p53_p2 = por %p52_p0, %p51_p8 }
 0x14d   : > { %s3093_s3 = scalar_select %p42_p13, %s2665_s15, %s44_s19  }
 0x14e   : > { %p3371_p5 = scmp.eq.s32.totalorder %s3370_s21, 0  ;;  %p3101_p6 = por %p354_p3, %p51_p8 }
 0x14f   : > { %p2085_p10 = scmp.lt.s32.totalorder %s2669_s16, 2  ;;  %s531_s14 = sand.u32 1, %s2665_s15  }
 0x150   : > { %p3097_p7 = por %p3371_p5, %p57_p1  ;;  %p3107_p11 = por %p360_p9, %p57_p1 }
 0x151   : > { %s3373_s17 = scalar_select %p3101_p6, 1, 0 }
 0x152   : > { %s3374_s0 = scalar_select %p3107_p11, 1, 0 }
 0x153   : > { %s1765_s26 = sshll.u32 %s531_s14, 3  ;;  %s1766_s22 = sshll.u32 %s2669_s16, 7 }
 0x154   : > { %s3375_s2 = sld [smem:[#allocation37_spill]]  ;;  %s535_s28 = scalar_lea.vmem [#allocation2], %s1765_s26 }
 0x155   : > { %s542_s21 = sshll.u32 %s535_s28, 4  ;;  %p3117_p12 = pnand %p2085_p10, %p53_p2  ;;  %s3121_s21 = int_to_ptr.vmem [resolvable:$true] %s542_s21 }
 0x156   : > { %s532_s19 = scalar_lea.sflag [#allocation3], %s531_s14 }
 0x157   : > { %p2547_p8 = pneg %p3117_p12 }
 0x15a   : > { %s3115_s27 = scalar_lea.hbm %s3375_s2, %s1766_s22  ;;  %s2550_s18 = scalar_lea.hbm %s3375_s2, 256 }
 0x15b   : > { %s2545_s20 = scalar_lea.hbm %s3115_s27, 128  ;;  %p2551_p1 = scmp.lt.u32.totalorder %s3115_s27, %s3375_s2 }
 0x15c   : > { %p2546_p4 = scmp.ne.s32.totalorder %s3115_s27, %s2545_s20  ;;  %p2552_p3 = scmp.lt.u32.totalorder %s2550_s18, %s2545_s20 }
 0x15d   : > { %p2554_p5 = scmp.lt.u32.totalorder %s2545_s20, %s3115_s27 }
 0x15e   : > { %p2548_p13 = pnand %p2547_p8, %p2546_p4  ;;  %p2553_p2 = por %p2552_p3, %p2551_p1 }
 0x160   : > { %p2549_p0 = pneg %p2548_p13  ;;  %p2555_p9 = por %p2554_p5, %p2553_p2 }
 0x162   : > { %p2556_p10 = pnand %p2555_p9, %p2549_p0 }
 0x164   : > { %2559 = shalt.err (!%p2556_p10)
}
 0x165   : > { %s2560_s14 = scalar_lea.vmem %s3121_s21, 128  ;;  %s2686_s22 = smov [#allocation2]  }
 0x166   : > { %p2561_p4 = scmp.ne.s32.totalorder %s3121_s21, %s2560_s14  ;;  %s2565_s26 = sshll.u32 %s2686_s22, 4  ;;  %s2566_s26 = int_to_ptr.vmem [resolvable:$false] %s2565_s26 }
 0x167   : > { %s2567_s1 = scalar_lea.vmem %s2566_s26, 256  ;;  %p2568_p6 = scmp.lt.s32.totalorder %s3121_s21, %s2566_s26 }
 0x168   : > { %p2563_p13 = pnand %p2561_p4, %p2547_p8  ;;  %p2569_p1 = scmp.lt.s32.totalorder %s2567_s1, %s2560_s14 }
 0x16a   : > { %p2564_p11 = pneg %p2563_p13  ;;  %p2570_p3 = por %p2569_p1, %p2568_p6 }
 0x16c   : > { %p2571_p2 = pnand %p2570_p3, %p2564_p11 }
 0x16e   : > { %2574 = shalt.err (!%p2571_p2)
}
 0x16f   : > { %2067 = dma.hbm_to_vmem [thread:$0]  (!%p3117_p12), %s3115_s27, 128, %s3121_s21, %s532_s19  }
 0x170   : > { %s3377_s20 = sld [smem:[#allocation36_spill]] }
 0x176   : > { %p3378_p0 = scmp.ne.s32.totalorder %s3377_s20, 0 }
 0x177   : > { %s3151_s18 = sand.u32 (!%p3378_p0), 1, %s2661_s30  }
 0x178   : > { %551 = sbr.rel (%p3378_p0) target bundleno = 2700 (0xa8c), region = 76  ;;  %s1768_s28 = sshll.u32 (!%p3378_p0), %s3151_s18, 3 }
 0x179   : > { %s554_s14 = scalar_lea.sflag (!%p3378_p0), [#allocation3], %s3151_s18  ;;  %s557_s22 = scalar_lea.vmem (!%p3378_p0), [#allocation2], %s1768_s28 }
 0x17f   : > { %2620 = dma.done.wait (%p3097_p7), %s554_s14, 128  }
 0x180   : > { %2622 = vsyncadd (%p3097_p7), %s554_s14, 4294967168  ;;  %s3379_s27 = sld [smem:[#allocation35_spill]] }
 0x186   : > { %p3380_p6 = scmp.eq.s32.totalorder %s3379_s27, 0 }
 0x188   : > { %2624 = dma.done.wait (%p3380_p6), [#allocation6], 32   ;;  %p3381_p11 = pmov %p3380_p6 }
 0x189   : > { %p3382_p12 = pmov %p3380_p6 }
 0x18a   : > { %2626 = vsyncadd (%p3381_p11), [#allocation6], 4294967264 }
 0x18b   : > { %2628 = dma.done.wait (%p3382_p12), [#allocation9], 1664   ;;  %p3383_p8 = pmov %p3380_p6 }
 0x18c   : > { %p3384_p5 = pmov %p3380_p6 }
 0x18d   : > { %2630 = vsyncadd (%p3383_p8), [#allocation9], 4294965632 }
 0x18e   : > { %2632 = dma.done.wait (%p3384_p5), [#allocation12], 32   ;;  %p3385_p9 = pmov %p3384_p5 }
 0x18f   : > { %p3386_p7 = pmov %p3384_p5 }
 0x190   : > { %2634 = vsyncadd (%p3385_p9), [#allocation12], 4294967264 }
 0x191   : > { %2636 = dma.done.wait (%p3386_p7), [#allocation15], 272   ;;  %p3387_p10 = pmov %p3384_p5 }
 0x192   : > { %p3388_p4 = pmov %p3384_p5 }
 0x193   : > { %2638 = vsyncadd (%p3387_p10), [#allocation15], 4294967024 }
 0x194   : > { %2640 = dma.done.wait (%p3388_p4), [#allocation18], 528   ;;  %p3389_p13 = pmov %p3388_p4 }
 0x195   : > { %p3390_p1 = pmov %p3388_p4 }
 0x196   : > { %2642 = vsyncadd (%p3389_p13), [#allocation18], 4294966768 }
 0x197   : > { %2644 = dma.done.wait (%p3390_p1), [#allocation21], 32   ;;  %p3391_p3 = pmov %p3390_p1 }
 0x198   : > { %p3392_p2 = pmov %p3390_p1 }
 0x199   : > { %2646 = vsyncadd (%p3391_p3), [#allocation21], 4294967264 }
 0x19a   : > { %2648 = dma.done.wait (%p3392_p2), [#allocation24], 16   ;;  %p3393_p0 = pmov %p3390_p1 }
 0x19b   : > { %vm658_vm0 = vcmask 261120   ;;  %v3189_v0 = vld [vmem:[%s557_s22] sm:$0xff]  ;;  %v2149_v7 = vld [vmem:[#allocation8] sm:$0xff]   ;;  %v2687_v9 = vmov 0.0   ;;  %vm2688_vm1 = vmmov 0   ;;  %vm1033_vm2 = vcmask 64512  }
 0x19c   : > { %2650 = vsyncadd (%p3393_p0), [#allocation24], 4294967280  ;;  %v659_v1 = vsel %vm658_vm0, %v3189_v0, 0.0  ;;  %v2150_v8 = vld [vmem:[#allocation8 + $0x10] sm:$0xff]   ;;  %1864 = vmatprep.subr.bf16.mxu0 %v2687_v9  ;;  %1872 = vmatprep.subr.bf16.mxu1 %v2687_v9  ;;  %v2151_v10 = vld [vmem:[#allocation8 + $0x8] sm:$0xff]   ;;  %vm1155_vm3 = vcmask 1043456  }
 0x19d   : > { %660 = vadd.xlane.f32.xlu0 %v659_v1  ;;  %1865 = vmatpush3.bf16.msra.mxu0 %v2149_v7  ;;  %v2152_v11 = vld [vmem:[#allocation8 + $0x18] sm:$0xff]   ;;  %v2153_v21 = vld [vmem:[#allocation8 + $0x20] sm:$0xff]   ;;  %v2154_v22 = vld [vmem:[#allocation8 + $0x30] sm:$0xff]   ;;  %vm1487_vm4 = vcmask 523264   ;;  %s1823_s25 = sshll.u32 %s3379_s27, 7  ;;  %s653_s21 = scalar_lea.vmem [#allocation25], %s1768_s28 }
 0x19e   : > { %1873 = vmatpush3.bf16.msra.mxu1 %v2150_v8  ;;  %1866 = vmatprep.subr.bf16.mxu0 %v2687_v9  ;;  %v1783_v16 = vld [vmem:[#allocation5] ss:$0 sm:$0xff]  ;;  %v1784_v18 = vld [vmem:[#allocation7] ss:$0 sm:$0xff]  ;;  %v2155_v24 = vld [vmem:[#allocation8 + $0x28] sm:$0xff]   ;;  %s1555_s24 = sshll.u32 %s653_s21, 4  ;;  %s3283_s24 = int_to_ptr.vmem [resolvable:$true] %s1555_s24 }
 0x19f   : > { %1874 = vmatprep.subr.bf16.mxu1 %v2687_v9  ;;  %1868 = vmatprep.mubr.msk.bf16.mxu0 %vm2688_vm1, %v2687_v9  ;;  %v2156_v25 = vld [vmem:[#allocation8 + $0x38] sm:$0xff]   ;;  %v2157_v26 = vld [vmem:[#allocation8 + $0x40] sm:$0xff]   ;;  %v2158_v27 = vld [vmem:[#allocation8 + $0x50] sm:$0xff]   ;;  %s3394_s1 = sld [smem:[#allocation41_spill]]  ;;  %s1542_s14 = scalar_lea.sflag [#allocation4], %s3151_s18 }
 0x1a0   : > { %1876 = vmatprep.mubr.msk.bf16.mxu1 %vm2688_vm1, %v2687_v9  ;;  %v2159_v28 = vld [vmem:[#allocation8 + $0x48] sm:$0xff]   ;;  %v2160_v29 = vld [vmem:[#allocation8 + $0x58] sm:$0xff]   ;;  %s2575_s28 = scalar_lea.vmem %s3283_s24, 128  ;;  %p3395_p11 = scmp.ne.s32.totalorder %s3373_s17, 0 }
 0x1a1   : > { %1867 = vmatpush3.bf16.msra.mxu0 %v2151_v10  ;;  %p2576_p6 = scmp.ne.s32.totalorder %s3283_s24, %s2575_s28  ;;  %s2689_s22 = smov [#allocation25]  }
 0x1a2   : > { %1875 = vmatpush3.bf16.msra.mxu1 %v2152_v11  ;;  %1880 = vmatprep.subr.bf16.mxu0 %v2687_v9  ;;  %s2579_s27 = sshll.u32 %s2689_s22, 4  ;;  %s2580_s27 = int_to_ptr.vmem [resolvable:$false] %s2579_s27 }
 0x1a3   : > { %1888 = vmatprep.subr.bf16.mxu1 %v2687_v9  ;;  %p2577_p12 = pnand %p2576_p6, %p3395_p11  ;;  %s2581_s2 = scalar_lea.vmem %s2580_s27, 256 }
 0x1a4   : > { %p2582_p5 = scmp.lt.s32.totalorder %s3283_s24, %s2580_s27  ;;  %p2583_p9 = scmp.lt.s32.totalorder %s2581_s2, %s2575_s28 }
 0x1a5   : > { %s3281_s20 = scalar_lea.hbm %s3394_s1, %s1823_s25  ;;  %p2578_p8 = pneg %p2577_p12 }
 0x1a6   : > { %p2584_p7 = por %p2583_p9, %p2582_p5 }
 0x1a8   : > { %p2585_p10 = pnand %p2584_p7, %p2578_p8 }
 0x22a   : > { %v661_v2 = vpop.xlane.xlu0 %660 }
 0x22b   : > { %v663_v3 = vmul.f32 0.03125, %v661_v2 }
 0x22d   : > { %v664_v4 = vsub.f32 %v3189_v0, %v663_v3 }
 0x22f   : > { %v665_v5 = vmul.f32 %v664_v4, %v664_v4 }
 0x231   : > { %v666_v6 = vsel %vm658_vm0, %v665_v5, 0.0 }
 0x232   : > { %667 = vadd.xlane.f32.xlu0 %v666_v6 }
 0x2bf   : > { %v668_v12 = vpop.xlane.xlu0 %667 }
 0x2c0   : > { %v669_v13 = vmul.f32 0.03125, %v668_v12 }
 0x2c2   : > { %v670_v14 = vadd.f32 1e-05, %v669_v13 }
 0x2c4   : > { %2167 = vrsqrt.f32 %v670_v14 }
 0x2ce   : > { %v2168_v15 = vpop.eup %2167 }
 0x2cf   : > { %v672_v17 = vmul.f32 %v2168_v15, %v664_v4 }
 0x2d1   : > { %v679_v19 = vmul.f32 %v1783_v16, %v672_v17 }
 0x2d3   : > { %v686_v20 = vadd.f32 %v1784_v18, %v679_v19 }
 0x2d5   : > { %v687_v23 = vpack.c.bf16 %v686_v20, %v686_v20 }
 0x2d7   : > { %1869 = vmatmul.mubr.msk.bf16.vlgmr.msra.gmra.mrb[0].mxu0 %vm658_vm0, %v687_v23  ;;  %1877 = vmatmul.mubr.msk.bf16.vlgmr.msra.gmra.mrb[0].mxu1 %vm658_vm0, %v687_v23 }
 0x2d8   : > { %1881 = vmatpush3.bf16.msra.mxu0 %v2153_v21  ;;  %1889 = vmatpush3.bf16.msra.mxu1 %v2154_v22 }
 0x2d9   : > { %1882 = vmatprep.subr.bf16.mxu0 %v2687_v9  ;;  %1890 = vmatprep.subr.bf16.mxu1 %v2687_v9 }
 0x2da   : > { %1884 = vmatprep.mubr.msk.bf16.mxu0 %vm2688_vm1, %v2687_v9  ;;  %1892 = vmatprep.mubr.msk.bf16.mxu1 %vm2688_vm1, %v2687_v9 }
 0x2dc   : > { %1883 = vmatpush3.bf16.msra.mxu0 %v2155_v24  ;;  %1891 = vmatpush3.bf16.msra.mxu1 %v2156_v25 }
 0x2dd   : > { %1896 = vmatprep.subr.bf16.mxu0 %v2687_v9  ;;  %1904 = vmatprep.subr.bf16.mxu1 %v2687_v9 }
 0x2df   : > { %1885 = vmatmul.mubr.msk.bf16.vlgmr.msra.gmra.mrb[4].mxu0 %vm658_vm0, %v687_v23  ;;  %1893 = vmatmul.mubr.msk.bf16.vlgmr.msra.gmra.mrb[4].mxu1 %vm658_vm0, %v687_v23 }
 0x2e0   : > { %1897 = vmatpush3.bf16.msra.mxu0 %v2157_v26  ;;  %1905 = vmatpush3.bf16.msra.mxu1 %v2158_v27 }
 0x2e1   : > { %1898 = vmatprep.subr.bf16.mxu0 %v2687_v9  ;;  %1906 = vmatprep.subr.bf16.mxu1 %v2687_v9 }
 0x2e2   : > { %1900 = vmatprep.mubr.msk.bf16.mxu0 %vm2688_vm1, %v2687_v9  ;;  %1908 = vmatprep.mubr.msk.bf16.mxu1 %vm2688_vm1, %v2687_v9 }
 0x2e4   : > { %1899 = vmatpush3.bf16.msra.mxu0 %v2159_v28  ;;  %1907 = vmatpush3.bf16.msra.mxu1 %v2160_v29 }
 0x2e5   : > { %1912 = vmatprep.subr.bf16.mxu0 %v2687_v9  ;;  %1918 = vmatprep.subr.bf16.mxu1 %v2687_v9 }
 0x2e7   : > { %1901 = vmatmul.mubr.msk.bf16.vlgmr.msra.gmra.mrb[8].mxu0 %vm658_vm0, %v687_v23  ;;  %1909 = vmatmul.mubr.msk.bf16.vlgmr.msra.gmra.mrb[8].mxu1 %vm658_vm0, %v687_v23 }
 0x2e8   : > { %1914 = vmatprep.mubr.msk.bf16.mxu0 %vm2688_vm1, %v2687_v9  ;;  %1920 = vmatprep.mubr.msk.bf16.mxu1 %vm2688_vm1, %v2687_v9 }
 0x3aa   : > { %v761_v30 = vpop.f32.mrb[0].mxu0  ;;  %v813_v31 = vpop.f32.mrb[0].mxu1 }
 0x3ab   : > { %v1870_v32 = vpop.f32.mrb[1].mxu0  ;;  %v1878_v33 = vpop.f32.mrb[1].mxu1  ;;  %v819_v50 = vmul.f32 0.35355338, %v761_v30  ;;  %v820_v51 = vmul.f32 0.35355338, %v813_v31 }
 0x3ac   : > { %v764_v34 = vpop.f32.mrb[2].mxu0  ;;  %v816_v35 = vpop.f32.mrb[2].mxu1  ;;  %v1247_v32 = vld [vmem:[#allocation10] sm:$0xf] }
 0x3ad   : > { %v1871_v36 = vpop.f32.mrb[3].mxu0  ;;  %v1879_v37 = vpop.f32.mrb[3].mxu1  ;;  %v1029_v54 = vpack.c.bf16 %v819_v50, %v819_v50  ;;  %v1030_v55 = vpack.c.bf16 %v820_v51, %v820_v51  ;;  %v1253_v33 = vsel %vm1155_vm3, %v1247_v32, 0  ;;  %v1248_v34 = vld [vmem:[#allocation10 + $0x4] sm:$0xf] }
 0x3ae   : > { %v1299_v35 = vsel %vm1155_vm3, %v1248_v34, 0 }
 0x3b2   : > { %v867_v38 = vpop.f32.mrb[4].mxu0  ;;  %v919_v39 = vpop.f32.mrb[4].mxu1 }
 0x3b3   : > { %v1031_v40 = vpack.c.bf16 %v867_v38, %v867_v38  ;;  %v1032_v41 = vpack.c.bf16 %v919_v39, %v919_v39  ;;  %v1886_v42 = vpop.f32.mrb[5].mxu0  ;;  %v1894_v43 = vpop.f32.mrb[5].mxu1 }
 0x3b4   : > { %v870_v44 = vpop.f32.mrb[6].mxu0  ;;  %v922_v45 = vpop.f32.mrb[6].mxu1 }
 0x3b5   : > { %v1038_v46 = vsel %vm1033_vm2, %v1031_v40, 0  ;;  %v1084_v47 = vsel %vm1033_vm2, %v1032_v41, 0  ;;  %v1887_v48 = vpop.f32.mrb[7].mxu0  ;;  %v1895_v49 = vpop.f32.mrb[7].mxu1 }
 0x3b6   : > { %1913 = vmatpush3.bf16.xpose.msra.mxu0 %v1038_v46  ;;  %1919 = vmatpush3.bf16.xpose.msra.mxu1 %v1084_v47 }
 0x3b7   : > { %1924 = vmatprep.subr.bf16.mxu0 %v2687_v9  ;;  %1930 = vmatprep.subr.bf16.mxu1 %v2687_v9 }
 0x3ba   : > { %v971_v52 = vpop.f32.mrb[8].mxu0  ;;  %v1023_v53 = vpop.f32.mrb[8].mxu1 }
 0x3bb   : > { %v1150_v56 = vpack.c.bf16 %v971_v52, %v971_v52  ;;  %v1151_v57 = vpack.c.bf16 %v1023_v53, %v1023_v53  ;;  %v1902_v58 = vpop.f32.mrb[9].mxu0  ;;  %v1910_v59 = vpop.f32.mrb[9].mxu1 }
 0x3bc   : > { %v974_v60 = vpop.f32.mrb[10].mxu0  ;;  %v1026_v61 = vpop.f32.mrb[10].mxu1 }
 0x3bd   : > { %v1157_v62 = vsel %vm1155_vm3, %v1150_v56, 0  ;;  %v1203_v63 = vsel %vm1155_vm3, %v1151_v57, 0  ;;  %v1903_v1 = vpop.f32.mrb[11].mxu0  ;;  %v1911_v2 = vpop.f32.mrb[11].mxu1  ;;  %1915 = vmatmul.mubr.msk.bf16.vlgmr.msra.gmra.mrb[12].mxu0 %vm1033_vm2, %v1029_v54  ;;  %1921 = vmatmul.mubr.msk.bf16.vlgmr.msra.gmra.mrb[12].mxu1 %vm1033_vm2, %v1030_v55  ;;  %v1809_v57 = vld [vmem:[#allocation11] ss:$0 sm:$0xff] }
 0x3be   : > { %1925 = vmatpush3.bf16.msra.mxu0 %v1157_v62  ;;  %1931 = vmatpush3.bf16.msra.mxu1 %v1203_v63 }
 0x3bf   : > { %1926 = vmatprep.mubr.msk.bf16.mxu0 %vm2688_vm1, %v2687_v9  ;;  %1932 = vmatprep.mubr.msk.bf16.mxu1 %vm2688_vm1, %v2687_v9 }
 0x3c0   : > { %1936 = vmatprep.subr.bf16.mxu0 %v2687_v9  ;;  %1942 = vmatprep.subr.bf16.mxu1 %v2687_v9 }
 0x490   : > { %v1074_v3 = vpop.f32.mrb[12].mxu0  ;;  %v1120_v4 = vpop.f32.mrb[12].mxu1 }
 0x491   : > { %v1916_v5 = vpop.f32.mrb[13].mxu0  ;;  %v1922_v6 = vpop.f32.mrb[13].mxu1  ;;  %v1126_v7 = vsel %vm1033_vm2, %v1074_v3, -inf  ;;  %v1129_v13 = vsel %vm1033_vm2, %v1120_v4, -inf }
 0x492   : > { %v1123_v8 = vpop.f32.mrb[14].mxu1  ;;  %1127 = vmax.xlane.f32.xlu1 %v1126_v7  ;;  %v1077_v10 = vpop.f32.mrb[14].mxu0 }
 0x493   : > { %v1917_v11 = vpop.f32.mrb[15].mxu0  ;;  %v1923_v12 = vpop.f32.mrb[15].mxu1  ;;  %v1810_v8 = vld [vmem:[#allocation13] ss:$0 sm:$0xff] }
 0x494   : > { %v1811_v11 = vld [vmem:[#allocation14] ss:$0 sm:$0xff] }
 0x496   : > { %1130 = vmax.xlane.f32.xlu1 %v1129_v13 }
 0x51f   : > { %v1128_v14 = vpop.xlane.xlu1 %1127 }
 0x520   : > { %v1132_v15 = vsub.f32 %v1074_v3, %v1128_v14  ;;  %v2161_v3 = vld [vmem:[#allocation16] sm:$0xff]  }
 0x522   : > { %v1134_v16 = vmul.f32 1.442695, %v1132_v15  ;;  %v2163_v15 = vld [vmem:[#allocation19] sm:$0xff]  }
 0x523   : > { %v1131_v17 = vpop.xlane.xlu1 %1130 }
 0x524   : > { %2169 = vpow2.f32 %v1134_v16  ;;  %v1133_v18 = vsub.f32 %v1120_v4, %v1131_v17  ;;  %v2162_v4 = vld [vmem:[#allocation16 + $0x8] sm:$0xff]   ;;  %v2164_v16 = vld [vmem:[#allocation19 + $0x8] sm:$0xff]  }
 0x525   : > { %v2165_v17 = vld [vmem:[#allocation19 + $0x10] sm:$0xff]  }
 0x526   : > { %v1136_v19 = vmul.f32 1.442695, %v1133_v18  ;;  %v2166_v18 = vld [vmem:[#allocation19 + $0x18] sm:$0xff]  }
 0x528   : > { %2171 = vpow2.f32 %v1136_v19  ;;  %v1812_v19 = vld [vmem:[#allocation17] ss:$0 sm:$0xff] }
 0x52e   : > { %v2170_v20 = vpop.eup %2169 }
 0x52f   : > { %v1138_v21 = vsel %vm1033_vm2, %v2170_v20, 0.0 }
 0x530   : > { %1139 = vadd.xlane.f32.xlu0 %v1138_v21 }
 0x532   : > { %v2172_v22 = vpop.eup %2171 }
 0x533   : > { %v1141_v23 = vsel %vm1033_vm2, %v2172_v22, 0.0 }
 0x534   : > { %1142 = vadd.xlane.f32.xlu1 %v1141_v23 }
 0x5bd   : > { %v1140_v24 = vpop.xlane.xlu0 %1139 }
 0x5be   : > { %2173 = vrcp.f32 %v1140_v24 }
 0x5c1   : > { %v1143_v25 = vpop.xlane.xlu1 %1142 }
 0x5c2   : > { %2175 = vrcp.f32 %v1143_v25 }
 0x5c8   : > { %v2174_v26 = vpop.eup %2173 }
 0x5c9   : > { %v1146_v27 = vmul.f32 %v2174_v26, %v2170_v20 }
 0x5cb   : > { %v1148_v28 = vpack.c.bf16 %v1146_v27, %v1146_v27 }
 0x5cc   : > { %v2176_v29 = vpop.eup %2175 }
 0x5cd   : > { %v1147_v30 = vmul.f32 %v2176_v29, %v2172_v22  ;;  %1927 = vmatmul.mubr.msk.bf16.vlgmr.msra.gmra.mrb[16].mxu0 %vm1033_vm2, %v1148_v28 }
 0x5ce   : > { %1938 = vmatprep.mubr.msk.bf16.mxu0 %vm2688_vm1, %v2687_v9  ;;  %1937 = vmatpush3.bf16.msra.mxu0 %v1253_v33 }
 0x5cf   : > { %v1149_v31 = vpack.c.bf16 %v1147_v30, %v1147_v30  ;;  %1948 = vmatprep.subr.bf16.mxu0 %v2687_v9 }
 0x5d1   : > { %1933 = vmatmul.mubr.msk.bf16.vlgmr.msra.gmra.mrb[16].mxu1 %vm1033_vm2, %v1149_v31  ;;  %v1821_v31 = vld [vmem:[#allocation20] ss:$0 sm:$0xff] }
 0x5d2   : > { %1944 = vmatprep.mubr.msk.bf16.mxu1 %vm2688_vm1, %v2687_v9  ;;  %1943 = vmatpush3.bf16.msra.mxu1 %v1299_v35 }
 0x5d3   : > { %1956 = vmatprep.subr.bf16.mxu1 %v2687_v9 }
 0x6a0   : > { %v1193_v36 = vpop.f32.mrb[16].mxu0 }
 0x6a1   : > { %v1245_v37 = vpack.c.bf16 %v1193_v36, %v1193_v36  ;;  %v1928_v38 = vpop.f32.mrb[17].mxu0 }
 0x6a2   : > { %v1196_v39 = vpop.f32.mrb[18].mxu0 }
 0x6a3   : > { %v1929_v40 = vpop.f32.mrb[19].mxu0  ;;  %1939 = vmatmul.mubr.msk.bf16.vlgmr.msra.gmra.mrb[20].mxu0 %vm1033_vm2, %v1245_v37 }
 0x6a4   : > { %v1239_v41 = vpop.f32.mrb[16].mxu1  ;;  %1952 = vmatprep.mubr.msk.bf16.mxu0 %vm2688_vm1, %v2687_v9  ;;  %1949 = vmatpush3.bf16.msra.mxu0 %v2161_v3 }
 0x6a5   : > { %v1246_v42 = vpack.c.bf16 %v1239_v41, %v1239_v41  ;;  %v1934_v43 = vpop.f32.mrb[17].mxu1  ;;  %1950 = vmatprep.subr.bf16.mxu0 %v2687_v9 }
 0x6a6   : > { %v1242_v44 = vpop.f32.mrb[18].mxu1 }
 0x6a7   : > { %v1935_v45 = vpop.f32.mrb[19].mxu1  ;;  %1945 = vmatmul.mubr.msk.bf16.vlgmr.msra.gmra.mrb[20].mxu1 %vm1033_vm2, %v1246_v42 }
 0x6a8   : > { %1964 = vmatprep.mubr.msk.bf16.mxu1 %vm2688_vm1, %v2687_v9  ;;  %1951 = vmatpush3.bf16.msra.mxu0 %v2162_v4 }
 0x6a9   : > { %1957 = vmatpush3.bf16.msra.mxu1 %v2163_v15 }
 0x6aa   : > { %1958 = vmatprep.subr.bf16.mxu1 %v2687_v9 }
 0x6ad   : > { %1959 = vmatpush3.bf16.msra.mxu1 %v2164_v16 }
 0x6ae   : > { %1960 = vmatprep.subr.bf16.mxu1 %v2687_v9 }
 0x6b1   : > { %1961 = vmatpush3.bf16.msra.mxu1 %v2165_v17 }
 0x6b2   : > { %1962 = vmatprep.subr.bf16.mxu1 %v2687_v9 }
 0x6b5   : > { %1963 = vmatpush3.bf16.msra.mxu1 %v2166_v18 }
 0x776   : > { %v1289_v46 = vpop.f32.mrb[20].mxu0 }
 0x777   : > { %v1940_v47 = vpop.f32.mrb[21].mxu0  ;;  %v1341_v51 = vsel %vm658_vm0, %v1289_v46, 0.0 }
 0x778   : > { %v1292_v48 = vpop.f32.mrb[22].mxu0 }
 0x779   : > { %v1941_v49 = vpop.f32.mrb[23].mxu0 }
 0x77a   : > { %v1335_v50 = vpop.f32.mrb[20].mxu1 }
 0x77b   : > { %v1342_v52 = vsel %vm658_vm0, %v1335_v50, 0.0  ;;  %v1946_v53 = vpop.f32.mrb[21].mxu1 }
 0x77c   : > { %v1343_v54 = vadd.f32 %v1342_v52, %v1341_v51  ;;  %v1338_v55 = vpop.f32.mrb[22].mxu1 }
 0x77d   : > { %v1947_v56 = vpop.f32.mrb[23].mxu1 }
 0x77e   : > { %v1344_v58 = vadd.f32 %v1343_v54, %v3189_v0 }
 0x780   : > { %v1352_v59 = vadd.f32 %v1809_v57, %v1344_v58 }
 0x782   : > { %v1355_v60 = vsel %vm658_vm0, %v1352_v59, 0.0 }
 0x783   : > { %1356 = vadd.xlane.f32.xlu0 %v1355_v60 }
 0x810   : > { %v1357_v61 = vpop.xlane.xlu0 %1356 }
 0x811   : > { %v1358_v62 = vmul.f32 0.03125, %v1357_v61 }
 0x813   : > { %v1359_v63 = vsub.f32 %v1352_v59, %v1358_v62 }
 0x815   : > { %v1360_v1 = vmul.f32 %v1359_v63, %v1359_v63 }
 0x817   : > { %v1361_v2 = vsel %vm658_vm0, %v1360_v1, 0.0 }
 0x818   : > { %1362 = vadd.xlane.f32.xlu1 %v1361_v2 }
 0x8a5   : > { %v1363_v5 = vpop.xlane.xlu1 %1362 }
 0x8a6   : > { %v1364_v6 = vmul.f32 0.03125, %v1363_v5 }
 0x8a8   : > { %v1365_v0 = vadd.f32 1e-05, %v1364_v6 }
 0x8aa   : > { %2177 = vrsqrt.f32 %v1365_v0 }
 0x8b4   : > { %v2178_v7 = vpop.eup %2177 }
 0x8b5   : > { %v1367_v10 = vmul.f32 %v2178_v7, %v1359_v63 }
 0x8b7   : > { %v1374_v12 = vmul.f32 %v1810_v8, %v1367_v10 }
 0x8b9   : > { %v1381_v13 = vadd.f32 %v1811_v11, %v1374_v12 }
 0x8bb   : > { %v1382_v14 = vpack.c.bf16 %v1381_v13, %v1381_v13 }
 0x8bd   : > { %1953 = vmatmul.mubr.msk.bf16.vlgmr.msra.gmra.mrb[24].mxu0 %vm658_vm0, %v1382_v14 }
 0x990   : > { %v1443_v20 = vpop.f32.mrb[24].mxu0 }
 0x991   : > { %v1444_v21 = vadd.f32 %v1812_v19, %v1443_v20  ;;  %v1954_v22 = vpop.f32.mrb[25].mxu0 }
 0x992   : > { %v1446_v23 = vpop.f32.mrb[26].mxu0 }
 0x993   : > { %v1450_v24 = vmul.f32 0.70710677, %v1444_v21  ;;  %v1955_v25 = vpop.f32.mrb[27].mxu0  ;;  %v1449_v27 = vmul.f32 0.5, %v1444_v21 }
 0x995   : > { %2179 = verf.f32 %v1450_v24 }
 0x99f   : > { %v2180_v26 = vpop.eup %2179 }
 0x9a0   : > { %v1452_v28 = vadd.f32 1.0, %v2180_v26 }
 0x9a2   : > { %v1453_v29 = vmul.f32 %v1452_v28, %v1449_v27 }
 0x9a4   : > { %v1454_v30 = vpack.c.bf16 %v1453_v29, %v1453_v29 }
 0x9a6   : > { %1965 = vmatmul.mubr.msk.bf16.vlgmr.msra.gmra.mrb[24].mxu1 %vm1487_vm4, %v1454_v30 }
 0xa79   : > { %v1525_v9 = vpop.f32.mrb[24].mxu1 }
 0xa7a   : > { %v1531_v32 = vadd.f32 %v1525_v9, %v1352_v59  ;;  %v1966_v33 = vpop.f32.mrb[25].mxu1 }
 0xa7b   : > { %v1528_v34 = vpop.f32.mrb[26].mxu1 }
 0xa7c   : > { %v1539_v35 = vadd.f32 %v1821_v31, %v1531_v32  ;;  %v1967_v36 = vpop.f32.mrb[27].mxu1 }
 0xa7e   : > { %1540 = vst.msk [vmem:[%s653_s21] sm:$0xff] %vm658_vm0, %v1539_v35 }
 0xa7f   : > { %2588 = shalt.err (!%p2585_p10)
}
 0xa80   : > { %s2589_s18 = scalar_lea.hbm %s3281_s20, 128  ;;  %s2593_s19 = scalar_lea.hbm %s3394_s1, 256 }
 0xa81   : > { %p2590_p4 = scmp.ne.s32.totalorder %s3281_s20, %s2589_s18  ;;  %p2594_p3 = scmp.lt.u32.totalorder %s3281_s20, %s3394_s1 }
 0xa82   : > { %p2595_p2 = scmp.lt.u32.totalorder %s2593_s19, %s2589_s18  ;;  %p2597_p6 = scmp.lt.u32.totalorder %s2589_s18, %s3281_s20 }
 0xa83   : > { %p2591_p13 = pnand %p2590_p4, %p3395_p11 }
 0xa84   : > { %p2596_p0 = por %p2595_p2, %p2594_p3 }
 0xa85   : > { %p2592_p1 = pneg %p2591_p13 }
 0xa86   : > { %p2598_p12 = por %p2597_p6, %p2596_p0 }
 0xa88   : > { %p2599_p8 = pnand %p2598_p12, %p2592_p1 }
 0xa8a   : > { %2602 = shalt.err (!%p2599_p8)
}
 0xa8b   : > { %2022 = dma.vmem_to_hbm [thread:$0]  (%p3395_p11), %s3283_s24, 128, %s3281_s20, %s1542_s14  }
 0xa8c PF: > { %s1567_s2 = sand.u32 1, %s2657_s29   ;;  %p3396_p5 = scmp.ne.s32.totalorder %s3374_s0, 0 }
 0xa8d   : > { %p3397_p9 = scmp.ge.s32.totalorder %s2669_s16, 2  ;;  %s1568_s28 = scalar_lea.sflag [#allocation4], %s1567_s2 }
 0xa8f   : > { %p2069_p7 = pnand %p3397_p9, %p3396_p5 }
 0xa91   : > { %2652 = dma.done.wait (!%p2069_p7), %s1568_s28, 128  }
 0xa92   : > { %2654 = vsyncadd (!%p2069_p7), %s1568_s28, 4294967168  ;;  %p34_p10 = scmp.ge.s32.totalorder %s3081_s23, 4   ;;  %s3398_s29 = smov %s2661_s30 }
 0xa93   : > { %s3399_s30 = smov %s2665_s15  ;;  %s3400_s15 = smov %s3093_s3 }
 0xa94   : > { %s3401_s16 = smov %s3081_s23  ;;  %36 = sbr.rel (!%p34_p10) target bundleno = 18 (0x12), region = 173 }
 0xa9b   :  { %1573 = vsyncpa [#allocation3], 1 }
 0xa9c   :  { %1575 = vsyncpa [#allocation3 + $0x1], 1 }
 0xa9d   :  { %1576 = vsyncpa [#allocation6], 1 }
 0xa9e   :  { %1577 = vsyncpa [#allocation9], 1 }
 0xa9f   :  { %1578 = vsyncpa [#allocation12], 1 }
 0xaa0   :  { %1579 = vsyncpa [#allocation15], 1 }
 0xaa1   :  { %1580 = vsyncpa [#allocation18], 1 }
 0xaa2   :  { %1581 = vsyncpa [#allocation21], 1 }
 0xaa3   :  { %1582 = vsyncpa [#allocation24], 1 }
 0xaa4   :  { %1583 = vsyncpa [#allocation4], 1 }
 0xaa5   :  { %1585 = vsyncpa [#allocation4 + $0x1], 1 }

// kernel: transformer_forward.3
= control target key start
LH: loop header
LB: loop body
LE: loop exit
PB: predicated region body
PF: predicated region fallthrough
CT: control target
= control target key end

     0   :  { %s3361_s0 = inlined_call_operand.hbm [shape: f32[2,8,32], index: 0, kind: input, shape index: {}]   ;;  %s3362_s1 = inlined_call_operand.hbm [shape: f32[1,32], index: 1, kind: input, shape index: {}]   ;;  %s3363_s2 = inlined_call_operand.hbm [shape: f32[1,32], index: 2, kind: input, shape index: {}]   ;;  %s3364_s3 = inlined_call_operand.hbm [shape: bf16[3,2,32,8], index: 3, kind: input, shape index: {}]   ;;  %s3365_s4 = inlined_call_operand.hbm [shape: bf16[2,8,32], index: 4, kind: input, shape index: {}]   ;;  %s3366_s5 = inlined_call_operand.hbm [shape: f32[1,32], index: 5, kind: input, shape index: {}]   ;;  %s3367_s6 = inlined_call_operand.hbm [shape: f32[1,32], index: 6, kind: input, shape index: {}]   ;;  %s3368_s7 = inlined_call_operand.hbm [shape: f32[1,32], index: 7, kind: input, shape index: {}]   ;;  %s3369_s8 = inlined_call_operand.hbm [shape: bf16[32,64], index: 8, kind: input, shape index: {}]   ;;  %s3370_s9 = inlined_call_operand.hbm [shape: f32[1,64], index: 9, kind: input, shape index: {}]   ;;  %s3371_s10 = inlined_call_operand.hbm [shape: bf16[64,32], index: 10, kind: input, shape index: {}]   ;;  %s3372_s11 = inlined_call_operand.hbm [shape: f32[1,32], index: 11, kind: input, shape index: {}]   ;;  %s3373_s12 = inlined_call_operand.hbm [shape: f32[1,32], index: 12, kind: input, shape index: {}]   ;;  %s3374_s13 = inlined_call_operand.hbm [shape: f32[1,32], index: 13, kind: input, shape index: {}]   ;;  %s3375_s14 = inlined_call_operand.hbm [shape: f32[2,8,32], index: 14, kind: output, shape index: {}]  }
   0x1   :  { %3390 = sst [smem:[#allocation37_spill]] %s3361_s0 }
   0x2   :  { %3391 = sst [smem:[#allocation38_spill]] %s3362_s1 }
   0x3   :  { %3392 = sst [smem:[#allocation39_spill]] %s3363_s2 }
   0x4   :  { %3393 = sst [smem:[#allocation40_spill]] %s3364_s3 }
   0x5   :  { %3394 = sst [smem:[#allocation41_spill]] %s3375_s14 }
   0x6   :  { %19 = vsyncpa [#allocation3], 0 }
   0x7   :  { %21 = vsyncpa [#allocation3 + $0x1], 0 }
   0x8   :  { %22 = vsyncpa [#allocation6], 0 }
   0x9   :  { %23 = vsyncpa [#allocation9], 0 }
   0xa   :  { %24 = vsyncpa [#allocation12], 0 }
   0xb   :  { %25 = vsyncpa [#allocation15], 0 }
   0xc   :  { %26 = vsyncpa [#allocation18], 0 }
   0xd   :  { %27 = vsyncpa [#allocation21], 0 }
   0xe   :  { %28 = vsyncpa [#allocation24], 0 }
   0xf   :  { %29 = vsyncpa [#allocation4], 0 }
  0x10   :  { %31 = vsyncpa [#allocation4 + $0x1], 0  ;;  %s2798_s29 = smov 0   ;;  %s2800_s30 = smov 0  }
  0x11   :  { %s2802_s15 = smov 0   ;;  %s2804_s16 = smov 0  }
  0x12 LB: > { %s2704_s17 = smov [#allocation5]   ;;  %s2819_s19 = sadd.s32 4294967295, %s2702_s16   ;;  %s2702_s16 = sphi %s2804_s16, %s3436_s16   ;;  %s2698_s15 = sphi %s2802_s15, %s3435_s15   ;;  %s2694_s30 = sphi %s2800_s30, %s3434_s30   ;;  %s2690_s29 = sphi %s2798_s29, %s3433_s29  }
  0x13   : > { %s380_s18 = sshll.u32 %s2704_s17, 4  ;;  %3395 = sst [smem:[#allocation35_spill]] %s2819_s19  ;;  %s2824_s18 = int_to_ptr.vmem [resolvable:$true] %s380_s18 }
  0x14   : > { %p1779_p0 = scmp.ge.s32.totalorder %s2702_s16, 1  ;;  %p3386_p1 = scmp.eq.s32.totalorder %s2819_s19, 0 }
  0x15   : > { %p367_p2 = scmp.lt.s32.totalorder %s2702_s16, 3  ;;  %s2705_s21 = smov [#allocation8]  }
  0x16   : > { %s401_s22 = sshll.u32 %s2705_s21, 4  ;;  %s2706_s24 = smov [#allocation11]   ;;  %s2833_s22 = int_to_ptr.vmem [resolvable:$true] %s401_s22 }
  0x17   : > { %p2826_p3 = pnand %p1779_p0, %p367_p2  ;;  %s428_s25 = sshll.u32 %s2706_s24, 4  ;;  %s2841_s25 = int_to_ptr.vmem [resolvable:$true] %s428_s25 }
  0x18   : > { %s3399_s1 = sld [smem:[#allocation38_spill]] }
  0x19   : > { %s3396_s20 = scalar_select %p2826_p3, 1, 0 }
  0x1a   : > { %p2055_p5 = pneg %p2826_p3 }
  0x1b   : > { %3397 = sst [smem:[#allocation36_spill]] %s3396_s20 }
  0x1c   : > { %p2837_p6 = pnand %p2055_p5, %p3386_p1 }
  0x1e   : > { %s2214_s28 = scalar_lea.hbm %s3399_s1, 16  ;;  %p2851_p8 = pneg %p2837_p6 }
  0x1f   : > { %p2215_p7 = scmp.ne.s32.totalorder %s3399_s1, %s2214_s28  ;;  %p2221_p11 = scmp.lt.u32.totalorder %s2214_s28, %s3399_s1 }
  0x21   : > { %p2217_p9 = pnand %p2851_p8, %p2215_p7 }
  0x23   : > { %p2218_p10 = pneg %p2217_p9 }
  0x25   : > { %p2223_p12 = pnand %p2221_p11, %p2218_p10 }
  0x27   : > { %2226 = shalt.err (!%p2223_p12)
}
  0x28   : > { %s2227_s14 = scalar_lea.vmem %s2824_s18, 16  ;;  %s2234_s26 = scalar_lea.vmem %s2824_s18, 32 }
  0x29   : > { %p2228_p13 = scmp.ne.s32.totalorder %s2824_s18, %s2227_s14  ;;  %p2235_p5 = scmp.lt.s32.totalorder %s2824_s18, %s2824_s18 }
  0x2a   : > { %p2236_p7 = scmp.lt.s32.totalorder %s2234_s26, %s2227_s14 }
  0x2b   : > { %p2230_p0 = pnand %p2228_p13, %p2851_p8 }
  0x2c   : > { %p2237_p9 = por %p2236_p7, %p2235_p5 }
  0x2d   : > { %p2231_p2 = pneg %p2230_p0 }
  0x2f   : > { %p2238_p4 = pnand %p2237_p9, %p2231_p2 }
  0x31   : > { %2241 = shalt.err (!%p2238_p4)
}
  0x32   : > { %2058 = dma.hbm_to_vmem [thread:$0]  (!%p2837_p6), %s3399_s1, 16, %s2824_s18, [#allocation6]  }
  0x33   : > { %s3401_s3 = sld [smem:[#allocation40_spill]] }
  0x39   : > { %s2242_s24 = scalar_lea.hbm %s3401_s3, 1536 }
  0x3a   : > { %p2243_p10 = scmp.ne.s32.totalorder %s3401_s3, %s2242_s24  ;;  %p2249_p4 = scmp.lt.u32.totalorder %s2242_s24, %s3401_s3 }
  0x3c   : > { %p2245_p11 = pnand %p2243_p10, %p2851_p8 }
  0x3e   : > { %p2246_p12 = pneg %p2245_p11 }
  0x40   : > { %p2251_p13 = pnand %p2249_p4, %p2246_p12 }
  0x42   : > { %2254 = shalt.err (!%p2251_p13)
}
  0x43   : > { %s2255_s18 = scalar_lea.vmem %s2833_s22, 1536  ;;  %p2263_p7 = scmp.lt.s32.totalorder %s2833_s22, %s2833_s22 }
  0x44   : > { %p2256_p0 = scmp.ne.s32.totalorder %s2833_s22, %s2255_s18  ;;  %p2264_p9 = scmp.lt.s32.totalorder %s2255_s18, %s2255_s18 }
  0x46   : > { %p2258_p2 = pnand %p2256_p0, %p2851_p8  ;;  %p2265_p10 = por %p2264_p9, %p2263_p7 }
  0x48   : > { %p2259_p5 = pneg %p2258_p2 }
  0x4a   : > { %p2266_p11 = pnand %p2265_p10, %p2259_p5 }
  0x4c   : > { %2269 = shalt.err (!%p2266_p11)
}
  0x4d   : > { %s3382_s0 = smov 64   ;;  %s3384_s19 = smov 4  }
  0x4e   : > { %2064 = dma.hbm_to_vmem [thread:$0]  (!%p2837_p6), %s3401_s3, 1536, %s2833_s22, [#allocation9], %s3382_s0, %s3382_s0, %s3384_s19  }
  0x4f   : > { %s2270_s24 = scalar_lea.hbm %s3366_s5, 16 }
  0x50   : > { %p2271_p12 = scmp.ne.s32.totalorder %s3366_s5, %s2270_s24  ;;  %p2277_p0 = scmp.lt.u32.totalorder %s2270_s24, %s3366_s5 }
  0x52   : > { %p2273_p4 = pnand %p2271_p12, %p2851_p8 }
  0x54   : > { %p2274_p13 = pneg %p2273_p4 }
  0x56   : > { %p2279_p2 = pnand %p2277_p0, %p2274_p13 }
  0x58   : > { %2282 = shalt.err (!%p2279_p2)
}
  0x59   : > { %s2283_s22 = scalar_lea.vmem %s2841_s25, 16  ;;  %s2290_s20 = scalar_lea.vmem %s2841_s25, 32 }
  0x5a   : > { %p2284_p5 = scmp.ne.s32.totalorder %s2841_s25, %s2283_s22  ;;  %p2291_p10 = scmp.lt.s32.totalorder %s2841_s25, %s2841_s25 }
  0x5b   : > { %p2292_p11 = scmp.lt.s32.totalorder %s2290_s20, %s2283_s22 }
  0x5c   : > { %p2286_p7 = pnand %p2284_p5, %p2851_p8 }
  0x5d   : > { %p2293_p12 = por %p2292_p11, %p2291_p10 }
  0x5e   : > { %p2287_p9 = pneg %p2286_p7 }
  0x60   : > { %p2294_p4 = pnand %p2293_p12, %p2287_p9 }
  0x62   : > { %2297 = shalt.err (!%p2294_p4)
}
  0x63   : > { %2070 = dma.hbm_to_vmem [thread:$0]  (!%p2837_p6), %s3366_s5, 16, %s2841_s25, [#allocation12]  }
  0x64   : > { %s2709_s28 = smov [#allocation14]   ;;  %s2710_s24 = smov [#allocation17]  }
  0x65   : > { %s450_s17 = sshll.u32 %s2709_s28, 4  ;;  %s474_s14 = sshll.u32 %s2710_s24, 4  ;;  %s451_s17 = int_to_ptr.vmem [resolvable:$true] %s450_s17  ;;  %s475_s14 = int_to_ptr.vmem [resolvable:$true] %s474_s14 }
  0x66   : > { %s2298_s22 = scalar_lea.hbm %s3368_s7, 16 }
  0x67   : > { %p2299_p13 = scmp.ne.s32.totalorder %s3368_s7, %s2298_s22  ;;  %p2305_p5 = scmp.lt.u32.totalorder %s2298_s22, %s3368_s7 }
  0x69   : > { %p2301_p0 = pnand %p2299_p13, %p2851_p8 }
  0x6b   : > { %p2302_p2 = pneg %p2301_p0 }
  0x6d   : > { %p2307_p7 = pnand %p2305_p5, %p2302_p2 }
  0x6f   : > { %2310 = shalt.err (!%p2307_p7)
}
  0x70   : > { %s2311_s25 = scalar_lea.vmem %s451_s17, 16  ;;  %s2318_s27 = scalar_lea.vmem %s451_s17, 32 }
  0x71   : > { %p2312_p9 = scmp.ne.s32.totalorder %s451_s17, %s2311_s25  ;;  %p2319_p12 = scmp.lt.s32.totalorder %s451_s17, %s451_s17 }
  0x72   : > { %p2320_p4 = scmp.lt.s32.totalorder %s2318_s27, %s2311_s25 }
  0x73   : > { %p2314_p10 = pnand %p2312_p9, %p2851_p8 }
  0x74   : > { %p2321_p1 = por %p2320_p4, %p2319_p12 }
  0x75   : > { %p2315_p11 = pneg %p2314_p10 }
  0x77   : > { %p2322_p3 = pnand %p2321_p1, %p2315_p11 }
  0x79   : > { %2325 = shalt.err (!%p2322_p3)
}
  0x7a   : > { %2076 = dma.hbm_to_vmem [thread:$0]  (!%p2837_p6), %s3368_s7, 16, %s451_s17, [#allocation15]  }
  0x7b   : > { %s2326_s26 = scalar_lea.hbm %s3370_s9, 16 }
  0x7c   : > { %p2327_p13 = scmp.ne.s32.totalorder %s3370_s9, %s2326_s26  ;;  %p2333_p3 = scmp.lt.u32.totalorder %s2326_s26, %s3370_s9 }
  0x7e   : > { %p2329_p0 = pnand %p2327_p13, %p2851_p8 }
  0x80   : > { %p2330_p1 = pneg %p2329_p0 }
  0x82   : > { %p2335_p2 = pnand %p2333_p3, %p2330_p1 }
  0x84   : > { %2338 = shalt.err (!%p2335_p2)
}
  0x85   : > { %s2339_s25 = scalar_lea.vmem %s475_s14, 16  ;;  %s2346_s17 = scalar_lea.vmem %s475_s14, 32 }
  0x86   : > { %p2340_p5 = scmp.ne.s32.totalorder %s475_s14, %s2339_s25  ;;  %p2347_p10 = scmp.lt.s32.totalorder %s475_s14, %s475_s14 }
  0x87   : > { %p2348_p11 = scmp.lt.s32.totalorder %s2346_s17, %s2339_s25 }
  0x88   : > { %p2342_p7 = pnand %p2340_p5, %p2851_p8 }
  0x89   : > { %p2349_p12 = por %p2348_p11, %p2347_p10 }
  0x8a   : > { %p2343_p9 = pneg %p2342_p7 }
  0x8c   : > { %p2350_p4 = pnand %p2349_p12, %p2343_p9 }
  0x8e   : > { %2353 = shalt.err (!%p2350_p4)
}
  0x8f   : > { %2082 = dma.hbm_to_vmem [thread:$0]  (!%p2837_p6), %s3370_s9, 16, %s475_s14, [#allocation18]  }
  0x90   : > { %s2711_s28 = smov [#allocation20]   ;;  %s2712_s24 = smov [#allocation7]  }
  0x91   : > { %s498_s19 = sshll.u32 %s2711_s28, 4  ;;  %s391_s26 = sshll.u32 %s2712_s24, 4  ;;  %s499_s19 = int_to_ptr.vmem [resolvable:$true] %s498_s19  ;;  %s392_s26 = int_to_ptr.vmem [resolvable:$true] %s391_s26 }
  0x92   : > { %s2354_s20 = scalar_lea.hbm %s3372_s11, 16 }
  0x93   : > { %p2355_p13 = scmp.ne.s32.totalorder %s3372_s11, %s2354_s20  ;;  %p2361_p3 = scmp.lt.u32.totalorder %s2354_s20, %s3372_s11 }
  0x95   : > { %p2357_p0 = pnand %p2355_p13, %p2851_p8 }
  0x97   : > { %p2358_p1 = pneg %p2357_p0 }
  0x99   : > { %p2363_p2 = pnand %p2361_p3, %p2358_p1 }
  0x9b   : > { %2366 = shalt.err (!%p2363_p2)
}
  0x9c   : > { %s2367_s14 = scalar_lea.vmem %s499_s19, 16  ;;  %s2374_s0 = scalar_lea.vmem %s499_s19, 32 }
  0x9d   : > { %p2368_p5 = scmp.ne.s32.totalorder %s499_s19, %s2367_s14  ;;  %p2375_p10 = scmp.lt.s32.totalorder %s499_s19, %s499_s19 }
  0x9e   : > { %p2376_p11 = scmp.lt.s32.totalorder %s2374_s0, %s2367_s14 }
  0x9f   : > { %p2370_p7 = pnand %p2368_p5, %p2851_p8 }
  0xa0   : > { %p2377_p12 = por %p2376_p11, %p2375_p10 }
  0xa1   : > { %p2371_p9 = pneg %p2370_p7 }
  0xa3   : > { %p2378_p4 = pnand %p2377_p12, %p2371_p9 }
  0xa5   : > { %2381 = shalt.err (!%p2378_p4)
}
  0xa6   : > { %2088 = dma.hbm_to_vmem [thread:$0]  (!%p2837_p6), %s3372_s11, 16, %s499_s19, [#allocation21]  }
  0xa7   : > { %s3402_s2 = sld [smem:[#allocation39_spill]] }
  0xad   : > { %s2382_s20 = scalar_lea.hbm %s3402_s2, 16 }
  0xae   : > { %p2383_p13 = scmp.ne.s32.totalorder %s3402_s2, %s2382_s20  ;;  %p2389_p3 = scmp.lt.u32.totalorder %s2382_s20, %s3402_s2 }
  0xb0   : > { %p2385_p0 = pnand %p2383_p13, %p2851_p8 }
  0xb2   : > { %p2386_p1 = pneg %p2385_p0 }
  0xb4   : > { %p2391_p2 = pnand %p2389_p3, %p2386_p1 }
  0xb6   : > { %2394 = shalt.err (!%p2391_p2)
}
  0xb7   : > { %s2395_s14 = scalar_lea.vmem %s392_s26, 16  ;;  %s2402_s19 = scalar_lea.vmem %s392_s26, 32 }
  0xb8   : > { %p2396_p5 = scmp.ne.s32.totalorder %s392_s26, %s2395_s14  ;;  %p2403_p10 = scmp.lt.s32.totalorder %s392_s26, %s392_s26 }
  0xb9   : > { %p2404_p11 = scmp.lt.s32.totalorder %s2402_s19, %s2395_s14 }
  0xba   : > { %p2398_p7 = pnand %p2396_p5, %p2851_p8 }
  0xbb   : > { %p2405_p12 = por %p2404_p11, %p2403_p10 }
  0xbc   : > { %p2399_p9 = pneg %p2398_p7 }
  0xbe   : > { %p2406_p4 = pnand %p2405_p12, %p2399_p9 }
  0xc0   : > { %2409 = shalt.err (!%p2406_p4)
}
  0xc1   : > { %2061 = dma.hbm_to_vmem [thread:$0]  (!%p2837_p6), %s3402_s2, 16, %s392_s26, [#allocation6]  }
  0xc2   : > { %s2713_s24 = smov [#allocation10]   ;;  %s2714_s22 = smov [#allocation13]  }
  0xc3   : > { %s414_s18 = sshll.u32 %s2713_s24, 4  ;;  %s439_s20 = sshll.u32 %s2714_s22, 4  ;;  %s415_s18 = int_to_ptr.vmem [resolvable:$true] %s414_s18  ;;  %s440_s20 = int_to_ptr.vmem [resolvable:$true] %s439_s20 }
  0xc4   : > { %s2410_s17 = scalar_lea.hbm %s3365_s4, 128 }
  0xc5   : > { %p2411_p13 = scmp.ne.s32.totalorder %s3365_s4, %s2410_s17  ;;  %p2417_p3 = scmp.lt.u32.totalorder %s2410_s17, %s3365_s4 }
  0xc7   : > { %p2413_p0 = pnand %p2411_p13, %p2851_p8 }
  0xc9   : > { %p2414_p1 = pneg %p2413_p0 }
  0xcb   : > { %p2419_p2 = pnand %p2417_p3, %p2414_p1 }
  0xcd   : > { %2422 = shalt.err (!%p2419_p2)
}
  0xce   : > { %s2423_s26 = scalar_lea.vmem %s415_s18, 128  ;;  %p2431_p10 = scmp.lt.s32.totalorder %s415_s18, %s415_s18 }
  0xcf   : > { %p2424_p5 = scmp.ne.s32.totalorder %s415_s18, %s2423_s26  ;;  %p2432_p11 = scmp.lt.s32.totalorder %s2423_s26, %s2423_s26 }
  0xd1   : > { %p2426_p7 = pnand %p2424_p5, %p2851_p8  ;;  %p2433_p12 = por %p2432_p11, %p2431_p10 }
  0xd3   : > { %p2427_p9 = pneg %p2426_p7 }
  0xd5   : > { %p2434_p4 = pnand %p2433_p12, %p2427_p9 }
  0xd7   : > { %2437 = shalt.err (!%p2434_p4)
}
  0xd8   : > { %s3403_s28 = smov 4   ;;  %s3404_s24 = smov 64  }
  0xd9   : > { %2067 = dma.hbm_to_vmem [thread:$0]  (!%p2837_p6), %s3365_s4, 128, %s415_s18, [#allocation9], %s3404_s24, %s3404_s24, %s3403_s28  }
  0xda   : > { %s2438_s27 = scalar_lea.hbm %s3367_s6, 16 }
  0xdb   : > { %p2439_p13 = scmp.ne.s32.totalorder %s3367_s6, %s2438_s27  ;;  %p2445_p3 = scmp.lt.u32.totalorder %s2438_s27, %s3367_s6 }
  0xdd   : > { %p2441_p0 = pnand %p2439_p13, %p2851_p8 }
  0xdf   : > { %p2442_p1 = pneg %p2441_p0 }
  0xe1   : > { %p2447_p2 = pnand %p2445_p3, %p2442_p1 }
  0xe3   : > { %2450 = shalt.err (!%p2447_p2)
}
  0xe4   : > { %s2451_s22 = scalar_lea.vmem %s440_s20, 16  ;;  %s2458_s18 = scalar_lea.vmem %s440_s20, 32 }
  0xe5   : > { %p2452_p5 = scmp.ne.s32.totalorder %s440_s20, %s2451_s22  ;;  %p2459_p10 = scmp.lt.s32.totalorder %s440_s20, %s440_s20 }
  0xe6   : > { %p2460_p11 = scmp.lt.s32.totalorder %s2458_s18, %s2451_s22 }
  0xe7   : > { %p2454_p7 = pnand %p2452_p5, %p2851_p8 }
  0xe8   : > { %p2461_p12 = por %p2460_p11, %p2459_p10 }
  0xe9   : > { %p2455_p9 = pneg %p2454_p7 }
  0xeb   : > { %p2462_p4 = pnand %p2461_p12, %p2455_p9 }
  0xed   : > { %2465 = shalt.err (!%p2462_p4)
}
  0xee   : > { %2073 = dma.hbm_to_vmem [thread:$0]  (!%p2837_p6), %s3367_s6, 16, %s440_s20, [#allocation12]  }
  0xef   : > { %s2715_s17 = smov [#allocation16]   ;;  %s2716_s14 = smov [#allocation19]  }
  0xf0   : > { %s460_s27 = sshll.u32 %s2715_s17, 4  ;;  %s484_s19 = sshll.u32 %s2716_s14, 4  ;;  %s461_s27 = int_to_ptr.vmem [resolvable:$true] %s460_s27  ;;  %s485_s19 = int_to_ptr.vmem [resolvable:$true] %s484_s19 }
  0xf1   : > { %s2466_s2 = scalar_lea.hbm %s3369_s8, 256 }
  0xf2   : > { %p2467_p13 = scmp.ne.s32.totalorder %s3369_s8, %s2466_s2  ;;  %p2473_p3 = scmp.lt.u32.totalorder %s2466_s2, %s3369_s8 }
  0xf4   : > { %p2469_p0 = pnand %p2467_p13, %p2851_p8 }
  0xf6   : > { %p2470_p1 = pneg %p2469_p0 }
  0xf8   : > { %p2475_p2 = pnand %p2473_p3, %p2470_p1 }
  0xfa   : > { %2478 = shalt.err (!%p2475_p2)
}
  0xfb   : > { %s2479_s20 = scalar_lea.vmem %s461_s27, 256  ;;  %p2487_p10 = scmp.lt.s32.totalorder %s461_s27, %s461_s27 }
  0xfc   : > { %p2480_p5 = scmp.ne.s32.totalorder %s461_s27, %s2479_s20  ;;  %p2488_p11 = scmp.lt.s32.totalorder %s2479_s20, %s2479_s20 }
  0xfe   : > { %p2482_p7 = pnand %p2480_p5, %p2851_p8  ;;  %p2489_p12 = por %p2488_p11, %p2487_p10 }
 0x100   : > { %p2483_p9 = pneg %p2482_p7 }
 0x102   : > { %p2490_p4 = pnand %p2489_p12, %p2483_p9 }
 0x104   : > { %2493 = shalt.err (!%p2490_p4)
}
 0x105   : > { %2079 = dma.hbm_to_vmem [thread:$0]  (!%p2837_p6), %s3369_s8, 256, %s461_s27, [#allocation15], %s3404_s24, %s3404_s24, %s3403_s28  }
 0x106   : > { %s2494_s14 = scalar_lea.hbm %s3371_s10, 512 }
 0x107   : > { %p2495_p13 = scmp.ne.s32.totalorder %s3371_s10, %s2494_s14  ;;  %p2501_p3 = scmp.lt.u32.totalorder %s2494_s14, %s3371_s10 }
 0x109   : > { %p2497_p0 = pnand %p2495_p13, %p2851_p8 }
 0x10b   : > { %p2498_p1 = pneg %p2497_p0 }
 0x10d   : > { %p2503_p2 = pnand %p2501_p3, %p2498_p1 }
 0x10f   : > { %2506 = shalt.err (!%p2503_p2)
}
 0x110   : > { %s2507_s1 = scalar_lea.vmem %s485_s19, 512  ;;  %p2515_p10 = scmp.lt.s32.totalorder %s485_s19, %s485_s19 }
 0x111   : > { %p2508_p5 = scmp.ne.s32.totalorder %s485_s19, %s2507_s1  ;;  %p2516_p11 = scmp.lt.s32.totalorder %s2507_s1, %s2507_s1 }
 0x113   : > { %p2510_p7 = pnand %p2508_p5, %p2851_p8  ;;  %p2517_p12 = por %p2516_p11, %p2515_p10 }
 0x115   : > { %p2511_p9 = pneg %p2510_p7 }
 0x117   : > { %p2518_p4 = pnand %p2517_p12, %p2511_p9 }
 0x119   : > { %2521 = shalt.err (!%p2518_p4)
}
 0x11a   : > { %2085 = dma.hbm_to_vmem [thread:$0]  (!%p2837_p6), %s3371_s10, 512, %s485_s19, [#allocation18], %s3404_s24, %s3404_s24, %s3403_s28  }
 0x11b   : > { %s2717_s3 = smov [#allocation22]   ;;  %s2718_s25 = smov [#allocation23]  }
 0x11c   : > { %s509_s2 = sshll.u32 %s2717_s3, 4  ;;  %s520_s17 = sshll.u32 %s2718_s25, 4  ;;  %s510_s2 = int_to_ptr.vmem [resolvable:$true] %s509_s2  ;;  %s521_s17 = int_to_ptr.vmem [resolvable:$true] %s520_s17 }
 0x11d   : > { %s2522_s26 = scalar_lea.hbm %s3373_s12, 16 }
 0x11e   : > { %p2523_p13 = scmp.ne.s32.totalorder %s3373_s12, %s2522_s26  ;;  %p2529_p3 = scmp.lt.u32.totalorder %s2522_s26, %s3373_s12 }
 0x120   : > { %p2525_p0 = pnand %p2523_p13, %p2851_p8 }
 0x122   : > { %p2526_p1 = pneg %p2525_p0 }
 0x124   : > { %p2531_p2 = pnand %p2529_p3, %p2526_p1 }
 0x126   : > { %2534 = shalt.err (!%p2531_p2)
}
 0x127   : > { %s2535_s28 = scalar_lea.vmem %s510_s2, 16  ;;  %s2542_s24 = scalar_lea.vmem %s510_s2, 32 }
 0x128   : > { %p2536_p5 = scmp.ne.s32.totalorder %s510_s2, %s2535_s28  ;;  %p2543_p10 = scmp.lt.s32.totalorder %s510_s2, %s510_s2 }
 0x129   : > { %p2544_p11 = scmp.lt.s32.totalorder %s2542_s24, %s2535_s28 }
 0x12a   : > { %p2538_p7 = pnand %p2536_p5, %p2851_p8 }
 0x12b   : > { %p2545_p12 = por %p2544_p11, %p2543_p10 }
 0x12c   : > { %p2539_p9 = pneg %p2538_p7 }
 0x12e   : > { %p2546_p4 = pnand %p2545_p12, %p2539_p9 }
 0x130   : > { %2549 = shalt.err (!%p2546_p4)
}
 0x131   : > { %2091 = dma.hbm_to_vmem [thread:$0]  (!%p2837_p6), %s3373_s12, 16, %s510_s2, [#allocation21]  }
 0x132   : > { %s2550_s14 = scalar_lea.hbm %s3374_s13, 16 }
 0x133   : > { %p2551_p13 = scmp.ne.s32.totalorder %s3374_s13, %s2550_s14  ;;  %p2557_p3 = scmp.lt.u32.totalorder %s2550_s14, %s3374_s13 }
 0x135   : > { %p2553_p0 = pnand %p2551_p13, %p2851_p8 }
 0x137   : > { %p2554_p1 = pneg %p2553_p0 }
 0x139   : > { %p2559_p2 = pnand %p2557_p3, %p2554_p1 }
 0x13b   : > { %2562 = shalt.err (!%p2559_p2)
}
 0x13c   : > { %s2563_s1 = scalar_lea.vmem %s521_s17, 16  ;;  %s2570_s2 = scalar_lea.vmem %s521_s17, 32 }
 0x13d   : > { %p2564_p5 = scmp.ne.s32.totalorder %s521_s17, %s2563_s1  ;;  %p2571_p10 = scmp.lt.s32.totalorder %s521_s17, %s521_s17 }
 0x13e   : > { %p2572_p11 = scmp.lt.s32.totalorder %s2570_s2, %s2563_s1 }
 0x13f   : > { %p2566_p7 = pnand %p2564_p5, %p2851_p8 }
 0x140   : > { %p2573_p12 = por %p2572_p11, %p2571_p10 }
 0x141   : > { %p2567_p9 = pneg %p2566_p7 }
 0x143   : > { %p2574_p4 = pnand %p2573_p12, %p2567_p9 }
 0x145   : > { %2577 = shalt.err (!%p2574_p4)
}
 0x146   : > { %s3405_s21 = sld [smem:[#allocation35_spill]]  ;;  %s1778_s24 = sadd.s32 4294967294, %s2702_s16  }
 0x147   : > { %2094 = dma.hbm_to_vmem [thread:$0]  (!%p2837_p6), %s3374_s13, 16, %s521_s17, [#allocation24]  }
 0x148   : > { %s3114_s23 = sadd.s32 1, %s2702_s16   ;;  %s44_s19 = sadd.s32 1, %s2698_s15 }
 0x149   : > { %s41_s20 = ssub.s32 %s2702_s16, %s3114_s23  ;;  %p51_p8 = scmp.ne.s32.totalorder %s2698_s15, %s2694_s30 }
 0x14a   : > { %p42_p13 = scmp.eq.s32.totalorder %s41_s20, 0  ;;  %p52_p0 = scmp.eq.s32.totalorder %s2702_s16, 0 }
 0x14b   : > { %p57_p1 = scmp.ne.s32.totalorder %s2694_s30, %s2690_s29  ;;  %p360_p9 = scmp.eq.s32.totalorder %s1778_s24, 1 }
 0x14c   : > { %p354_p3 = scmp.eq.s32.totalorder %s3405_s21, 1  ;;  %p53_p2 = por %p52_p0, %p51_p8 }
 0x14d   : > { %s3126_s3 = scalar_select %p42_p13, %s2698_s15, %s44_s19  }
 0x14e   : > { %p3406_p5 = scmp.eq.s32.totalorder %s3405_s21, 0  ;;  %p3134_p6 = por %p354_p3, %p51_p8 }
 0x14f   : > { %p2116_p10 = scmp.lt.s32.totalorder %s2702_s16, 2  ;;  %s531_s14 = sand.u32 1, %s2698_s15  }
 0x150   : > { %p3130_p7 = por %p3406_p5, %p57_p1  ;;  %p3140_p11 = por %p360_p9, %p57_p1 }
 0x151   : > { %s3408_s17 = scalar_select %p3134_p6, 1, 0 }
 0x152   : > { %s3409_s0 = scalar_select %p3140_p11, 1, 0 }
 0x153   : > { %s1794_s26 = sshll.u32 %s531_s14, 3  ;;  %s1795_s22 = sshll.u32 %s2702_s16, 7 }
 0x154   : > { %s3410_s2 = sld [smem:[#allocation37_spill]]  ;;  %s535_s28 = scalar_lea.vmem [#allocation2], %s1794_s26 }
 0x155   : > { %s542_s21 = sshll.u32 %s535_s28, 4  ;;  %p3150_p12 = pnand %p2116_p10, %p53_p2  ;;  %s3154_s21 = int_to_ptr.vmem [resolvable:$true] %s542_s21 }
 0x156   : > { %s532_s19 = scalar_lea.sflag [#allocation3], %s531_s14 }
 0x157   : > { %p2580_p8 = pneg %p3150_p12 }
 0x15a   : > { %s3148_s27 = scalar_lea.hbm %s3410_s2, %s1795_s22  ;;  %s2583_s18 = scalar_lea.hbm %s3410_s2, 256 }
 0x15b   : > { %s2578_s20 = scalar_lea.hbm %s3148_s27, 128  ;;  %p2584_p1 = scmp.lt.u32.totalorder %s3148_s27, %s3410_s2 }
 0x15c   : > { %p2579_p4 = scmp.ne.s32.totalorder %s3148_s27, %s2578_s20  ;;  %p2585_p3 = scmp.lt.u32.totalorder %s2583_s18, %s2578_s20 }
 0x15d   : > { %p2587_p5 = scmp.lt.u32.totalorder %s2578_s20, %s3148_s27 }
 0x15e   : > { %p2581_p13 = pnand %p2580_p8, %p2579_p4  ;;  %p2586_p2 = por %p2585_p3, %p2584_p1 }
 0x160   : > { %p2582_p0 = pneg %p2581_p13  ;;  %p2588_p9 = por %p2587_p5, %p2586_p2 }
 0x162   : > { %p2589_p10 = pnand %p2588_p9, %p2582_p0 }
 0x164   : > { %2592 = shalt.err (!%p2589_p10)
}
 0x165   : > { %s2593_s14 = scalar_lea.vmem %s3154_s21, 128  ;;  %s2719_s22 = smov [#allocation2]  }
 0x166   : > { %p2594_p4 = scmp.ne.s32.totalorder %s3154_s21, %s2593_s14  ;;  %s2598_s26 = sshll.u32 %s2719_s22, 4  ;;  %s2599_s26 = int_to_ptr.vmem [resolvable:$false] %s2598_s26 }
 0x167   : > { %s2600_s1 = scalar_lea.vmem %s2599_s26, 256  ;;  %p2601_p6 = scmp.lt.s32.totalorder %s3154_s21, %s2599_s26 }
 0x168   : > { %p2596_p13 = pnand %p2594_p4, %p2580_p8  ;;  %p2602_p1 = scmp.lt.s32.totalorder %s2600_s1, %s2593_s14 }
 0x16a   : > { %p2597_p11 = pneg %p2596_p13  ;;  %p2603_p3 = por %p2602_p1, %p2601_p6 }
 0x16c   : > { %p2604_p2 = pnand %p2603_p3, %p2597_p11 }
 0x16e   : > { %2607 = shalt.err (!%p2604_p2)
}
 0x16f   : > { %2098 = dma.hbm_to_vmem [thread:$0]  (!%p3150_p12), %s3148_s27, 128, %s3154_s21, %s532_s19  }
 0x170   : > { %s3412_s20 = sld [smem:[#allocation36_spill]] }
 0x176   : > { %p3413_p0 = scmp.ne.s32.totalorder %s3412_s20, 0 }
 0x177   : > { %s3184_s18 = sand.u32 (!%p3413_p0), 1, %s2694_s30  }
 0x178   : > { %551 = sbr.rel (%p3413_p0) target bundleno = 3013 (0xbc5), region = 76  ;;  %s1797_s28 = sshll.u32 (!%p3413_p0), %s3184_s18, 3 }
 0x179   : > { %s554_s14 = scalar_lea.sflag (!%p3413_p0), [#allocation3], %s3184_s18  ;;  %s557_s22 = scalar_lea.vmem (!%p3413_p0), [#allocation2], %s1797_s28 }
 0x17f   : > { %2653 = dma.done.wait (%p3130_p7), %s554_s14, 128  }
 0x180   : > { %2655 = vsyncadd (%p3130_p7), %s554_s14, 4294967168  ;;  %s3414_s27 = sld [smem:[#allocation35_spill]] }
 0x186   : > { %p3415_p6 = scmp.eq.s32.totalorder %s3414_s27, 0 }
 0x188   : > { %2657 = dma.done.wait (%p3415_p6), [#allocation6], 32   ;;  %p3416_p11 = pmov %p3415_p6 }
 0x189   : > { %p3417_p12 = pmov %p3415_p6 }
 0x18a   : > { %2659 = vsyncadd (%p3416_p11), [#allocation6], 4294967264 }
 0x18b   : > { %2661 = dma.done.wait (%p3417_p12), [#allocation9], 1664   ;;  %p3418_p8 = pmov %p3415_p6 }
 0x18c   : > { %p3419_p5 = pmov %p3415_p6 }
 0x18d   : > { %2663 = vsyncadd (%p3418_p8), [#allocation9], 4294965632 }
 0x18e   : > { %2665 = dma.done.wait (%p3419_p5), [#allocation12], 32   ;;  %p3420_p9 = pmov %p3419_p5 }
 0x18f   : > { %p3421_p7 = pmov %p3419_p5 }
 0x190   : > { %2667 = vsyncadd (%p3420_p9), [#allocation12], 4294967264 }
 0x191   : > { %2669 = dma.done.wait (%p3421_p7), [#allocation15], 272   ;;  %p3422_p10 = pmov %p3419_p5 }
 0x192   : > { %p3423_p4 = pmov %p3419_p5 }
 0x193   : > { %2671 = vsyncadd (%p3422_p10), [#allocation15], 4294967024 }
 0x194   : > { %2673 = dma.done.wait (%p3423_p4), [#allocation18], 528   ;;  %p3424_p13 = pmov %p3423_p4 }
 0x195   : > { %p3425_p1 = pmov %p3423_p4 }
 0x196   : > { %2675 = vsyncadd (%p3424_p13), [#allocation18], 4294966768 }
 0x197   : > { %2677 = dma.done.wait (%p3425_p1), [#allocation21], 32   ;;  %p3426_p3 = pmov %p3425_p1 }
 0x198   : > { %p3427_p2 = pmov %p3425_p1 }
 0x199   : > { %2679 = vsyncadd (%p3426_p3), [#allocation21], 4294967264 }
 0x19a   : > { %2681 = dma.done.wait (%p3427_p2), [#allocation24], 16   ;;  %p3428_p0 = pmov %p3425_p1 }
 0x19b   : > { %vm658_vm0 = vcmask 261120   ;;  %v3222_v0 = vld [vmem:[%s557_s22] sm:$0xff]  ;;  %v2180_v7 = vld [vmem:[#allocation8] sm:$0xff]   ;;  %v2720_v9 = vmov 0.0   ;;  %vm2721_vm1 = vmmov 0   ;;  %vm1033_vm2 = vcmask 64512  }
 0x19c   : > { %2683 = vsyncadd (%p3428_p0), [#allocation24], 4294967280  ;;  %v659_v1 = vsel %vm658_vm0, %v3222_v0, 0.0  ;;  %v2181_v8 = vld [vmem:[#allocation8 + $0x10] sm:$0xff]   ;;  %1895 = vmatprep.subr.bf16.mxu0 %v2720_v9  ;;  %1903 = vmatprep.subr.bf16.mxu1 %v2720_v9  ;;  %v2182_v10 = vld [vmem:[#allocation8 + $0x8] sm:$0xff]   ;;  %vm1155_vm3 = vcmask 1043456  }
 0x19d   : > { %660 = vadd.xlane.f32.xlu0 %v659_v1  ;;  %1896 = vmatpush3.bf16.msra.mxu0 %v2180_v7  ;;  %v2183_v11 = vld [vmem:[#allocation8 + $0x18] sm:$0xff]   ;;  %v2184_v21 = vld [vmem:[#allocation8 + $0x20] sm:$0xff]   ;;  %v2185_v22 = vld [vmem:[#allocation8 + $0x30] sm:$0xff]   ;;  %vm1487_vm4 = vcmask 523264   ;;  %s1854_s25 = sshll.u32 %s3414_s27, 7  ;;  %s653_s21 = scalar_lea.vmem [#allocation25], %s1797_s28 }
 0x19e   : > { %1904 = vmatpush3.bf16.msra.mxu1 %v2181_v8  ;;  %1897 = vmatprep.subr.bf16.mxu0 %v2720_v9  ;;  %v1812_v16 = vld [vmem:[#allocation5] ss:$0 sm:$0xff]  ;;  %v1813_v18 = vld [vmem:[#allocation7] ss:$0 sm:$0xff]  ;;  %v2186_v24 = vld [vmem:[#allocation8 + $0x28] sm:$0xff]   ;;  %s1584_s24 = sshll.u32 %s653_s21, 4  ;;  %s3318_s24 = int_to_ptr.vmem [resolvable:$true] %s1584_s24 }
 0x19f   : > { %1905 = vmatprep.subr.bf16.mxu1 %v2720_v9  ;;  %1899 = vmatprep.mubr.msk.bf16.mxu0 %vm2721_vm1, %v2720_v9  ;;  %v2187_v25 = vld [vmem:[#allocation8 + $0x38] sm:$0xff]   ;;  %v2188_v26 = vld [vmem:[#allocation8 + $0x40] sm:$0xff]   ;;  %v2189_v27 = vld [vmem:[#allocation8 + $0x50] sm:$0xff]   ;;  %s3429_s1 = sld [smem:[#allocation41_spill]]  ;;  %s1571_s14 = scalar_lea.sflag [#allocation4], %s3184_s18 }
 0x1a0   : > { %1907 = vmatprep.mubr.msk.bf16.mxu1 %vm2721_vm1, %v2720_v9  ;;  %v2190_v28 = vld [vmem:[#allocation8 + $0x48] sm:$0xff]   ;;  %v2191_v29 = vld [vmem:[#allocation8 + $0x58] sm:$0xff]   ;;  %s2608_s22 = scalar_lea.vmem %s3318_s24, 128  ;;  %p3430_p11 = scmp.ne.s32.totalorder %s3408_s17, 0 }
 0x1a1   : > { %1898 = vmatpush3.bf16.msra.mxu0 %v2182_v10  ;;  %p2609_p6 = scmp.ne.s32.totalorder %s3318_s24, %s2608_s22  ;;  %s2722_s28 = smov [#allocation25]  }
 0x1a2   : > { %1906 = vmatpush3.bf16.msra.mxu1 %v2183_v11  ;;  %1911 = vmatprep.subr.bf16.mxu0 %v2720_v9  ;;  %s2612_s27 = sshll.u32 %s2722_s28, 4  ;;  %s2613_s27 = int_to_ptr.vmem [resolvable:$false] %s2612_s27 }
 0x1a3   : > { %1919 = vmatprep.subr.bf16.mxu1 %v2720_v9  ;;  %p2610_p12 = pnand %p2609_p6, %p3430_p11  ;;  %s2614_s2 = scalar_lea.vmem %s2613_s27, 256 }
 0x1a4   : > { %p2615_p5 = scmp.lt.s32.totalorder %s3318_s24, %s2613_s27  ;;  %p2616_p9 = scmp.lt.s32.totalorder %s2614_s2, %s2608_s22 }
 0x1a5   : > { %s3316_s20 = scalar_lea.hbm %s3429_s1, %s1854_s25  ;;  %p2611_p8 = pneg %p2610_p12 }
 0x1a6   : > { %p2617_p7 = por %p2616_p9, %p2615_p5 }
 0x1a8   : > { %p2618_p10 = pnand %p2617_p7, %p2611_p8 }
 0x22a   : > { %v661_v2 = vpop.xlane.xlu0 %660 }
 0x22b   : > { %v663_v3 = vmul.f32 0.03125, %v661_v2 }
 0x22d   : > { %v664_v4 = vsub.f32 %v3222_v0, %v663_v3 }
 0x22f   : > { %v665_v5 = vmul.f32 %v664_v4, %v664_v4 }
 0x231   : > { %v666_v6 = vsel %vm658_vm0, %v665_v5, 0.0 }
 0x232   : > { %667 = vadd.xlane.f32.xlu0 %v666_v6 }
 0x2bf   : > { %v668_v12 = vpop.xlane.xlu0 %667 }
 0x2c0   : > { %v669_v13 = vmul.f32 0.03125, %v668_v12 }
 0x2c2   : > { %v670_v14 = vadd.f32 1e-05, %v669_v13 }
 0x2c4   : > { %2198 = vrsqrt.f32 %v670_v14 }
 0x2ce   : > { %v2199_v15 = vpop.eup %2198 }
 0x2cf   : > { %v672_v17 = vmul.f32 %v2199_v15, %v664_v4 }
 0x2d1   : > { %v679_v19 = vmul.f32 %v1812_v16, %v672_v17 }
 0x2d3   : > { %v686_v20 = vadd.f32 %v1813_v18, %v679_v19 }
 0x2d5   : > { %v687_v23 = vpack.c.bf16 %v686_v20, %v686_v20 }
 0x2d7   : > { %1900 = vmatmul.mubr.msk.bf16.vlgmr.msra.gmra.mrb[0].mxu0 %vm658_vm0, %v687_v23  ;;  %1908 = vmatmul.mubr.msk.bf16.vlgmr.msra.gmra.mrb[0].mxu1 %vm658_vm0, %v687_v23 }
 0x2d8   : > { %1912 = vmatpush3.bf16.msra.mxu0 %v2184_v21  ;;  %1920 = vmatpush3.bf16.msra.mxu1 %v2185_v22 }
 0x2d9   : > { %1913 = vmatprep.subr.bf16.mxu0 %v2720_v9  ;;  %1921 = vmatprep.subr.bf16.mxu1 %v2720_v9 }
 0x2da   : > { %1915 = vmatprep.mubr.msk.bf16.mxu0 %vm2721_vm1, %v2720_v9  ;;  %1923 = vmatprep.mubr.msk.bf16.mxu1 %vm2721_vm1, %v2720_v9 }
 0x2dc   : > { %1914 = vmatpush3.bf16.msra.mxu0 %v2186_v24  ;;  %1922 = vmatpush3.bf16.msra.mxu1 %v2187_v25 }
 0x2dd   : > { %1927 = vmatprep.subr.bf16.mxu0 %v2720_v9  ;;  %1935 = vmatprep.subr.bf16.mxu1 %v2720_v9 }
 0x2df   : > { %1916 = vmatmul.mubr.msk.bf16.vlgmr.msra.gmra.mrb[4].mxu0 %vm658_vm0, %v687_v23  ;;  %1924 = vmatmul.mubr.msk.bf16.vlgmr.msra.gmra.mrb[4].mxu1 %vm658_vm0, %v687_v23 }
 0x2e0   : > { %1928 = vmatpush3.bf16.msra.mxu0 %v2188_v26  ;;  %1936 = vmatpush3.bf16.msra.mxu1 %v2189_v27 }
 0x2e1   : > { %1929 = vmatprep.subr.bf16.mxu0 %v2720_v9  ;;  %1937 = vmatprep.subr.bf16.mxu1 %v2720_v9 }
 0x2e2   : > { %1931 = vmatprep.mubr.msk.bf16.mxu0 %vm2721_vm1, %v2720_v9  ;;  %1939 = vmatprep.mubr.msk.bf16.mxu1 %vm2721_vm1, %v2720_v9 }
 0x2e4   : > { %1930 = vmatpush3.bf16.msra.mxu0 %v2190_v28  ;;  %1938 = vmatpush3.bf16.msra.mxu1 %v2191_v29 }
 0x2e5   : > { %1943 = vmatprep.subr.bf16.mxu0 %v2720_v9  ;;  %1949 = vmatprep.subr.bf16.mxu1 %v2720_v9 }
 0x2e7   : > { %1932 = vmatmul.mubr.msk.bf16.vlgmr.msra.gmra.mrb[8].mxu0 %vm658_vm0, %v687_v23  ;;  %1940 = vmatmul.mubr.msk.bf16.vlgmr.msra.gmra.mrb[8].mxu1 %vm658_vm0, %v687_v23 }
 0x2e8   : > { %1945 = vmatprep.mubr.msk.bf16.mxu0 %vm2721_vm1, %v2720_v9  ;;  %1951 = vmatprep.mubr.msk.bf16.mxu1 %vm2721_vm1, %v2720_v9 }
 0x3aa   : > { %v761_v30 = vpop.f32.mrb[0].mxu0  ;;  %v813_v31 = vpop.f32.mrb[0].mxu1 }
 0x3ab   : > { %v1901_v32 = vpop.f32.mrb[1].mxu0  ;;  %v1909_v33 = vpop.f32.mrb[1].mxu1  ;;  %v819_v50 = vmul.f32 0.35355338, %v761_v30  ;;  %v820_v51 = vmul.f32 0.35355338, %v813_v31 }
 0x3ac   : > { %v764_v34 = vpop.f32.mrb[2].mxu0  ;;  %v816_v35 = vpop.f32.mrb[2].mxu1  ;;  %v1247_v32 = vld [vmem:[#allocation10] sm:$0xf] }
 0x3ad   : > { %v1902_v36 = vpop.f32.mrb[3].mxu0  ;;  %v1910_v37 = vpop.f32.mrb[3].mxu1  ;;  %v1029_v54 = vpack.c.bf16 %v819_v50, %v819_v50  ;;  %v1030_v55 = vpack.c.bf16 %v820_v51, %v820_v51  ;;  %v1253_v33 = vsel %vm1155_vm3, %v1247_v32, 0  ;;  %v1248_v34 = vld [vmem:[#allocation10 + $0x4] sm:$0xf] }
 0x3ae   : > { %v1299_v35 = vsel %vm1155_vm3, %v1248_v34, 0  ;;  %v1850_v32 = vld [vmem:[#allocation20] ss:$0 sm:$0xff] }
 0x3b2   : > { %v867_v38 = vpop.f32.mrb[4].mxu0  ;;  %v919_v39 = vpop.f32.mrb[4].mxu1 }
 0x3b3   : > { %v1031_v40 = vpack.c.bf16 %v867_v38, %v867_v38  ;;  %v1032_v41 = vpack.c.bf16 %v919_v39, %v919_v39  ;;  %v1917_v42 = vpop.f32.mrb[5].mxu0  ;;  %v1925_v43 = vpop.f32.mrb[5].mxu1 }
 0x3b4   : > { %v870_v44 = vpop.f32.mrb[6].mxu0  ;;  %v922_v45 = vpop.f32.mrb[6].mxu1 }
 0x3b5   : > { %v1038_v46 = vsel %vm1033_vm2, %v1031_v40, 0  ;;  %v1084_v47 = vsel %vm1033_vm2, %v1032_v41, 0  ;;  %v1918_v48 = vpop.f32.mrb[7].mxu0  ;;  %v1926_v49 = vpop.f32.mrb[7].mxu1 }
 0x3b6   : > { %1944 = vmatpush3.bf16.xpose.msra.mxu0 %v1038_v46  ;;  %1950 = vmatpush3.bf16.xpose.msra.mxu1 %v1084_v47 }
 0x3b7   : > { %1955 = vmatprep.subr.bf16.mxu0 %v2720_v9  ;;  %1961 = vmatprep.subr.bf16.mxu1 %v2720_v9 }
 0x3ba   : > { %v971_v52 = vpop.f32.mrb[8].mxu0  ;;  %v1023_v53 = vpop.f32.mrb[8].mxu1 }
 0x3bb   : > { %v1150_v56 = vpack.c.bf16 %v971_v52, %v971_v52  ;;  %v1151_v57 = vpack.c.bf16 %v1023_v53, %v1023_v53  ;;  %v1933_v58 = vpop.f32.mrb[9].mxu0  ;;  %v1941_v59 = vpop.f32.mrb[9].mxu1 }
 0x3bc   : > { %v974_v60 = vpop.f32.mrb[10].mxu0  ;;  %v1026_v61 = vpop.f32.mrb[10].mxu1 }
 0x3bd   : > { %v1157_v62 = vsel %vm1155_vm3, %v1150_v56, 0  ;;  %v1203_v63 = vsel %vm1155_vm3, %v1151_v57, 0  ;;  %v1934_v1 = vpop.f32.mrb[11].mxu0  ;;  %v1942_v2 = vpop.f32.mrb[11].mxu1  ;;  %1946 = vmatmul.mubr.msk.bf16.vlgmr.msra.gmra.mrb[12].mxu0 %vm1033_vm2, %v1029_v54  ;;  %1952 = vmatmul.mubr.msk.bf16.vlgmr.msra.gmra.mrb[12].mxu1 %vm1033_vm2, %v1030_v55  ;;  %v1838_v57 = vld [vmem:[#allocation11] ss:$0 sm:$0xff] }
 0x3be   : > { %1956 = vmatpush3.bf16.msra.mxu0 %v1157_v62  ;;  %1962 = vmatpush3.bf16.msra.mxu1 %v1203_v63 }
 0x3bf   : > { %1957 = vmatprep.mubr.msk.bf16.mxu0 %vm2721_vm1, %v2720_v9  ;;  %1963 = vmatprep.mubr.msk.bf16.mxu1 %vm2721_vm1, %v2720_v9 }
 0x3c0   : > { %1967 = vmatprep.subr.bf16.mxu0 %v2720_v9  ;;  %1973 = vmatprep.subr.bf16.mxu1 %v2720_v9 }
 0x490   : > { %v1074_v3 = vpop.f32.mrb[12].mxu0  ;;  %v1120_v4 = vpop.f32.mrb[12].mxu1 }
 0x491   : > { %v1947_v5 = vpop.f32.mrb[13].mxu0  ;;  %v1953_v6 = vpop.f32.mrb[13].mxu1  ;;  %v1126_v7 = vsel %vm1033_vm2, %v1074_v3, -inf  ;;  %v1129_v13 = vsel %vm1033_vm2, %v1120_v4, -inf }
 0x492   : > { %v1123_v8 = vpop.f32.mrb[14].mxu1  ;;  %1127 = vmax.xlane.f32.xlu1 %v1126_v7  ;;  %v1077_v10 = vpop.f32.mrb[14].mxu0 }
 0x493   : > { %v1948_v11 = vpop.f32.mrb[15].mxu0  ;;  %v1954_v12 = vpop.f32.mrb[15].mxu1  ;;  %v1839_v8 = vld [vmem:[#allocation13] ss:$0 sm:$0xff] }
 0x494   : > { %v1840_v11 = vld [vmem:[#allocation14] ss:$0 sm:$0xff] }
 0x496   : > { %1130 = vmax.xlane.f32.xlu1 %v1129_v13 }
 0x51f   : > { %v1128_v14 = vpop.xlane.xlu1 %1127 }
 0x520   : > { %v1132_v15 = vsub.f32 %v1074_v3, %v1128_v14  ;;  %v2192_v3 = vld [vmem:[#allocation16] sm:$0xff]  }
 0x522   : > { %v1134_v16 = vmul.f32 1.442695, %v1132_v15  ;;  %v2194_v15 = vld [vmem:[#allocation19] sm:$0xff]  }
 0x523   : > { %v1131_v17 = vpop.xlane.xlu1 %1130 }
 0x524   : > { %2200 = vpow2.f32 %v1134_v16  ;;  %v1133_v18 = vsub.f32 %v1120_v4, %v1131_v17  ;;  %v2193_v4 = vld [vmem:[#allocation16 + $0x8] sm:$0xff]   ;;  %v2195_v16 = vld [vmem:[#allocation19 + $0x8] sm:$0xff]  }
 0x525   : > { %v2196_v17 = vld [vmem:[#allocation19 + $0x10] sm:$0xff]  }
 0x526   : > { %v1136_v19 = vmul.f32 1.442695, %v1133_v18  ;;  %v2197_v18 = vld [vmem:[#allocation19 + $0x18] sm:$0xff]  }
 0x528   : > { %2202 = vpow2.f32 %v1136_v19  ;;  %v1841_v19 = vld [vmem:[#allocation17] ss:$0 sm:$0xff] }
 0x52e   : > { %v2201_v20 = vpop.eup %2200 }
 0x52f   : > { %v1138_v21 = vsel %vm1033_vm2, %v2201_v20, 0.0 }
 0x530   : > { %1139 = vadd.xlane.f32.xlu0 %v1138_v21 }
 0x532   : > { %v2203_v22 = vpop.eup %2202 }
 0x533   : > { %v1141_v23 = vsel %vm1033_vm2, %v2203_v22, 0.0 }
 0x534   : > { %1142 = vadd.xlane.f32.xlu1 %v1141_v23 }
 0x5bd   : > { %v1140_v24 = vpop.xlane.xlu0 %1139 }
 0x5be   : > { %2204 = vrcp.f32 %v1140_v24 }
 0x5c1   : > { %v1143_v25 = vpop.xlane.xlu1 %1142 }
 0x5c2   : > { %2206 = vrcp.f32 %v1143_v25 }
 0x5c8   : > { %v2205_v26 = vpop.eup %2204 }
 0x5c9   : > { %v1146_v27 = vmul.f32 %v2205_v26, %v2201_v20 }
 0x5cb   : > { %v1148_v28 = vpack.c.bf16 %v1146_v27, %v1146_v27 }
 0x5cc   : > { %v2207_v29 = vpop.eup %2206 }
 0x5cd   : > { %v1147_v30 = vmul.f32 %v2207_v29, %v2203_v22  ;;  %1958 = vmatmul.mubr.msk.bf16.vlgmr.msra.gmra.mrb[16].mxu0 %vm1033_vm2, %v1148_v28 }
 0x5ce   : > { %1969 = vmatprep.mubr.msk.bf16.mxu0 %vm2721_vm1, %v2720_v9  ;;  %1968 = vmatpush3.bf16.msra.mxu0 %v1253_v33 }
 0x5cf   : > { %v1149_v31 = vpack.c.bf16 %v1147_v30, %v1147_v30  ;;  %1979 = vmatprep.subr.bf16.mxu0 %v2720_v9 }
 0x5d1   : > { %1964 = vmatmul.mubr.msk.bf16.vlgmr.msra.gmra.mrb[16].mxu1 %vm1033_vm2, %v1149_v31 }
 0x5d2   : > { %1975 = vmatprep.mubr.msk.bf16.mxu1 %vm2721_vm1, %v2720_v9  ;;  %1974 = vmatpush3.bf16.msra.mxu1 %v1299_v35 }
 0x5d3   : > { %1987 = vmatprep.subr.bf16.mxu1 %v2720_v9 }
 0x6a0   : > { %v1193_v36 = vpop.f32.mrb[16].mxu0 }
 0x6a1   : > { %v1245_v37 = vpack.c.bf16 %v1193_v36, %v1193_v36  ;;  %v1959_v38 = vpop.f32.mrb[17].mxu0 }
 0x6a2   : > { %v1196_v39 = vpop.f32.mrb[18].mxu0 }
 0x6a3   : > { %v1960_v40 = vpop.f32.mrb[19].mxu0  ;;  %1970 = vmatmul.mubr.msk.bf16.vlgmr.msra.gmra.mrb[20].mxu0 %vm1033_vm2, %v1245_v37 }
 0x6a4   : > { %v1239_v41 = vpop.f32.mrb[16].mxu1  ;;  %1983 = vmatprep.mubr.msk.bf16.mxu0 %vm2721_vm1, %v2720_v9  ;;  %1980 = vmatpush3.bf16.msra.mxu0 %v2192_v3 }
 0x6a5   : > { %v1246_v42 = vpack.c.bf16 %v1239_v41, %v1239_v41  ;;  %v1965_v43 = vpop.f32.mrb[17].mxu1  ;;  %1981 = vmatprep.subr.bf16.mxu0 %v2720_v9 }
 0x6a6   : > { %v1242_v44 = vpop.f32.mrb[18].mxu1 }
 0x6a7   : > { %v1966_v45 = vpop.f32.mrb[19].mxu1  ;;  %1976 = vmatmul.mubr.msk.bf16.vlgmr.msra.gmra.mrb[20].mxu1 %vm1033_vm2, %v1246_v42 }
 0x6a8   : > { %1995 = vmatprep.mubr.msk.bf16.mxu1 %vm2721_vm1, %v2720_v9  ;;  %1982 = vmatpush3.bf16.msra.mxu0 %v2193_v4 }
 0x6a9   : > { %1988 = vmatpush3.bf16.msra.mxu1 %v2194_v15 }
 0x6aa   : > { %1989 = vmatprep.subr.bf16.mxu1 %v2720_v9 }
 0x6ad   : > { %1990 = vmatpush3.bf16.msra.mxu1 %v2195_v16 }
 0x6ae   : > { %1991 = vmatprep.subr.bf16.mxu1 %v2720_v9 }
 0x6b1   : > { %1992 = vmatpush3.bf16.msra.mxu1 %v2196_v17 }
 0x6b2   : > { %1993 = vmatprep.subr.bf16.mxu1 %v2720_v9 }
 0x6b5   : > { %1994 = vmatpush3.bf16.msra.mxu1 %v2197_v18 }
 0x776   : > { %v1289_v46 = vpop.f32.mrb[20].mxu0 }
 0x777   : > { %v1971_v47 = vpop.f32.mrb[21].mxu0  ;;  %v1341_v51 = vsel %vm658_vm0, %v1289_v46, 0.0 }
 0x778   : > { %v1292_v48 = vpop.f32.mrb[22].mxu0  ;;  %v1851_v47 = vld [vmem:[#allocation22] ss:$0 sm:$0xff] }
 0x779   : > { %v1972_v49 = vpop.f32.mrb[23].mxu0 }
 0x77a   : > { %v1335_v50 = vpop.f32.mrb[20].mxu1  ;;  %v1852_v49 = vld [vmem:[#allocation23] ss:$0 sm:$0xff] }
 0x77b   : > { %v1342_v52 = vsel %vm658_vm0, %v1335_v50, 0.0  ;;  %v1977_v53 = vpop.f32.mrb[21].mxu1 }
 0x77c   : > { %v1343_v54 = vadd.f32 %v1342_v52, %v1341_v51  ;;  %v1338_v55 = vpop.f32.mrb[22].mxu1 }
 0x77d   : > { %v1978_v56 = vpop.f32.mrb[23].mxu1 }
 0x77e   : > { %v1344_v58 = vadd.f32 %v1343_v54, %v3222_v0 }
 0x780   : > { %v1352_v59 = vadd.f32 %v1838_v57, %v1344_v58 }
 0x782   : > { %v1355_v60 = vsel %vm658_vm0, %v1352_v59, 0.0 }
 0x783   : > { %1356 = vadd.xlane.f32.xlu0 %v1355_v60 }
 0x810   : > { %v1357_v61 = vpop.xlane.xlu0 %1356 }
 0x811   : > { %v1358_v62 = vmul.f32 0.03125, %v1357_v61 }
 0x813   : > { %v1359_v63 = vsub.f32 %v1352_v59, %v1358_v62 }
 0x815   : > { %v1360_v1 = vmul.f32 %v1359_v63, %v1359_v63 }
 0x817   : > { %v1361_v2 = vsel %vm658_vm0, %v1360_v1, 0.0 }
 0x818   : > { %1362 = vadd.xlane.f32.xlu1 %v1361_v2 }
 0x8a5   : > { %v1363_v5 = vpop.xlane.xlu1 %1362 }
 0x8a6   : > { %v1364_v6 = vmul.f32 0.03125, %v1363_v5 }
 0x8a8   : > { %v1365_v0 = vadd.f32 1e-05, %v1364_v6 }
 0x8aa   : > { %2208 = vrsqrt.f32 %v1365_v0 }
 0x8b4   : > { %v2209_v7 = vpop.eup %2208 }
 0x8b5   : > { %v1367_v10 = vmul.f32 %v2209_v7, %v1359_v63 }
 0x8b7   : > { %v1374_v12 = vmul.f32 %v1839_v8, %v1367_v10 }
 0x8b9   : > { %v1381_v13 = vadd.f32 %v1840_v11, %v1374_v12 }
 0x8bb   : > { %v1382_v14 = vpack.c.bf16 %v1381_v13, %v1381_v13 }
 0x8bd   : > { %1984 = vmatmul.mubr.msk.bf16.vlgmr.msra.gmra.mrb[24].mxu0 %vm658_vm0, %v1382_v14 }
 0x990   : > { %v1443_v20 = vpop.f32.mrb[24].mxu0 }
 0x991   : > { %v1444_v21 = vadd.f32 %v1841_v19, %v1443_v20  ;;  %v1985_v22 = vpop.f32.mrb[25].mxu0 }
 0x992   : > { %v1446_v23 = vpop.f32.mrb[26].mxu0 }
 0x993   : > { %v1450_v24 = vmul.f32 0.70710677, %v1444_v21  ;;  %v1986_v25 = vpop.f32.mrb[27].mxu0  ;;  %v1449_v27 = vmul.f32 0.5, %v1444_v21 }
 0x995   : > { %2210 = verf.f32 %v1450_v24 }
 0x99f   : > { %v2211_v26 = vpop.eup %2210 }
 0x9a0   : > { %v1452_v28 = vadd.f32 1.0, %v2211_v26 }
 0x9a2   : > { %v1453_v29 = vmul.f32 %v1452_v28, %v1449_v27 }
 0x9a4   : > { %v1454_v30 = vpack.c.bf16 %v1453_v29, %v1453_v29 }
 0x9a6   : > { %1996 = vmatmul.mubr.msk.bf16.vlgmr.msra.gmra.mrb[24].mxu1 %vm1487_vm4, %v1454_v30 }
 0xa79   : > { %v1525_v31 = vpop.f32.mrb[24].mxu1 }
 0xa7a   : > { %v1531_v9 = vadd.f32 %v1525_v31, %v1352_v59  ;;  %v1997_v33 = vpop.f32.mrb[25].mxu1 }
 0xa7b   : > { %v1528_v34 = vpop.f32.mrb[26].mxu1 }
 0xa7c   : > { %v1998_v35 = vpop.f32.mrb[27].mxu1  ;;  %v1539_v36 = vadd.f32 %v1850_v32, %v1531_v9 }
 0xa7e   : > { %v1542_v37 = vsel %vm658_vm0, %v1539_v36, 0.0 }
 0xa7f   : > { %1543 = vadd.xlane.f32.xlu0 %v1542_v37 }
 0xb0c   : > { %v1544_v38 = vpop.xlane.xlu0 %1543 }
 0xb0d   : > { %v1545_v39 = vmul.f32 0.03125, %v1544_v38 }
 0xb0f   : > { %v1546_v40 = vsub.f32 %v1539_v36, %v1545_v39 }
 0xb11   : > { %v1547_v41 = vmul.f32 %v1546_v40, %v1546_v40 }
 0xb13   : > { %v1548_v42 = vsel %vm658_vm0, %v1547_v41, 0.0 }
 0xb14   : > { %1549 = vadd.xlane.f32.xlu1 %v1548_v42 }
 0xba1   : > { %v1550_v43 = vpop.xlane.xlu1 %1549 }
 0xba2   : > { %v1551_v44 = vmul.f32 0.03125, %v1550_v43 }
 0xba4   : > { %v1552_v45 = vadd.f32 1e-05, %v1551_v44 }
 0xba6   : > { %2212 = vrsqrt.f32 %v1552_v45 }
 0xbb0   : > { %v2213_v46 = vpop.eup %2212 }
 0xbb1   : > { %v1554_v48 = vmul.f32 %v2213_v46, %v1546_v40 }
 0xbb3   : > { %v1561_v50 = vmul.f32 %v1851_v47, %v1554_v48 }
 0xbb5   : > { %v1568_v51 = vadd.f32 %v1852_v49, %v1561_v50 }
 0xbb7   : > { %1569 = vst.msk [vmem:[%s653_s21] sm:$0xff] %vm658_vm0, %v1568_v51 }
 0xbb8   : > { %2621 = shalt.err (!%p2618_p10)
}
 0xbb9   : > { %s2622_s18 = scalar_lea.hbm %s3316_s20, 128  ;;  %s2626_s19 = scalar_lea.hbm %s3429_s1, 256 }
 0xbba   : > { %p2623_p4 = scmp.ne.s32.totalorder %s3316_s20, %s2622_s18  ;;  %p2627_p3 = scmp.lt.u32.totalorder %s3316_s20, %s3429_s1 }
 0xbbb   : > { %p2628_p2 = scmp.lt.u32.totalorder %s2626_s19, %s2622_s18  ;;  %p2630_p6 = scmp.lt.u32.totalorder %s2622_s18, %s3316_s20 }
 0xbbc   : > { %p2624_p13 = pnand %p2623_p4, %p3430_p11 }
 0xbbd   : > { %p2629_p0 = por %p2628_p2, %p2627_p3 }
 0xbbe   : > { %p2625_p1 = pneg %p2624_p13 }
 0xbbf   : > { %p2631_p12 = por %p2630_p6, %p2629_p0 }
 0xbc1   : > { %p2632_p8 = pnand %p2631_p12, %p2625_p1 }
 0xbc3   : > { %2635 = shalt.err (!%p2632_p8)
}
 0xbc4   : > { %2053 = dma.vmem_to_hbm [thread:$0]  (%p3430_p11), %s3318_s24, 128, %s3316_s20, %s1571_s14  }
 0xbc5 PF: > { %s1596_s2 = sand.u32 1, %s2690_s29   ;;  %p3431_p5 = scmp.ne.s32.totalorder %s3409_s0, 0 }
 0xbc6   : > { %p3432_p9 = scmp.ge.s32.totalorder %s2702_s16, 2  ;;  %s1597_s22 = scalar_lea.sflag [#allocation4], %s1596_s2 }
 0xbc8   : > { %p2100_p7 = pnand %p3432_p9, %p3431_p5 }
 0xbca   : > { %2685 = dma.done.wait (!%p2100_p7), %s1597_s22, 128  }
 0xbcb   : > { %2687 = vsyncadd (!%p2100_p7), %s1597_s22, 4294967168  ;;  %p34_p10 = scmp.ge.s32.totalorder %s3114_s23, 4   ;;  %s3433_s29 = smov %s2694_s30 }
 0xbcc   : > { %s3434_s30 = smov %s2698_s15  ;;  %s3435_s15 = smov %s3126_s3 }
 0xbcd   : > { %s3436_s16 = smov %s3114_s23  ;;  %36 = sbr.rel (!%p34_p10) target bundleno = 18 (0x12), region = 173 }
 0xbd4   :  { %1602 = vsyncpa [#allocation3], 1 }
 0xbd5   :  { %1604 = vsyncpa [#allocation3 + $0x1], 1 }
 0xbd6   :  { %1605 = vsyncpa [#allocation6], 1 }
 0xbd7   :  { %1606 = vsyncpa [#allocation9], 1 }
 0xbd8   :  { %1607 = vsyncpa [#allocation12], 1 }
 0xbd9   :  { %1608 = vsyncpa [#allocation15], 1 }
 0xbda   :  { %1609 = vsyncpa [#allocation18], 1 }
 0xbdb   :  { %1610 = vsyncpa [#allocation21], 1 }
 0xbdc   :  { %1611 = vsyncpa [#allocation24], 1 }
 0xbdd   :  { %1612 = vsyncpa [#allocation4], 1 }
 0xbde   :  { %1614 = vsyncpa [#allocation4 + $0x1], 1 }

</bundles_post_ra>
